<compile_context>
chip_gen: v7x
topology: tpu7x:2x2x1
jax: 0.10.0
libtpu: 0.0.40
codegen_flags: <defaults>
</compile_context>

<pallas_src>
import functools

import jax
import jax.numpy as jnp
from jax import lax
from jax.experimental import pallas as pl
from jax.experimental.pallas import tpu as pltpu

_NEG_MASK = -1e30  # masked-key energy bias (softmax weight -> 0)


def _pick_tile(n, target):
    """Largest multiple of 128 that divides n and is <= target (n % 128 == 0)."""
    t = min(target, n)
    t -= t % 128
    t = max(t, 128)
    while n % t != 0:
        t -= 128
    return t


def _vmem_limit_bytes(default=48 * 1024 * 1024):
    """Per-generation VMEM limit: ~85% of physical, capped at 112 MiB."""
    try:
        info = pltpu.get_tpu_info()
        cap = getattr(info, "vmem_capacity_bytes", None)
        if cap:
            return int(min(cap * 0.85, 112 * 1024 * 1024))
    except Exception:
        pass
    return default


def _pam_kernel(q_ref, k_ref, v_ref, wv_ref, bv_ref, o_ref,
                m_sc, l_sc, acc_sc, *, tk, num_kv, compute_dtype):
    # q_ref  : (1, TQ, C8p)   pre-projected queries + ones channel (compute dtype)
    # k_ref  : (1, C8p, Npad) pre-projected keys + mask-bias channel, VMEM resident
    # v_ref  : (1, Npad, C)   raw x in (spatial, channel) layout, VMEM resident
    # wv_ref : (C, C) value weight (compute dtype); bv_ref: (C, 1) f32
    # o_ref  : (1, C, TQ)     lane-dense output block
    m_sc[...] = jnp.full_like(m_sc, -jnp.inf)
    l_sc[...] = jnp.zeros_like(l_sc)
    acc_sc[...] = jnp.zeros_like(acc_sc)

    k_view = k_ref.at[0]          # (C8p, Npad) view, no load
    v_view = v_ref.at[0]          # (Npad, C)   view, no load

    @pl.loop(0, num_kv)
    def _kv_step(kj):
        start = pl.multiple_of(kj * tk, 128)
        k_tile = k_view[:, pl.ds(start, tk)]        # (C8p, TK)
        v_tile = v_view[pl.ds(start, tk), :]        # (TK, C)
        q_tile = q_ref[0]                           # (TQ, C8p)

        # energy tile (TQ, TK), canonical MXU contraction over C8p.
        e = lax.dot_general(q_tile, k_tile,
                            dimension_numbers=(((1,), (0,)), ((), ())),
                            preferred_element_type=jnp.float32)

        m_prev = m_sc[...]
        m_new = jnp.maximum(m_prev, jnp.max(e, axis=-1, keepdims=True))
        alpha = jnp.exp(m_prev - m_new)                              # (TQ, 1) f32
        p = jnp.exp((e - m_new).astype(compute_dtype))               # (TQ, TK)
        l_sc[...] = alpha * l_sc[...] + jnp.sum(
            p, axis=-1, keepdims=True, dtype=jnp.float32)
        # unnormalized attention-weighted sum of raw x, canonical PV matmul.
        acc_sc[...] = alpha * acc_sc[...] + lax.dot_general(
            p, v_tile, dimension_numbers=(((1,), (0,)), ((), ())),
            preferred_element_type=jnp.float32)                      # (TQ, C)
        m_sc[...] = m_new

    # finalize: exact normalization + value projection once per query tile.
    inv_l = 1.0 / l_sc[...]                                          # (TQ, 1)
    z = (acc_sc[...] * inv_l).astype(compute_dtype)                  # (TQ, C)
    out = lax.dot_general(wv_ref[...], z,
                          dimension_numbers=(((1,), (1,)), ((), ())),
                          preferred_element_type=jnp.float32)        # (C, TQ)
    o_ref[0] = (out + bv_ref[...]).astype(o_ref.dtype)


@functools.partial(jax.jit,
                   static_argnames=("compute_dtype", "tq_target", "tk_target"))
def pam_forward(x, wq, bq, wk, bk, wv, bv, *,
                compute_dtype=jnp.bfloat16, tq_target=512, tk_target=512):
    """x: (B, C, H, W) float32 (NCHW).  Conv weights as in nn.Conv2d(k=1)."""
    B, C, H, W = x.shape
    N = H * W
    C8 = wq.shape[0]
    C8p = C8 + 1                                    # extra channel carries key mask

    Npad = ((N + 127) // 128) * 128
    pad = Npad - N

    x_flat = x.reshape(B, C, N)                     # pure reshape (lane dim = N)
    wq2 = wq.reshape(C8, C).astype(jnp.float32)
    wk2 = wk.reshape(C8, C).astype(jnp.float32)
    wv2 = wv.reshape(C, C).astype(jnp.float32)

    # Pre-projected queries (spatial-major) + ones channel for the mask bias.
    q_proj = jnp.einsum("oc,bcn->bno", wq2, x_flat) + bq[None, None, :]   # (B, N, C8)
    q_aug = jnp.concatenate([q_proj, jnp.ones((B, N, 1), q_proj.dtype)], axis=-1)
    q_aug = jnp.pad(q_aug, ((0, 0), (0, pad), (0, 0)))                    # (B, Npad, C8p)

    # Pre-projected keys (channel-major) + mask-bias channel (0 valid / -1e30 pad).
    k_proj = jnp.einsum("oc,bcn->bon", wk2, x_flat) + bk[None, :, None]   # (B, C8, N)
    k_proj = jnp.pad(k_proj, ((0, 0), (0, 0), (0, pad)))                  # (B, C8, Npad)
    col_bias = jnp.where(jnp.arange(Npad) < N, 0.0, _NEG_MASK).astype(jnp.float32)
    k_aug = jnp.concatenate(
        [k_proj, jnp.broadcast_to(col_bias[None, None, :], (B, 1, Npad))], axis=1)

    # Raw values in (spatial, channel) layout so the PV matmul is canonical.
    v_t = jnp.swapaxes(x_flat, 1, 2)                                      # (B, N, C)
    v_t = jnp.pad(v_t, ((0, 0), (0, pad), (0, 0)))                        # (B, Npad, C)

    q_aug = q_aug.astype(compute_dtype)
    k_aug = k_aug.astype(compute_dtype)
    v_t = v_t.astype(compute_dtype)
    wv_c = wv2.astype(compute_dtype)
    bv_col = bv.reshape(C, 1).astype(jnp.float32)

    # Tile selection: large query tiles (keys are resident, so tq only amortizes
    # per-step overhead), but keep >= 2 query tiles total for v7x's two TCs.
    tq = _pick_tile(Npad, tq_target)
    while B * (Npad // tq) < 2 and tq > 128:
        tq = _pick_tile(Npad, tq - 128)
    tk = _pick_tile(Npad, tk_target)
    num_kv = Npad // tk
    grid = (B, Npad // tq)

    # TODO(synk): fall back to a streamed-KV grid (extra kj axis) when
    # (C + C8p) * Npad * itemsize no longer fits the per-core VMEM budget.

    kernel = functools.partial(_pam_kernel, tk=tk, num_kv=num_kv,
                               compute_dtype=compute_dtype)

    out_flat = pl.pallas_call(
        kernel,
        out_shape=jax.ShapeDtypeStruct((B, C, Npad), x.dtype),
        grid_spec=pltpu.PrefetchScalarGridSpec(
            num_scalar_prefetch=0,
            grid=grid,
            in_specs=[
                pl.BlockSpec((1, tq, C8p), lambda b, qi: (b, qi, 0)),   # queries
                pl.BlockSpec((1, C8p, Npad), lambda b, qi: (b, 0, 0)),  # keys (resident)
                pl.BlockSpec((1, Npad, C), lambda b, qi: (b, 0, 0)),    # values (resident)
                pl.BlockSpec((C, C), lambda b, qi: (0, 0)),             # Wv
                pl.BlockSpec((C, 1), lambda b, qi: (0, 0)),             # bv
            ],
            out_specs=pl.BlockSpec((1, C, tq), lambda b, qi: (b, 0, qi)),
            scratch_shapes=[
                pltpu.VMEM((tq, 1), jnp.float32),     # m (running max)
                pltpu.VMEM((tq, 1), jnp.float32),     # l (running denom)
                pltpu.VMEM((tq, C), jnp.float32),     # acc = sum_j p_ij x_j
            ]),
        compiler_params=pltpu.CompilerParams(
            dimension_semantics=("parallel", "parallel"),
            vmem_limit_bytes=_vmem_limit_bytes(),
        ),
    )(q_aug, k_aug, v_t, wv_c, bv_col)

    return out_flat[:, :, :N].reshape(B, C, H, W)


def pam_reference(x, wq, bq, wk, bk, wv, bv):
    """Plain-JAX reference matching the PyTorch forward exactly (unfused)."""
    B, C, H, W = x.shape
    N = H * W
    C8 = wq.shape[0]
    xf = x.reshape(B, C, N)
    q = jnp.einsum("oc,bcn->bon", wq.reshape(C8, C), xf) + bq[None, :, None]
    k = jnp.einsum("oc,bcn->bon", wk.reshape(C8, C), xf) + bk[None, :, None]
    v = jnp.einsum("oc,bcn->bon", wv.reshape(C, C), xf) + bv[None, :, None]
    energy = jnp.einsum("bci,bcj->bij", q, k)                     # (B, N, N)
    att = jax.nn.softmax(energy, axis=-1)
    out = jnp.einsum("bcj,bij->bci", v, att)                      # (B, C, N)
    return out.reshape(B, C, H, W)


if __name__ == "__main__":
    def run_case(B, C, H, W, seed):
        C8 = C // 8
        key = jax.random.PRNGKey(seed)
        ks = jax.random.split(key, 7)
        x = jax.random.normal(ks[0], (B, C, H, W), dtype=jnp.float32)
        wq = jax.random.normal(ks[1], (C8, C, 1, 1), dtype=jnp.float32) * 0.1
        bq = jax.random.normal(ks[2], (C8,), dtype=jnp.float32) * 0.1
        wk = jax.random.normal(ks[3], (C8, C, 1, 1), dtype=jnp.float32) * 0.1
        bk = jax.random.normal(ks[4], (C8,), dtype=jnp.float32) * 0.1
        wv = jax.random.normal(ks[5], (C, C, 1, 1), dtype=jnp.float32) * 0.1
        bv = jax.random.normal(ks[6], (C,), dtype=jnp.float32) * 0.1

        ref = pam_reference(x, wq, bq, wk, bk, wv, bv)

        # default bf16 MXU path (f32 accumulation).
        out_bf16 = jax.block_until_ready(pam_forward(x, wq, bq, wk, bk, wv, bv))
        assert out_bf16.shape == (B, C, H, W)
        assert jnp.allclose(out_bf16, ref, rtol=5e-2, atol=5e-2), \
            f"bf16 mismatch vs reference for shape {(B, C, H, W)}"

        # f32 compute path for tight parity.
        out_f32 = jax.block_until_ready(
            pam_forward(x, wq, bq, wk, bk, wv, bv, compute_dtype=jnp.float32))
        assert jnp.allclose(out_f32, ref, rtol=1e-3, atol=1e-3), \
            f"f32 mismatch vs reference for shape {(B, C, H, W)}"

    run_case(2, 32, 16, 16, seed=0)   # N = 256 (128-aligned spatial axis)
    run_case(2, 32, 10, 10, seed=0)   # N = 100 (exercises pad + key-mask path)
    print("KERNEL_OK")
</pallas_src>

<mosaic_0001>
module attributes {stable_mosaic.version = 11 : i64} {
  func.func @_pam_kernel(%arg0: i32, %arg1: i32, %arg2: memref<1x256x5xbf16, #tpu.memory_space<vmem>>, %arg3: memref<1x5x256xbf16, #tpu.memory_space<vmem>>, %arg4: memref<1x256x32xbf16, #tpu.memory_space<vmem>>, %arg5: memref<32x32xbf16, #tpu.memory_space<vmem>>, %arg6: memref<32x1xf32, #tpu.memory_space<vmem>>, %arg7: memref<1x32x256xf32, #tpu.memory_space<vmem>>, %arg8: memref<256x1xf32, #tpu.memory_space<vmem>>, %arg9: memref<256x1xf32, #tpu.memory_space<vmem>>, %arg10: memref<256x32xf32, #tpu.memory_space<vmem>>) attributes {dimension_semantics = [#tpu.dimension_semantics<parallel>, #tpu.dimension_semantics<parallel>], iteration_bounds = array<i64: 2, 1>, scalar_prefetch = 0 : i64, scratch_operands = 3 : i64, tpu.core_type = #tpu.core_type<tc>, window_params = [{transform_indices = @transform_0, window_bounds = array<i64: 1, 256, 5>}, {transform_indices = @transform_1, window_bounds = array<i64: 1, 5, 256>}, {transform_indices = @transform_2, window_bounds = array<i64: 1, 256, 32>}, {pipeline_mode = #tpu.pipeline_mode<synchronous>, transform_indices = @transform_3, window_bounds = array<i64: 32, 32>}, {pipeline_mode = #tpu.pipeline_mode<synchronous>, transform_indices = @transform_4, window_bounds = array<i64: 32, 1>}, {transform_indices = @transform_5, window_bounds = array<i64: 1, 32, 256>}]} {
    %cst = arith.constant 0xFF800000 : f32
    %0 = vector.broadcast %cst : f32 to vector<256x1xf32>
    %c0 = arith.constant 0 : index
    %c0_0 = arith.constant 0 : index
    %1 = vector.load %arg8[%c0, %c0_0] : memref<256x1xf32, #tpu.memory_space<vmem>>, vector<256x1xf32>
    tpu.vector_store %arg8[%c0, %c0_0], %0 {strides = array<i32>} : memref<256x1xf32, #tpu.memory_space<vmem>>, vector<256x1xf32>,
    %cst_1 = arith.constant 0.000000e+00 : f32
    %2 = vector.broadcast %cst_1 : f32 to vector<256x1xf32>
    %c0_2 = arith.constant 0 : index
    %c0_3 = arith.constant 0 : index
    %3 = vector.load %arg9[%c0_2, %c0_3] : memref<256x1xf32, #tpu.memory_space<vmem>>, vector<256x1xf32>
    tpu.vector_store %arg9[%c0_2, %c0_3], %2 {strides = array<i32>} : memref<256x1xf32, #tpu.memory_space<vmem>>, vector<256x1xf32>,
    %cst_4 = arith.constant 0.000000e+00 : f32
    %4 = vector.broadcast %cst_4 : f32 to vector<256x32xf32>
    %c0_5 = arith.constant 0 : index
    %c0_6 = arith.constant 0 : index
    %5 = vector.load %arg10[%c0_5, %c0_6] : memref<256x32xf32, #tpu.memory_space<vmem>>, vector<256x32xf32>
    tpu.vector_store %arg10[%c0_5, %c0_6], %4 {strides = array<i32>} : memref<256x32xf32, #tpu.memory_space<vmem>>, vector<256x32xf32>,
    %c0_i32 = arith.constant 0 : i32
    %c0_i32_7 = arith.constant 0 : i32
    %c0_i32_8 = arith.constant 0 : i32
    %c1_i32 = arith.constant 1 : i32
    %6 = arith.muli %c0_i32_8, %c1_i32 : i32
    %c0_i32_9 = arith.constant 0 : i32
    %7 = arith.addi %c0_i32_9, %6 : i32
    %c256_i32 = arith.constant 256 : i32
    %8 = arith.muli %7, %c256_i32 : i32
    %9 = tpu.assume_multiple %8, 128 : i32
    %c0_i32_10 = arith.constant 0 : i32
    %c0_i32_11 = arith.constant 0 : i32
    %10 = tpu.memref_slice %arg3[%c0_i32, %c0_i32_10, %c0_i32_11] : memref<1x5x256xbf16, #tpu.memory_space<vmem>> -> memref<1x5x256xbf16, #tpu.memory_space<vmem>>
    %11 = tpu.memref_squeeze %10 : memref<1x5x256xbf16, #tpu.memory_space<vmem>> -> memref<5x256xbf16, #tpu.memory_space<vmem>>
    %c0_12 = arith.constant 0 : index
    %12 = arith.index_cast %9 : i32 to index
    %13 = vector.load %11[%c0_12, %12] : memref<5x256xbf16, #tpu.memory_space<vmem>>, vector<5x256xbf16>
    %c0_i32_13 = arith.constant 0 : i32
    %c0_i32_14 = arith.constant 0 : i32
    %14 = tpu.memref_slice %arg4[%c0_i32_7, %c0_i32_13, %c0_i32_14] : memref<1x256x32xbf16, #tpu.memory_space<vmem>> -> memref<1x256x32xbf16, #tpu.memory_space<vmem>>
    %15 = tpu.memref_squeeze %14 : memref<1x256x32xbf16, #tpu.memory_space<vmem>> -> memref<256x32xbf16, #tpu.memory_space<vmem>>
    %16 = arith.index_cast %9 : i32 to index
    %c0_15 = arith.constant 0 : index
    %17 = vector.load %15[%16, %c0_15] : memref<256x32xbf16, #tpu.memory_space<vmem>>, vector<256x32xbf16>
    %c0_16 = arith.constant 0 : index
    %c0_17 = arith.constant 0 : index
    %c0_18 = arith.constant 0 : index
    %18 = vector.load %arg2[%c0_16, %c0_17, %c0_18] : memref<1x256x5xbf16, #tpu.memory_space<vmem>>, vector<1x256x5xbf16>
    %19 = vector.shape_cast %18 : vector<1x256x5xbf16> to vector<256x5xbf16>
    %cst_19 = arith.constant dense<0.000000e+00> : vector<256x256xf32>
    %20 = tpu.matmul %19, %13, %cst_19 {dimension_numbers = #tpu.dot_dimension_numbers<[1], [0], [0], [1], [0, 0, 1, 1], [], []>} : vector<256x5xbf16>, vector<5x256xbf16>, vector<256x256xf32> -> vector<256x256xf32>
    %c0_20 = arith.constant 0 : index
    %c0_21 = arith.constant 0 : index
    %21 = vector.load %arg8[%c0_20, %c0_21] : memref<256x1xf32, #tpu.memory_space<vmem>>, vector<256x1xf32>
    %cst_22 = arith.constant dense<0xFF800000> : vector<256xf32>
    %22 = vector.multi_reduction <maximumf>, %20, %cst_22 [1] : vector<256x256xf32> to vector<256xf32>
    %23 = vector.shape_cast %22 : vector<256xf32> to vector<256x1xf32>
    %24 = arith.maximumf %21, %23 : vector<256x1xf32>
    %25 = arith.subf %21, %24 : vector<256x1xf32>
    %26 = math.exp %25 : vector<256x1xf32>
    %27 = vector.broadcast %24 : vector<256x1xf32> to vector<256x256xf32>
    %28 = arith.subf %20, %27 : vector<256x256xf32>
    %29 = arith.truncf %28 : vector<256x256xf32> to vector<256x256xbf16>
    %30 = math.exp %29 : vector<256x256xbf16>
    %c0_23 = arith.constant 0 : index
    %c0_24 = arith.constant 0 : index
    %31 = vector.load %arg9[%c0_23, %c0_24] : memref<256x1xf32, #tpu.memory_space<vmem>>, vector<256x1xf32>
    %32 = arith.mulf %26, %31 : vector<256x1xf32>
    %33 = arith.extf %30 : vector<256x256xbf16> to vector<256x256xf32>
    %cst_25 = arith.constant dense<0.000000e+00> : vector<256xf32>
    %34 = vector.multi_reduction <add>, %33, %cst_25 [1] : vector<256x256xf32> to vector<256xf32>
    %35 = vector.shape_cast %34 : vector<256xf32> to vector<256x1xf32>
    %36 = arith.addf %32, %35 : vector<256x1xf32>
    %c0_26 = arith.constant 0 : index
    %c0_27 = arith.constant 0 : index
    %37 = vector.load %arg9[%c0_26, %c0_27] : memref<256x1xf32, #tpu.memory_space<vmem>>, vector<256x1xf32>
    tpu.vector_store %arg9[%c0_26, %c0_27], %36 {strides = array<i32>} : memref<256x1xf32, #tpu.memory_space<vmem>>, vector<256x1xf32>,
    %c0_28 = arith.constant 0 : index
    %c0_29 = arith.constant 0 : index
    %38 = vector.load %arg10[%c0_28, %c0_29] : memref<256x32xf32, #tpu.memory_space<vmem>>, vector<256x32xf32>
    %39 = vector.broadcast %26 : vector<256x1xf32> to vector<256x32xf32>
    %40 = arith.mulf %39, %38 : vector<256x32xf32>
    %cst_30 = arith.constant dense<0.000000e+00> : vector<256x32xf32>
    %41 = tpu.matmul %30, %17, %cst_30 {dimension_numbers = #tpu.dot_dimension_numbers<[1], [0], [0], [1], [0, 0, 1, 1], [], []>} : vector<256x256xbf16>, vector<256x32xbf16>, vector<256x32xf32> -> vector<256x32xf32>
    %42 = arith.addf %40, %41 : vector<256x32xf32>
    %c0_31 = arith.constant 0 : index
    %c0_32 = arith.constant 0 : index
    %43 = vector.load %arg10[%c0_31, %c0_32] : memref<256x32xf32, #tpu.memory_space<vmem>>, vector<256x32xf32>
    tpu.vector_store %arg10[%c0_31, %c0_32], %42 {strides = array<i32>} : memref<256x32xf32, #tpu.memory_space<vmem>>, vector<256x32xf32>,
    %c0_33 = arith.constant 0 : index
    %c0_34 = arith.constant 0 : index
    %44 = vector.load %arg8[%c0_33, %c0_34] : memref<256x1xf32, #tpu.memory_space<vmem>>, vector<256x1xf32>
    tpu.vector_store %arg8[%c0_33, %c0_34], %24 {strides = array<i32>} : memref<256x1xf32, #tpu.memory_space<vmem>>, vector<256x1xf32>,
    %c1_i32_35 = arith.constant 1 : i32
    %c0_36 = arith.constant 0 : index
    %c0_37 = arith.constant 0 : index
    %45 = vector.load %arg9[%c0_36, %c0_37] : memref<256x1xf32, #tpu.memory_space<vmem>>, vector<256x1xf32>
    %cst_38 = arith.constant 1.000000e+00 : f32
    %46 = vector.broadcast %cst_38 : f32 to vector<256x1xf32>
    %47 = arith.divf %46, %45 : vector<256x1xf32>
    %c0_39 = arith.constant 0 : index
    %c0_40 = arith.constant 0 : index
    %48 = vector.load %arg10[%c0_39, %c0_40] : memref<256x32xf32, #tpu.memory_space<vmem>>, vector<256x32xf32>
    %49 = vector.broadcast %47 : vector<256x1xf32> to vector<256x32xf32>
    %50 = arith.mulf %48, %49 : vector<256x32xf32>
    %51 = arith.truncf %50 : vector<256x32xf32> to vector<256x32xbf16>
    %c0_41 = arith.constant 0 : index
    %c0_42 = arith.constant 0 : index
    %52 = vector.load %arg5[%c0_41, %c0_42] : memref<32x32xbf16, #tpu.memory_space<vmem>>, vector<32x32xbf16>
    %cst_43 = arith.constant dense<0.000000e+00> : vector<32x256xf32>
    %53 = tpu.matmul %52, %51, %cst_43 {dimension_numbers = #tpu.dot_dimension_numbers<[1], [1], [0], [0], [0, 0, 1, 0], [], []>} : vector<32x32xbf16>, vector<256x32xbf16>, vector<32x256xf32> -> vector<32x256xf32>
    %c0_44 = arith.constant 0 : index
    %c0_45 = arith.constant 0 : index
    %54 = vector.load %arg6[%c0_44, %c0_45] : memref<32x1xf32, #tpu.memory_space<vmem>>, vector<32x1xf32>
    %55 = vector.broadcast %54 : vector<32x1xf32> to vector<32x256xf32>
    %56 = arith.addf %53, %55 : vector<32x256xf32>
    %c0_46 = arith.constant 0 : index
    %c0_47 = arith.constant 0 : index
    %c0_48 = arith.constant 0 : index
    %57 = vector.load %arg7[%c0_46, %c0_47, %c0_48] : memref<1x32x256xf32, #tpu.memory_space<vmem>>, vector<1x32x256xf32>
    %58 = vector.shape_cast %57 : vector<1x32x256xf32> to vector<32x256xf32>
    %59 = vector.shape_cast %56 : vector<32x256xf32> to vector<1x32x256xf32>
    tpu.vector_store %arg7[%c0_46, %c0_47, %c0_48], %59 {strides = array<i32>} : memref<1x32x256xf32, #tpu.memory_space<vmem>>, vector<1x32x256xf32>,
    return
  }
  func.func @transform_0(%arg0: i32, %arg1: i32) -> (i32, i32, i32) {
    %c0_i32 = arith.constant 0 : i32
    %c0_i32_0 = arith.constant 0 : i32
    return %arg0, %arg1, %c0_i32 : i32, i32, i32
  }
  func.func @transform_1(%arg0: i32, %arg1: i32) -> (i32, i32, i32) {
    %c0_i32 = arith.constant 0 : i32
    %c0_i32_0 = arith.constant 0 : i32
    %c0_i32_1 = arith.constant 0 : i32
    return %arg0, %c0_i32, %c0_i32_0 : i32, i32, i32
  }
  func.func @transform_2(%arg0: i32, %arg1: i32) -> (i32, i32, i32) {
    %c0_i32 = arith.constant 0 : i32
    %c0_i32_0 = arith.constant 0 : i32
    %c0_i32_1 = arith.constant 0 : i32
    return %arg0, %c0_i32, %c0_i32_0 : i32, i32, i32
  }
  func.func @transform_3(%arg0: i32, %arg1: i32) -> (i32, i32) {
    %c0_i32 = arith.constant 0 : i32
    %c0_i32_0 = arith.constant 0 : i32
    %c0_i32_1 = arith.constant 0 : i32
    return %c0_i32, %c0_i32_0 : i32, i32
  }
  func.func @transform_4(%arg0: i32, %arg1: i32) -> (i32, i32) {
    %c0_i32 = arith.constant 0 : i32
    %c0_i32_0 = arith.constant 0 : i32
    %c0_i32_1 = arith.constant 0 : i32
    return %c0_i32, %c0_i32_0 : i32, i32
  }
  func.func @transform_5(%arg0: i32, %arg1: i32) -> (i32, i32, i32) {
    %c0_i32 = arith.constant 0 : i32
    %c0_i32_0 = arith.constant 0 : i32
    return %arg0, %c0_i32, %arg1 : i32, i32, i32
  }
}

</mosaic_0001>

<bundles_post_ra>
// kernel: pam_forward.1
= control target key start
LH: loop header
LB: loop body
LE: loop exit
PB: predicated region body
PF: predicated region fallthrough
CT: control target
= control target key end

     0   :  { %s3407_s18 = smov 0   ;;  %s3409_s19 = smov 0   ;;  %s4735_s0 = inlined_call_operand.vmem [shape: bf16[2,256,5], index: 0, kind: input, shape index: {}]   ;;  %s4736_s1 = inlined_call_operand.vmem [shape: bf16[2,5,256], index: 1, kind: input, shape index: {}]   ;;  %s4737_s2 = inlined_call_operand.vmem [shape: bf16[2,256,32], index: 2, kind: input, shape index: {}]   ;;  %s4738_s3 = inlined_call_operand.vmem [shape: bf16[32,32], index: 3, kind: input, shape index: {}]   ;;  %s4739_s4 = inlined_call_operand.vmem [shape: f32[32,1], index: 4, kind: input, shape index: {}]   ;;  %s4740_s5 = inlined_call_operand.vmem [shape: f32[2,32,256], index: 5, kind: output, shape index: {}]  }
   0x1   :  { %s3411_s20 = smov 0  }
   0x2 LB: > { %s27_s21 = sadd.s32 1, %s3367_s19  ;;  %p2882_p0 = scmp.ge.s32.totalorder %s3371_s20, 1  ;;  %s3371_s20 = sphi %s3411_s20, %s15_s20   ;;  %s3367_s19 = sphi %s3409_s19, %s4974_s19   ;;  %s3363_s18 = sphi %s3407_s18, %s4973_s18  }
   0x3   : > { %p29_p1 = scmp.ge.s32.totalorder %s27_s21, 2  ;;  %p228_p2 = scmp.lt.s32.totalorder %s3371_s20, 3 }
   0x5   : > { %s4976_s21 = smov (%p29_p1, %s27_s21), 0  ;;  %p229_p3 = pnand %p2882_p0, %p228_p2 }
   0x7   : > { %232 = sbr.rel (%p229_p3) target bundleno = 1305 (0x519), region = 40 }
   0xe   : > { %p275_p4 = scmp.lt.s32.totalorder %s3363_s18, 1  ;;  %vm602_vm0 = vcmask 1041408   ;;  %v3373_v0 = vmov 0   ;;  %vm603_vm1 = vcmask 1042432   ;;  %v3374_v1 = vmov 65535  }
   0xf   : > { %644 = vmatprep.mubr.bf16.mxu0 %v3373_v0  ;;  %3119 = vset.pattern.permute.xlu0 %v3373_v0  ;;  %v604_v2 = vsel %vm602_vm0, 4294967295, %v3374_v1  ;;  %vm553_vm2 = vcmask 39936   ;;  %vm305_vm3 = vcmask 7168   ;;  %v3375_v25 = vmov -inf  }
  0x10   : > { %s4978_s18 = smov (!%p275_p4, %s3363_s18), 1  ;;  %3120 = vset.pattern.permute.xlu1 %v3373_v0  ;;  %v605_v4 = vsel %vm603_vm1, %v604_v2, 0  ;;  %306 = vst.msk [vmem:[#allocation2] sm:$0xff] %vm305_vm3, %v3375_v25  ;;  %307 = vst.msk [vmem:[#allocation2 + $0x8] sm:$0xff] %vm305_vm3, %v3375_v25  ;;  %v4741_v50 = vmov 0.0   ;;  %vm370_vm4 = vcmask 261120  }
  0x11   : > { %s2947_s22 = sshll.u32 %s4978_s18, 7  ;;  %s2948_s23 = sshll.u32 %s4978_s18, 3  ;;  %308 = vst.msk [vmem:[#allocation2 + $0x10] sm:$0xff] %vm305_vm3, %v3375_v25  ;;  %309 = vst.msk [vmem:[#allocation2 + $0x18] sm:$0xff] %vm305_vm3, %v3375_v25 }
  0x12   : > { %s3435_s26 = scalar_lea.vmem %s4735_s0, %s2947_s22  ;;  %s288_s29 = scalar_lea.vmem %s4736_s1, %s2948_s23  ;;  %310 = vst.msk [vmem:[#allocation2 + $0x20] sm:$0xff] %vm305_vm3, %v3375_v25  ;;  %311 = vst.msk [vmem:[#allocation2 + $0x28] sm:$0xff] %vm305_vm3, %v3375_v25 }
  0x13   : > { %v403_v3 = vld [vmem:[%s288_s29] sm:$0x77]  ;;  %v3124_v10 = vld [vmem:[%s3435_s26 + $0x8] sm:$0xff]   ;;  %s3447_s7 = scalar_lea.vmem %s4737_s2, %s2947_s22  ;;  %v3125_v11 = vld [vmem:[%s3435_s26 + $0x10] sm:$0xff]   ;;  %312 = vst.msk [vmem:[#allocation2 + $0x30] sm:$0xff] %vm305_vm3, %v3375_v25  ;;  %s2950_s24 = sshll.u32 %s4978_s18, 6 }
  0x14   : > { %v2908_v5 = vcombine.high %v403_v3, %v403_v3  ;;  %v2907_v6 = vcombine.low %v403_v3, %v403_v3  ;;  %v3123_v9 = vld [vmem:[%s3435_s26] sm:$0xff]   ;;  %v3126_v12 = vld [vmem:[%s3435_s26 + $0x18] sm:$0xff]   ;;  %v3128_v14 = vld [vmem:[%s3435_s26 + $0x28] sm:$0xff]   ;;  %313 = vst.msk [vmem:[#allocation2 + $0x38] sm:$0xff] %vm305_vm3, %v3375_v25  ;;  %s302_s27 = scalar_lea.vmem %s4740_s5, %s2950_s24 }
  0x15   : > { %v3127_v13 = vld [vmem:[%s3435_s26 + $0x20] sm:$0xff]   ;;  %v3129_v15 = vld [vmem:[%s3435_s26 + $0x30] sm:$0xff]   ;;  %v3130_v16 = vld [vmem:[%s3435_s26 + $0x38] sm:$0xff]   ;;  %314 = vst.msk [vmem:[#allocation2 + $0x40] sm:$0xff] %vm305_vm3, %v3375_v25 }
  0x16   : > { %v610_v7 = vand.u32 %v2908_v5, %v605_v4  ;;  %v607_v8 = vand.u32 %v2907_v6, %v605_v4  ;;  %v3131_v17 = vld [vmem:[%s3435_s26 + $0x40] sm:$0xff]   ;;  %v3132_v18 = vld [vmem:[%s3435_s26 + $0x48] sm:$0xff]   ;;  %v3133_v19 = vld [vmem:[%s3435_s26 + $0x50] sm:$0xff]   ;;  %315 = vst.msk [vmem:[#allocation2 + $0x48] sm:$0xff] %vm305_vm3, %v3375_v25 }
  0x17   : > { %v3134_v20 = vld [vmem:[%s3435_s26 + $0x58] sm:$0xff]   ;;  %v3135_v21 = vld [vmem:[%s3435_s26 + $0x60] sm:$0xff]   ;;  %v3136_v22 = vld [vmem:[%s3435_s26 + $0x68] sm:$0xff]   ;;  %316 = vst.msk [vmem:[#allocation2 + $0x50] sm:$0xff] %vm305_vm3, %v3375_v25 }
  0x18   : > { %612 = vmatprep.subr.bf16.mxu0 %v610_v7  ;;  %v3137_v23 = vld [vmem:[%s3435_s26 + $0x70] sm:$0xff]   ;;  %v3138_v24 = vld [vmem:[%s3435_s26 + $0x78] sm:$0xff]   ;;  %317 = vst.msk [vmem:[#allocation2 + $0x58] sm:$0xff] %vm305_vm3, %v3375_v25  ;;  %318 = vst.msk [vmem:[#allocation2 + $0x60] sm:$0xff] %vm305_vm3, %v3375_v25 }
  0x19   : > { %613 = vmatpush1.bf16.msra.mxu0 %v607_v8  ;;  %319 = vst.msk [vmem:[#allocation2 + $0x68] sm:$0xff] %vm305_vm3, %v3375_v25  ;;  %320 = vst.msk [vmem:[#allocation2 + $0x70] sm:$0xff] %vm305_vm3, %v3375_v25 }
  0x1a   : > { %321 = vst.msk [vmem:[#allocation2 + $0x78] sm:$0xff] %vm305_vm3, %v3375_v25  ;;  %322 = vst.msk [vmem:[#allocation2 + $0x80] sm:$0xff] %vm305_vm3, %v3375_v25 }
  0x1b   : > { %323 = vst.msk [vmem:[#allocation2 + $0x88] sm:$0xff] %vm305_vm3, %v3375_v25  ;;  %324 = vst.msk [vmem:[#allocation2 + $0x90] sm:$0xff] %vm305_vm3, %v3375_v25 }
  0x1c   : > { %2909 = vmatmul.mubr.msk.bf16.vlgmr.msra.gmra.mrb[0].mxu0 %vm553_vm2, %v3123_v9  ;;  %325 = vst.msk [vmem:[#allocation2 + $0x98] sm:$0xff] %vm305_vm3, %v3375_v25  ;;  %326 = vst.msk [vmem:[#allocation2 + $0xa0] sm:$0xff] %vm305_vm3, %v3375_v25 }
  0x1d   : > { %654 = vmatprep.mubr.bf16.mxu0 %v3373_v0  ;;  %327 = vst.msk [vmem:[#allocation2 + $0xa8] sm:$0xff] %vm305_vm3, %v3375_v25  ;;  %328 = vst.msk [vmem:[#allocation2 + $0xb0] sm:$0xff] %vm305_vm3, %v3375_v25 }
  0x1e   : > { %329 = vst.msk [vmem:[#allocation2 + $0xb8] sm:$0xff] %vm305_vm3, %v3375_v25  ;;  %330 = vst.msk [vmem:[#allocation2 + $0xc0] sm:$0xff] %vm305_vm3, %v3375_v25 }
  0x1f   : > { %331 = vst.msk [vmem:[#allocation2 + $0xc8] sm:$0xff] %vm305_vm3, %v3375_v25  ;;  %332 = vst.msk [vmem:[#allocation2 + $0xd0] sm:$0xff] %vm305_vm3, %v3375_v25 }
  0x20   : > { %333 = vst.msk [vmem:[#allocation2 + $0xd8] sm:$0xff] %vm305_vm3, %v3375_v25  ;;  %334 = vst.msk [vmem:[#allocation2 + $0xe0] sm:$0xff] %vm305_vm3, %v3375_v25 }
  0x21   : > { %335 = vst.msk [vmem:[#allocation2 + $0xe8] sm:$0xff] %vm305_vm3, %v3375_v25  ;;  %336 = vst.msk [vmem:[#allocation2 + $0xf0] sm:$0xff] %vm305_vm3, %v3375_v25 }
  0x22   : > { %337 = vst.msk [vmem:[#allocation2 + $0xf8] sm:$0xff] %vm305_vm3, %v3375_v25  ;;  %338 = vst.msk [vmem:[#allocation3] sm:$0xff] %vm305_vm3, %v4741_v50 }
  0x23   : > { %339 = vst.msk [vmem:[#allocation3 + $0x8] sm:$0xff] %vm305_vm3, %v4741_v50  ;;  %340 = vst.msk [vmem:[#allocation3 + $0x10] sm:$0xff] %vm305_vm3, %v4741_v50 }
  0x24   : > { %2910 = vmatmul.mubr.msk.bf16.gmra.mrb[4].mxu0 %vm553_vm2, %v3124_v10  ;;  %341 = vst.msk [vmem:[#allocation3 + $0x18] sm:$0xff] %vm305_vm3, %v4741_v50  ;;  %342 = vst.msk [vmem:[#allocation3 + $0x20] sm:$0xff] %vm305_vm3, %v4741_v50 }
  0x25   : > { %664 = vmatprep.mubr.bf16.mxu0 %v3373_v0  ;;  %343 = vst.msk [vmem:[#allocation3 + $0x28] sm:$0xff] %vm305_vm3, %v4741_v50  ;;  %344 = vst.msk [vmem:[#allocation3 + $0x30] sm:$0xff] %vm305_vm3, %v4741_v50 }
  0x26   : > { %345 = vst.msk [vmem:[#allocation3 + $0x38] sm:$0xff] %vm305_vm3, %v4741_v50  ;;  %346 = vst.msk [vmem:[#allocation3 + $0x40] sm:$0xff] %vm305_vm3, %v4741_v50 }
  0x27   : > { %347 = vst.msk [vmem:[#allocation3 + $0x48] sm:$0xff] %vm305_vm3, %v4741_v50  ;;  %348 = vst.msk [vmem:[#allocation3 + $0x50] sm:$0xff] %vm305_vm3, %v4741_v50 }
  0x28   : > { %349 = vst.msk [vmem:[#allocation3 + $0x58] sm:$0xff] %vm305_vm3, %v4741_v50  ;;  %350 = vst.msk [vmem:[#allocation3 + $0x60] sm:$0xff] %vm305_vm3, %v4741_v50 }
  0x29   : > { %351 = vst.msk [vmem:[#allocation3 + $0x68] sm:$0xff] %vm305_vm3, %v4741_v50  ;;  %352 = vst.msk [vmem:[#allocation3 + $0x70] sm:$0xff] %vm305_vm3, %v4741_v50 }
  0x2a   : > { %353 = vst.msk [vmem:[#allocation3 + $0x78] sm:$0xff] %vm305_vm3, %v4741_v50  ;;  %354 = vst.msk [vmem:[#allocation3 + $0x80] sm:$0xff] %vm305_vm3, %v4741_v50 }
  0x2b   : > { %355 = vst.msk [vmem:[#allocation3 + $0x88] sm:$0xff] %vm305_vm3, %v4741_v50  ;;  %356 = vst.msk [vmem:[#allocation3 + $0x90] sm:$0xff] %vm305_vm3, %v4741_v50 }
  0x2c   : > { %2911 = vmatmul.mubr.msk.bf16.gmra.mrb[8].mxu0 %vm553_vm2, %v3125_v11  ;;  %357 = vst.msk [vmem:[#allocation3 + $0x98] sm:$0xff] %vm305_vm3, %v4741_v50  ;;  %358 = vst.msk [vmem:[#allocation3 + $0xa0] sm:$0xff] %vm305_vm3, %v4741_v50 }
  0x2d   : > { %674 = vmatprep.mubr.bf16.mxu0 %v3373_v0  ;;  %359 = vst.msk [vmem:[#allocation3 + $0xa8] sm:$0xff] %vm305_vm3, %v4741_v50  ;;  %360 = vst.msk [vmem:[#allocation3 + $0xb0] sm:$0xff] %vm305_vm3, %v4741_v50 }
  0x2e   : > { %361 = vst.msk [vmem:[#allocation3 + $0xb8] sm:$0xff] %vm305_vm3, %v4741_v50  ;;  %362 = vst.msk [vmem:[#allocation3 + $0xc0] sm:$0xff] %vm305_vm3, %v4741_v50 }
  0x2f   : > { %363 = vst.msk [vmem:[#allocation3 + $0xc8] sm:$0xff] %vm305_vm3, %v4741_v50  ;;  %364 = vst.msk [vmem:[#allocation3 + $0xd0] sm:$0xff] %vm305_vm3, %v4741_v50 }
  0x30   : > { %365 = vst.msk [vmem:[#allocation3 + $0xd8] sm:$0xff] %vm305_vm3, %v4741_v50  ;;  %366 = vst.msk [vmem:[#allocation3 + $0xe0] sm:$0xff] %vm305_vm3, %v4741_v50 }
  0x31   : > { %367 = vst.msk [vmem:[#allocation3 + $0xe8] sm:$0xff] %vm305_vm3, %v4741_v50  ;;  %368 = vst.msk [vmem:[#allocation3 + $0xf0] sm:$0xff] %vm305_vm3, %v4741_v50 }
  0x32   : > { %369 = vst.msk [vmem:[#allocation3 + $0xf8] sm:$0xff] %vm305_vm3, %v4741_v50 }
  0x34   : > { %2912 = vmatmul.mubr.msk.bf16.gmra.mrb[12].mxu0 %vm553_vm2, %v3126_v12 }
  0x35   : > { %684 = vmatprep.mubr.bf16.mxu0 %v3373_v0 }
  0x3c   : > { %2913 = vmatmul.mubr.msk.bf16.gmra.mrb[16].mxu0 %vm553_vm2, %v3127_v13 }
  0x3d   : > { %694 = vmatprep.mubr.bf16.mxu0 %v3373_v0 }
  0x44   : > { %2914 = vmatmul.mubr.msk.bf16.gmra.mrb[20].mxu0 %vm553_vm2, %v3128_v14 }
  0x45   : > { %704 = vmatprep.mubr.bf16.mxu0 %v3373_v0 }
  0x4c   : > { %2915 = vmatmul.mubr.msk.bf16.gmra.mrb[24].mxu0 %vm553_vm2, %v3129_v15 }
  0x4d   : > { %714 = vmatprep.mubr.bf16.mxu0 %v3373_v0 }
  0x54   : > { %2916 = vmatmul.mubr.msk.bf16.gmra.mrb[28].mxu0 %vm553_vm2, %v3130_v16 }
  0x55   : > { %724 = vmatprep.mubr.bf16.mxu0 %v3373_v0 }
  0x5c   : > { %2917 = vmatmul.mubr.msk.bf16.gmra.mrb[32].mxu0 %vm553_vm2, %v3131_v17 }
  0x5d   : > { %734 = vmatprep.mubr.bf16.mxu0 %v3373_v0 }
  0x64   : > { %2918 = vmatmul.mubr.msk.bf16.gmra.mrb[36].mxu0 %vm553_vm2, %v3132_v18 }
  0x65   : > { %744 = vmatprep.mubr.bf16.mxu0 %v3373_v0 }
  0x6c   : > { %2919 = vmatmul.mubr.msk.bf16.gmra.mrb[40].mxu0 %vm553_vm2, %v3133_v19 }
  0x6d   : > { %754 = vmatprep.mubr.bf16.mxu0 %v3373_v0 }
  0x74   : > { %2920 = vmatmul.mubr.msk.bf16.gmra.mrb[44].mxu0 %vm553_vm2, %v3134_v20 }
  0x75   : > { %764 = vmatprep.mubr.bf16.mxu0 %v3373_v0 }
  0x7c   : > { %2921 = vmatmul.mubr.msk.bf16.gmra.mrb[48].mxu0 %vm553_vm2, %v3135_v21 }
  0x7d   : > { %774 = vmatprep.mubr.bf16.mxu0 %v3373_v0 }
  0x84   : > { %2922 = vmatmul.mubr.msk.bf16.gmra.mrb[52].mxu0 %vm553_vm2, %v3136_v22 }
  0x85   : > { %784 = vmatprep.mubr.bf16.mxu0 %v3373_v0 }
  0x8c   : > { %2923 = vmatmul.mubr.msk.bf16.gmra.mrb[56].mxu0 %vm553_vm2, %v3137_v23 }
  0x8d   : > { %794 = vmatprep.mubr.bf16.mxu0 %v3373_v0 }
  0x94   : > { %2924 = vmatmul.mubr.msk.bf16.gmra.mrb[60].mxu0 %vm553_vm2, %v3138_v24 }
  0xef   : > { %v3524_v26 = vpop.f32.mrb[0].mxu0 }
  0xf0   : > { %v3526_v27 = vpop.f32.mrb[1].mxu0 }
  0xf1   : > { %v3528_v28 = vpop.f32.mrb[2].mxu0  ;;  %v837_v29 = vmax.f32 %v3524_v26, %v3526_v27 }
  0xf2   : > { %v3532_v30 = vpop.f32.mrb[3].mxu0 }
  0xf3   : > { %838 = vmax.xlane.f32.xlu0 %v837_v29  ;;  %v840_v31 = vmax.f32 %v3528_v28, %v3532_v30 }
  0xf7   : > { %841 = vmax.xlane.f32.xlu0 %v840_v31  ;;  %v3536_v32 = vpop.f32.mrb[4].mxu0 }
  0xf8   : > { %v3538_v33 = vpop.f32.mrb[5].mxu0 }
  0xf9   : > { %v3540_v34 = vpop.f32.mrb[6].mxu0  ;;  %v843_v35 = vmax.f32 %v3536_v32, %v3538_v33 }
  0xfa   : > { %v3544_v36 = vpop.f32.mrb[7].mxu0 }
  0xfb   : > { %844 = vmax.xlane.f32.xlu1 %v843_v35  ;;  %v846_v37 = vmax.f32 %v3540_v34, %v3544_v36 }
  0xff   : > { %847 = vmax.xlane.f32.xlu1 %v846_v37  ;;  %v3548_v38 = vpop.f32.mrb[8].mxu0 }
 0x100   : > { %v3550_v39 = vpop.f32.mrb[9].mxu0 }
 0x101   : > { %v3552_v40 = vpop.f32.mrb[10].mxu0  ;;  %v849_v41 = vmax.f32 %v3548_v38, %v3550_v39 }
 0x102   : > { %v3556_v42 = vpop.f32.mrb[11].mxu0 }
 0x103   : > { %850 = vmax.xlane.f32.xlu0 %v849_v41  ;;  %v852_v43 = vmax.f32 %v3552_v40, %v3556_v42 }
 0x105   : > { %853 = vmax.xlane.f32.xlu1 %v852_v43 }
 0x107   : > { %v3560_v44 = vpop.f32.mrb[12].mxu0 }
 0x108   : > { %v3562_v45 = vpop.f32.mrb[13].mxu0 }
 0x109   : > { %v3564_v46 = vpop.f32.mrb[14].mxu0  ;;  %v855_v47 = vmax.f32 %v3560_v44, %v3562_v45 }
 0x10a   : > { %v3568_v48 = vpop.f32.mrb[15].mxu0 }
 0x10b   : > { %856 = vmax.xlane.f32.xlu0 %v855_v47  ;;  %v858_v49 = vmax.f32 %v3564_v46, %v3568_v48 }
 0x10d   : > { %859 = vmax.xlane.f32.xlu1 %v858_v49 }
 0x10f   : > { %v3636_v51 = vpop.f32.mrb[16].mxu0 }
 0x110   : > { %4808 = vst [vmem:[#allocation5_spill] sm:$0xff] %v3636_v51  ;;  %v3638_v52 = vpop.f32.mrb[17].mxu0 }
 0x111   : > { %4809 = vst [vmem:[#allocation6_spill] sm:$0xff] %v3638_v52  ;;  %v3640_v53 = vpop.f32.mrb[18].mxu0  ;;  %v861_v54 = vmax.f32 %v3636_v51, %v3638_v52  ;;  %v4099_v51 = vld [vmem:[#allocation2 + $0xc8] sm:$0xff] }
 0x112   : > { %4810 = vst [vmem:[#allocation7_spill] sm:$0xff] %v3640_v53  ;;  %v3644_v55 = vpop.f32.mrb[19].mxu0 }
 0x113   : > { %4811 = vst [vmem:[#allocation8_spill] sm:$0xff] %v3644_v55  ;;  %862 = vmax.xlane.f32.xlu0 %v861_v54  ;;  %v864_v56 = vmax.f32 %v3640_v53, %v3644_v55  ;;  %v4070_v53 = vld [vmem:[#allocation2 + $0xb0] sm:$0xff] }
 0x115   : > { %865 = vmax.xlane.f32.xlu1 %v864_v56 }
 0x117   : > { %v3648_v57 = vpop.f32.mrb[20].mxu0 }
 0x118   : > { %v3650_v58 = vpop.f32.mrb[21].mxu0 }
 0x119   : > { %v3652_v59 = vpop.f32.mrb[22].mxu0  ;;  %v867_v60 = vmax.f32 %v3648_v57, %v3650_v58 }
 0x11a   : > { %v3656_v61 = vpop.f32.mrb[23].mxu0 }
 0x11b   : > { %868 = vmax.xlane.f32.xlu0 %v867_v60  ;;  %v870_v62 = vmax.f32 %v3652_v59, %v3656_v61 }
 0x11d   : > { %871 = vmax.xlane.f32.xlu1 %v870_v62 }
 0x11f   : > { %v3660_v63 = vpop.f32.mrb[24].mxu0 }
 0x120   : > { %4812 = vst [vmem:[#allocation9_spill] sm:$0xff] %v3660_v63  ;;  %v3662_v0 = vpop.f32.mrb[25].mxu0 }
 0x121   : > { %4813 = vst [vmem:[#allocation10_spill] sm:$0xff] %v3662_v0  ;;  %v3664_v1 = vpop.f32.mrb[26].mxu0  ;;  %v873_v2 = vmax.f32 %v3660_v63, %v3662_v0  ;;  %v3967_v63 = vld [vmem:[#allocation2 + $0x90] sm:$0xff] }
 0x122   : > { %4814 = vst [vmem:[#allocation11_spill] sm:$0xff] %v3664_v1  ;;  %v3668_v3 = vpop.f32.mrb[27].mxu0 }
 0x123   : > { %4815 = vst [vmem:[#allocation12_spill] sm:$0xff] %v3668_v3  ;;  %874 = vmax.xlane.f32.xlu0 %v873_v2  ;;  %v876_v4 = vmax.f32 %v3664_v1, %v3668_v3  ;;  %v3931_v3 = vld [vmem:[#allocation2 + $0x70] sm:$0xff] }
 0x124   : > { %4858 = vst [vmem:[#allocation54_spill] sm:$0xff] %v3931_v3 }
 0x125   : > { %877 = vmax.xlane.f32.xlu1 %v876_v4 }
 0x127   : > { %v3672_v5 = vpop.f32.mrb[28].mxu0 }
 0x128   : > { %4816 = vst [vmem:[#allocation13_spill] sm:$0xff] %v3672_v5  ;;  %v3674_v6 = vpop.f32.mrb[29].mxu0 }
 0x129   : > { %4817 = vst [vmem:[#allocation14_spill] sm:$0xff] %v3674_v6  ;;  %v3676_v7 = vpop.f32.mrb[30].mxu0  ;;  %v879_v8 = vmax.f32 %v3672_v5, %v3674_v6  ;;  %v3933_v6 = vld [vmem:[#allocation2 + $0x78] sm:$0xff] }
 0x12a   : > { %4818 = vst [vmem:[#allocation15_spill] sm:$0xff] %v3676_v7  ;;  %v3680_v9 = vpop.f32.mrb[31].mxu0  ;;  %4859 = vst [vmem:[#allocation55_spill] sm:$0xff] %v3933_v6 }
 0x12b   : > { %4819 = vst [vmem:[#allocation16_spill] sm:$0xff] %v3680_v9  ;;  %880 = vmax.xlane.f32.xlu0 %v879_v8  ;;  %v882_v10 = vmax.f32 %v3676_v7, %v3680_v9 }
 0x12d   : > { %883 = vmax.xlane.f32.xlu1 %v882_v10 }
 0x12f   : > { %v3684_v11 = vpop.f32.mrb[32].mxu0 }
 0x130   : > { %4820 = vst [vmem:[#allocation17_spill] sm:$0xff] %v3684_v11  ;;  %v3686_v12 = vpop.f32.mrb[33].mxu0 }
 0x131   : > { %4821 = vst [vmem:[#allocation18_spill] sm:$0xff] %v3686_v12  ;;  %v3688_v13 = vpop.f32.mrb[34].mxu0  ;;  %v885_v14 = vmax.f32 %v3684_v11, %v3686_v12  ;;  %v3912_v11 = vld [vmem:[#allocation2 + $0x68] sm:$0xff] }
 0x132   : > { %4822 = vst [vmem:[#allocation19_spill] sm:$0xff] %v3688_v13  ;;  %v3692_v15 = vpop.f32.mrb[35].mxu0  ;;  %4855 = vst [vmem:[#allocation52_spill] sm:$0xff] %v3912_v11 }
 0x133   : > { %4823 = vst [vmem:[#allocation20_spill] sm:$0xff] %v3692_v15  ;;  %886 = vmax.xlane.f32.xlu0 %v885_v14  ;;  %v888_v16 = vmax.f32 %v3688_v13, %v3692_v15  ;;  %v3890_v15 = vld [vmem:[#allocation2 + $0x50] sm:$0xff]  ;;  %v3892_v13 = vld [vmem:[#allocation2 + $0x58] sm:$0xff] }
 0x134   : > { %4852 = vst [vmem:[#allocation49_spill] sm:$0xff] %v3890_v15 }
 0x135   : > { %889 = vmax.xlane.f32.xlu1 %v888_v16 }
 0x137   : > { %v3696_v17 = vpop.f32.mrb[36].mxu0 }
 0x138   : > { %4824 = vst [vmem:[#allocation21_spill] sm:$0xff] %v3696_v17  ;;  %v3698_v18 = vpop.f32.mrb[37].mxu0 }
 0x139   : > { %4825 = vst [vmem:[#allocation22_spill] sm:$0xff] %v3698_v18  ;;  %v3700_v19 = vpop.f32.mrb[38].mxu0  ;;  %v891_v20 = vmax.f32 %v3696_v17, %v3698_v18 }
 0x13a   : > { %4826 = vst [vmem:[#allocation23_spill] sm:$0xff] %v3700_v19  ;;  %v3704_v21 = vpop.f32.mrb[39].mxu0 }
 0x13b   : > { %4827 = vst [vmem:[#allocation24_spill] sm:$0xff] %v3704_v21  ;;  %892 = vmax.xlane.f32.xlu0 %v891_v20  ;;  %v894_v22 = vmax.f32 %v3700_v19, %v3704_v21 }
 0x13d   : > { %895 = vmax.xlane.f32.xlu1 %v894_v22 }
 0x13f   : > { %v3708_v23 = vpop.f32.mrb[40].mxu0 }
 0x140   : > { %4828 = vst [vmem:[#allocation25_spill] sm:$0xff] %v3708_v23  ;;  %v3710_v24 = vpop.f32.mrb[41].mxu0 }
 0x141   : > { %4829 = vst [vmem:[#allocation26_spill] sm:$0xff] %v3710_v24  ;;  %v3712_v25 = vpop.f32.mrb[42].mxu0  ;;  %v897_v29 = vmax.f32 %v3708_v23, %v3710_v24  ;;  %v3152_v23 = vld [vmem:[%s3447_s7 + $0x30] sm:$0xff]  }
 0x142   : > { %4830 = vst [vmem:[#allocation27_spill] sm:$0xff] %v3712_v25  ;;  %v3716_v31 = vpop.f32.mrb[43].mxu0 }
 0x143   : > { %4831 = vst [vmem:[#allocation28_spill] sm:$0xff] %v3716_v31  ;;  %v900_v35 = vmax.f32 %v3712_v25, %v3716_v31  ;;  %898 = vmax.xlane.f32.xlu1 %v897_v29  ;;  %v3850_v31 = vld [vmem:[#allocation2 + $0x30] sm:$0xff] }
 0x145   : > { %901 = vmax.xlane.f32.xlu0 %v900_v35 }
 0x147   : > { %v3720_v37 = vpop.f32.mrb[44].mxu0 }
 0x148   : > { %4832 = vst [vmem:[#allocation29_spill] sm:$0xff] %v3720_v37  ;;  %v3722_v41 = vpop.f32.mrb[45].mxu0 }
 0x149   : > { %4833 = vst [vmem:[#allocation30_spill] sm:$0xff] %v3722_v41  ;;  %v3724_v43 = vpop.f32.mrb[46].mxu0  ;;  %v903_v47 = vmax.f32 %v3720_v37, %v3722_v41  ;;  %v3150_v37 = vld [vmem:[%s3447_s7 + $0x28] sm:$0xff]  }
 0x14a   : > { %4834 = vst [vmem:[#allocation31_spill] sm:$0xff] %v3724_v43  ;;  %v3728_v49 = vpop.f32.mrb[47].mxu0 }
 0x14b   : > { %4835 = vst [vmem:[#allocation32_spill] sm:$0xff] %v3728_v49  ;;  %v906_v54 = vmax.f32 %v3724_v43, %v3728_v49  ;;  %904 = vmax.xlane.f32.xlu1 %v903_v47  ;;  %v3830_v43 = vld [vmem:[#allocation2 + $0x28] sm:$0xff]  ;;  %v3154_v49 = vld [vmem:[%s3447_s7 + $0x38] sm:$0xff]  }
 0x14d   : > { %907 = vmax.xlane.f32.xlu0 %v906_v54 }
 0x14f   : > { %v3732_v56 = vpop.f32.mrb[48].mxu0 }
 0x150   : > { %4836 = vst [vmem:[#allocation33_spill] sm:$0xff] %v3732_v56  ;;  %v3734_v60 = vpop.f32.mrb[49].mxu0 }
 0x151   : > { %4837 = vst [vmem:[#allocation34_spill] sm:$0xff] %v3734_v60  ;;  %v3736_v62 = vpop.f32.mrb[50].mxu0  ;;  %v909_v2 = vmax.f32 %v3732_v56, %v3734_v60  ;;  %v3143_v60 = vld [vmem:[%s3447_s7 + $0x50] sm:$0xff]  }
 0x152   : > { %4838 = vst [vmem:[#allocation35_spill] sm:$0xff] %v3736_v62  ;;  %v3740_v4 = vpop.f32.mrb[51].mxu0  ;;  %v3144_v56 = vld [vmem:[%s3447_s7 + $0x10] sm:$0xff]  }
 0x153   : > { %4839 = vst [vmem:[#allocation36_spill] sm:$0xff] %v3740_v4  ;;  %910 = vmax.xlane.f32.xlu0 %v909_v2  ;;  %v912_v8 = vmax.f32 %v3736_v62, %v3740_v4  ;;  %v3791_v4 = vld [vmem:[#allocation2 + $0x8] sm:$0xff]  ;;  %v3812_v62 = vld [vmem:[#allocation2 + $0x18] sm:$0xff] }
 0x155   : > { %913 = vmax.xlane.f32.xlu1 %v912_v8 }
 0x157   : > { %v3744_v10 = vpop.f32.mrb[52].mxu0 }
 0x158   : > { %4840 = vst [vmem:[#allocation37_spill] sm:$0xff] %v3744_v10  ;;  %v3746_v14 = vpop.f32.mrb[53].mxu0 }
 0x159   : > { %4841 = vst [vmem:[#allocation38_spill] sm:$0xff] %v3746_v14  ;;  %v3748_v16 = vpop.f32.mrb[54].mxu0  ;;  %v915_v20 = vmax.f32 %v3744_v10, %v3746_v14  ;;  %v3139_v10 = vld [vmem:[%s3447_s7 + $0x40] sm:$0xff]  }
 0x15a   : > { %4842 = vst [vmem:[#allocation39_spill] sm:$0xff] %v3748_v16  ;;  %v3752_v22 = vpop.f32.mrb[55].mxu0  ;;  %2951 = vmatprep.subr.bf16.mxu1 %v3139_v10 }
 0x15b   : > { %4843 = vst [vmem:[#allocation40_spill] sm:$0xff] %v3752_v22  ;;  %v918_v29 = vmax.f32 %v3748_v16, %v3752_v22  ;;  %916 = vmax.xlane.f32.xlu1 %v915_v20  ;;  %v3140_v22 = vld [vmem:[%s3447_s7] sm:$0xff]  }
 0x15c   : > { %2952 = vmatpush3.bf16.msra.mxu1 %v3140_v22 }
 0x15d   : > { %919 = vmax.xlane.f32.xlu0 %v918_v29 }
 0x15f   : > { %v3756_v35 = vpop.f32.mrb[56].mxu0 }
 0x160   : > { %4844 = vst [vmem:[#allocation41_spill] sm:$0xff] %v3756_v35  ;;  %v3758_v47 = vpop.f32.mrb[57].mxu0 }
 0x161   : > { %4845 = vst [vmem:[#allocation42_spill] sm:$0xff] %v3758_v47  ;;  %v921_v54 = vmax.f32 %v3756_v35, %v3758_v47  ;;  %v3762_v2 = vpop.f32.mrb[58].mxu0 }
 0x162   : > { %4846 = vst [vmem:[#allocation43_spill] sm:$0xff] %v3762_v2  ;;  %v3764_v8 = vpop.f32.mrb[59].mxu0 }
 0x163   : > { %4847 = vst [vmem:[#allocation44_spill] sm:$0xff] %v3764_v8  ;;  %922 = vmax.xlane.f32.xlu0 %v921_v54  ;;  %v924_v20 = vmax.f32 %v3762_v2, %v3764_v8  ;;  %v3142_v8 = vld [vmem:[%s3447_s7 + $0x8] sm:$0xff]   ;;  %v3784_v2 = vld [vmem:[#allocation2] sm:$0xff] }
 0x164   : > { %v3147_v54 = vld [vmem:[%s3447_s7 + $0x60] sm:$0xff]  }
 0x165   : > { %925 = vmax.xlane.f32.xlu1 %v924_v20  ;;  %v3141_v20 = vld [vmem:[%s3447_s7 + $0x48] sm:$0xff]  }
 0x166   : > { %2953 = vmatprep.subr.bf16.mxu1 %v3141_v20  ;;  %v3802_v20 = vld [vmem:[#allocation2 + $0x10] sm:$0xff] }
 0x167   : > { %v3768_v29 = vpop.f32.mrb[60].mxu0  ;;  %2954 = vmatpush3.bf16.msra.mxu1 %v3142_v8  ;;  %v3145_v8 = vld [vmem:[%s3447_s7 + $0x58] sm:$0xff]  }
 0x168   : > { %4848 = vst [vmem:[#allocation45_spill] sm:$0xff] %v3768_v29  ;;  %v3770_v50 = vpop.f32.mrb[61].mxu0  ;;  %2955 = vmatprep.subr.bf16.mxu1 %v3143_v60  ;;  %v3146_v60 = vld [vmem:[%s3447_s7 + $0x18] sm:$0xff]  }
 0x169   : > { %4849 = vst [vmem:[#allocation46_spill] sm:$0xff] %v3770_v50  ;;  %v3772_v14 = vpop.f32.mrb[62].mxu0 }
 0x16a   : > { %4850 = vst [vmem:[#allocation47_spill] sm:$0xff] %v3772_v14  ;;  %v3776_v35 = vpop.f32.mrb[63].mxu0 }
 0x16b   : > { %4851 = vst [vmem:[#allocation48_spill] sm:$0xff] %v3776_v35  ;;  %2956 = vmatpush3.bf16.msra.mxu1 %v3144_v56 }
 0x16c   : > { %2957 = vmatprep.subr.bf16.mxu1 %v3145_v8 }
 0x16f   : > { %2958 = vmatpush3.bf16.msra.mxu1 %v3146_v60  ;;  %v3149_v60 = vld [vmem:[%s3447_s7 + $0x68] sm:$0xff]  }
 0x170   : > { %2959 = vmatprep.subr.bf16.mxu1 %v3147_v54 }
 0x180   : > { %v839_v16 = vpop.xlane.xlu0 %838 }
 0x181   : > { %v3788_v47 = vmax.f32 %v3784_v2, %v839_v16 }
 0x183   : > { %2246 = vst.msk [vmem:[#allocation2] sm:$0xff] %vm305_vm3, %v3788_v47  ;;  %1063 = vperm.xlu0 %3119, %v3788_v47  }
 0x184   : > { %v842_v22 = vpop.xlane.xlu0 %841 }
 0x185   : > { %v3800_v16 = vmax.f32 %v3791_v4, %v842_v22  ;;  %v3148_v22 = vld [vmem:[%s3447_s7 + $0x20] sm:$0xff]  }
 0x186   : > { %2960 = vmatpush3.bf16.msra.mxu1 %v3148_v22 }
 0x187   : > { %2247 = vst.msk [vmem:[#allocation2 + $0x8] sm:$0xff] %vm305_vm3, %v3800_v16  ;;  %1068 = vperm.xlu1 %3120, %v3800_v16   ;;  %2961 = vmatprep.subr.bf16.mxu1 %v3149_v60  ;;  %v966_v0 = vsub.f32 %v3791_v4, %v3800_v16  ;;  %v3969_v16 = vld [vmem:[#allocation2 + $0x98] sm:$0xff] }
 0x188   : > { %v845_v10 = vpop.xlane.xlu1 %844 }
 0x189   : > { %v3809_v56 = vmax.f32 %v3802_v20, %v845_v10  ;;  %v3822_v10 = vld [vmem:[#allocation2 + $0x20] sm:$0xff] }
 0x18a   : > { %2962 = vmatpush3.bf16.msra.mxu1 %v3150_v37  ;;  %v3874_v37 = vld [vmem:[#allocation2 + $0x48] sm:$0xff] }
 0x18b   : > { %2248 = vst.msk [vmem:[#allocation2 + $0x10] sm:$0xff] %vm305_vm3, %v3809_v56  ;;  %1073 = vperm.xlu1 %3120, %v3809_v56  }
 0x18c   : > { %v848_v8 = vpop.xlane.xlu1 %847 }
 0x18d   : > { %v3819_v41 = vmax.f32 %v3812_v62, %v848_v8  ;;  %v3151_v8 = vld [vmem:[%s3447_s7 + $0x70] sm:$0xff]  }
 0x18e   : > { %2963 = vmatprep.subr.bf16.mxu1 %v3151_v8 }
 0x18f   : > { %2249 = vst.msk [vmem:[#allocation2 + $0x18] sm:$0xff] %vm305_vm3, %v3819_v41  ;;  %1078 = vperm.xlu1 %3120, %v3819_v41   ;;  %2964 = vmatpush3.bf16.msra.mxu1 %v3152_v23 }
 0x190   : > { %v851_v54 = vpop.xlane.xlu0 %850 }
 0x191   : > { %v3833_v22 = vmax.f32 %v3822_v10, %v851_v54  ;;  %v3153_v54 = vld [vmem:[%s3447_s7 + $0x78] sm:$0xff]  }
 0x192   : > { %v854_v24 = vpop.xlane.xlu1 %853  ;;  %2965 = vmatprep.subr.bf16.mxu1 %v3153_v54 }
 0x193   : > { %2250 = vst.msk [vmem:[#allocation2 + $0x20] sm:$0xff] %vm305_vm3, %v3833_v22  ;;  %v3842_v60 = vmax.f32 %v3830_v43, %v854_v24  ;;  %1083 = vperm.xlu0 %3119, %v3833_v22   ;;  %v3854_v24 = vld [vmem:[#allocation2 + $0x38] sm:$0xff]  ;;  %2966 = vmatpush3.bf16.msra.mxu1 %v3154_v49 }
 0x195   : > { %2251 = vst.msk [vmem:[#allocation2 + $0x28] sm:$0xff] %vm305_vm3, %v3842_v60 }
 0x197   : > { %1088 = vperm.xlu0 %3119, %v3842_v60  }
 0x198   : > { %v857_v25 = vpop.xlane.xlu0 %856 }
 0x199   : > { %v3857_v8 = vmax.f32 %v3850_v31, %v857_v25  ;;  %v3871_v25 = vld [vmem:[#allocation2 + $0x40] sm:$0xff] }
 0x19a   : > { %v860_v23 = vpop.xlane.xlu1 %859 }
 0x19b   : > { %2252 = vst.msk [vmem:[#allocation2 + $0x30] sm:$0xff] %vm305_vm3, %v3857_v8  ;;  %v3864_v21 = vmax.f32 %v3854_v24, %v860_v23  ;;  %1093 = vperm.xlu1 %3120, %v3857_v8  }
 0x19d   : > { %2253 = vst.msk [vmem:[#allocation2 + $0x38] sm:$0xff] %vm305_vm3, %v3864_v21 }
 0x19f   : > { %1098 = vperm.xlu1 %3120, %v3864_v21  }
 0x1a0   : > { %v863_v49 = vpop.xlane.xlu0 %862 }
 0x1a1   : > { %v3877_v19 = vmax.f32 %v3871_v25, %v863_v49 }
 0x1a2   : > { %v866_v23 = vpop.xlane.xlu1 %865 }
 0x1a3   : > { %2254 = vst.msk [vmem:[#allocation2 + $0x40] sm:$0xff] %vm305_vm3, %v3877_v19  ;;  %v3884_v54 = vmax.f32 %v3874_v37, %v866_v23 }
 0x1a5   : > { %2255 = vst.msk [vmem:[#allocation2 + $0x48] sm:$0xff] %vm305_vm3, %v3884_v54 }
 0x1a8   : > { %v869_v49 = vpop.xlane.xlu0 %868 }
 0x1a9   : > { %v3895_v12 = vmax.f32 %v3890_v15, %v869_v49  ;;  %v3909_v49 = vld [vmem:[#allocation2 + $0x60] sm:$0xff] }
 0x1aa   : > { %v872_v18 = vpop.xlane.xlu1 %871  ;;  %4854 = vst [vmem:[#allocation51_spill] sm:$0xff] %v3909_v49 }
 0x1ab   : > { %4853 = vst [vmem:[#allocation50_spill] sm:$0xff] %v3895_v12  ;;  %2256 = vst.msk [vmem:[#allocation2 + $0x50] sm:$0xff] %vm305_vm3, %v3895_v12  ;;  %v3902_v23 = vmax.f32 %v3892_v13, %v872_v18  ;;  %1113 = vperm.xlu1 %3120, %v3895_v12  }
 0x1ad   : > { %2257 = vst.msk [vmem:[#allocation2 + $0x58] sm:$0xff] %vm305_vm3, %v3902_v23 }
 0x1af   : > { %1118 = vperm.xlu1 %3120, %v3902_v23  }
 0x1b0   : > { %v875_v9 = vpop.xlane.xlu0 %874 }
 0x1b1   : > { %v3915_v7 = vmax.f32 %v3909_v49, %v875_v9  ;;  %v4857_v9 = vmax.f32 %v3772_v14, %v3776_v35  ;;  %v3951_v35 = vld [vmem:[#allocation2 + $0x88] sm:$0xff] }
 0x1b2   : > { %v878_v18 = vpop.xlane.xlu1 %877 }
 0x1b3   : > { %2258 = vst.msk [vmem:[#allocation2 + $0x60] sm:$0xff] %vm305_vm3, %v3915_v7  ;;  %v3922_v17 = vmax.f32 %v3912_v11, %v878_v18  ;;  %v3949_v11 = vld [vmem:[#allocation2 + $0x80] sm:$0xff] }
 0x1b5   : > { %4856 = vst [vmem:[#allocation53_spill] sm:$0xff] %v3922_v17  ;;  %2259 = vst.msk [vmem:[#allocation2 + $0x68] sm:$0xff] %vm305_vm3, %v3922_v17 }
 0x1b6   : > { %931 = vmax.xlane.f32.xlu0 %v4857_v9  ;;  %v999_v9 = vmul.f32 1.442695, %v966_v0 }
 0x1b8   : > { %v881_v1 = vpop.xlane.xlu0 %880  ;;  %3157 = vpow2.f32 %v999_v9 }
 0x1b9   : > { %v3936_v49 = vmax.f32 %v3931_v3, %v881_v1 }
 0x1ba   : > { %v884_v18 = vpop.xlane.xlu1 %883 }
 0x1bb   : > { %4860 = vst [vmem:[#allocation56_spill] sm:$0xff] %v3936_v49  ;;  %2260 = vst.msk [vmem:[#allocation2 + $0x70] sm:$0xff] %vm305_vm3, %v3936_v49  ;;  %v3943_v5 = vmax.f32 %v3933_v6, %v884_v18  ;;  %v967_v6 = vsub.f32 %v3802_v20, %v3809_v56 }
 0x1bd   : > { %4861 = vst [vmem:[#allocation57_spill] sm:$0xff] %v3943_v5  ;;  %2261 = vst.msk [vmem:[#allocation2 + $0x78] sm:$0xff] %vm305_vm3, %v3943_v5 }
 0x1c0   : > { %v887_v1 = vpop.xlane.xlu0 %886 }
 0x1c1   : > { %v3956_v3 = vmax.f32 %v3949_v11, %v887_v1  ;;  %v1001_v1 = vmul.f32 1.442695, %v967_v6  ;;  %v4046_v6 = vld [vmem:[#allocation2 + $0xa0] sm:$0xff] }
 0x1c2   : > { %v890_v14 = vpop.xlane.xlu1 %889 }
 0x1c3   : > { %2262 = vst.msk [vmem:[#allocation2 + $0x80] sm:$0xff] %vm305_vm3, %v3956_v3  ;;  %v3961_v18 = vmax.f32 %v3951_v35, %v890_v14  ;;  %3159 = vpow2.f32 %v1001_v1  ;;  %v4862_v14 = vmov 0.0   ;;  %v4864_v1 = vmax.f32 %v3768_v29, %v3770_v50 }
 0x1c4   : > { %372 = vst.msk [vmem:[#allocation4 + $0x8] sm:$0xff] %vm370_vm4, %v4862_v14  ;;  %371 = vst.msk [vmem:[#allocation4] sm:$0xff] %vm370_vm4, %v4862_v14 }
 0x1c5   : > { %2263 = vst.msk [vmem:[#allocation2 + $0x88] sm:$0xff] %vm305_vm3, %v3961_v18 }
 0x1c6   : > { %373 = vst.msk [vmem:[#allocation4 + $0x10] sm:$0xff] %vm370_vm4, %v4862_v14  ;;  %374 = vst.msk [vmem:[#allocation4 + $0x18] sm:$0xff] %vm370_vm4, %v4862_v14 }
 0x1c7   : > { %375 = vst.msk [vmem:[#allocation4 + $0x20] sm:$0xff] %vm370_vm4, %v4862_v14  ;;  %376 = vst.msk [vmem:[#allocation4 + $0x28] sm:$0xff] %vm370_vm4, %v4862_v14 }
 0x1c8   : > { %v893_v4 = vpop.xlane.xlu0 %892  ;;  %377 = vst.msk [vmem:[#allocation4 + $0x30] sm:$0xff] %vm370_vm4, %v4862_v14  ;;  %378 = vst.msk [vmem:[#allocation4 + $0x38] sm:$0xff] %vm370_vm4, %v4862_v14 }
 0x1c9   : > { %v3972_v12 = vmax.f32 %v3967_v63, %v893_v4  ;;  %379 = vst.msk [vmem:[#allocation4 + $0x40] sm:$0xff] %vm370_vm4, %v4862_v14  ;;  %380 = vst.msk [vmem:[#allocation4 + $0x48] sm:$0xff] %vm370_vm4, %v4862_v14  ;;  %v4054_v4 = vpop.eup %3157 }
 0x1ca   : > { %v896_v15 = vpop.xlane.xlu1 %895  ;;  %381 = vst.msk [vmem:[#allocation4 + $0x50] sm:$0xff] %vm370_vm4, %v4862_v14  ;;  %382 = vst.msk [vmem:[#allocation4 + $0x58] sm:$0xff] %vm370_vm4, %v4862_v14 }
 0x1cb   : > { %2264 = vst.msk [vmem:[#allocation2 + $0x90] sm:$0xff] %vm305_vm3, %v3972_v12  ;;  %v3977_v0 = vmax.f32 %v3969_v16, %v896_v15  ;;  %v4049_v15 = vld [vmem:[#allocation2 + $0xa8] sm:$0xff]  ;;  %4863 = vst [vmem:[#allocation58_spill] sm:$0xff] %v4054_v4 }
 0x1cc   : > { %1103 = vperm.xlu0 %3119, %v3877_v19   ;;  %383 = vst.msk [vmem:[#allocation4 + $0x60] sm:$0xff] %vm370_vm4, %v4862_v14  ;;  %384 = vst.msk [vmem:[#allocation4 + $0x68] sm:$0xff] %vm370_vm4, %v4862_v14 }
 0x1cd   : > { %2265 = vst.msk [vmem:[#allocation2 + $0x98] sm:$0xff] %vm305_vm3, %v3977_v0  ;;  %v4072_v52 = vpop.eup %3159 }
 0x1ce   : > { %385 = vst.msk [vmem:[#allocation4 + $0x70] sm:$0xff] %vm370_vm4, %v4862_v14  ;;  %386 = vst.msk [vmem:[#allocation4 + $0x78] sm:$0xff] %vm370_vm4, %v4862_v14 }
 0x1cf   : > { %387 = vst.msk [vmem:[#allocation4 + $0x80] sm:$0xff] %vm370_vm4, %v4862_v14  ;;  %388 = vst.msk [vmem:[#allocation4 + $0x88] sm:$0xff] %vm370_vm4, %v4862_v14 }
 0x1d0   : > { %389 = vst.msk [vmem:[#allocation4 + $0x90] sm:$0xff] %vm370_vm4, %v4862_v14  ;;  %390 = vst.msk [vmem:[#allocation4 + $0x98] sm:$0xff] %vm370_vm4, %v4862_v14  ;;  %1108 = vperm.xlu0 %3119, %v3884_v54   ;;  %v899_v20 = vpop.xlane.xlu1 %898 }
 0x1d1   : > { %391 = vst.msk [vmem:[#allocation4 + $0xa0] sm:$0xff] %vm370_vm4, %v4862_v14  ;;  %392 = vst.msk [vmem:[#allocation4 + $0xa8] sm:$0xff] %vm370_vm4, %v4862_v14  ;;  %v4052_v56 = vmax.f32 %v4046_v6, %v899_v20 }
 0x1d2   : > { %393 = vst.msk [vmem:[#allocation4 + $0xb0] sm:$0xff] %vm370_vm4, %v4862_v14  ;;  %394 = vst.msk [vmem:[#allocation4 + $0xb8] sm:$0xff] %vm370_vm4, %v4862_v14  ;;  %v902_v9 = vpop.xlane.xlu0 %901 }
 0x1d3   : > { %395 = vst.msk [vmem:[#allocation4 + $0xc0] sm:$0xff] %vm370_vm4, %v4862_v14  ;;  %396 = vst.msk [vmem:[#allocation4 + $0xc8] sm:$0xff] %vm370_vm4, %v4862_v14  ;;  %928 = vmax.xlane.f32.xlu1 %v4864_v1  ;;  %v4060_v55 = vmax.f32 %v4049_v15, %v902_v9  ;;  %v4075_v9 = vld [vmem:[#allocation2 + $0xb8] sm:$0xff] }
 0x1d4   : > { %397 = vst.msk [vmem:[#allocation4 + $0xd0] sm:$0xff] %vm370_vm4, %v4862_v14  ;;  %398 = vst.msk [vmem:[#allocation4 + $0xd8] sm:$0xff] %vm370_vm4, %v4862_v14  ;;  %1740 = vperm.xlu0 %3119, %v4054_v4  }
 0x1d5   : > { %399 = vst.msk [vmem:[#allocation4 + $0xe0] sm:$0xff] %vm370_vm4, %v4862_v14  ;;  %400 = vst.msk [vmem:[#allocation4 + $0xe8] sm:$0xff] %vm370_vm4, %v4862_v14 }
 0x1d6   : > { %401 = vst.msk [vmem:[#allocation4 + $0xf0] sm:$0xff] %vm370_vm4, %v4862_v14  ;;  %402 = vst.msk [vmem:[#allocation4 + $0xf8] sm:$0xff] %vm370_vm4, %v4862_v14  ;;  %v4865_v14 = vsub.f32 %v3784_v2, %v3788_v47  ;;  %v981_v47 = vsub.f32 %v3949_v11, %v3956_v3  ;;  %v4096_v11 = vld [vmem:[#allocation2 + $0xc0] sm:$0xff] }
 0x1d7   : > { %2266 = vst.msk [vmem:[#allocation2 + $0xa0] sm:$0xff] %vm305_vm3, %v4052_v56  ;;  %2267 = vst.msk [vmem:[#allocation2 + $0xa8] sm:$0xff] %vm305_vm3, %v4060_v55 }
 0x1d8   : > { %v997_v20 = vmul.f32 1.442695, %v4865_v14  ;;  %4866 = vst [vmem:[#allocation59_spill] sm:$0xff] %v4072_v52  ;;  %1745 = vperm.xlu0 %3119, %v4072_v52   ;;  %v905_v1 = vpop.xlane.xlu1 %904  ;;  %v4867_v14 = vsub.f32 %v3812_v62, %v3819_v41  ;;  %v982_v41 = vsub.f32 %v3951_v35, %v3961_v18 }
 0x1d9   : > { %v4078_v50 = vmax.f32 %v4070_v53, %v905_v1 }
 0x1da   : > { %3161 = vpow2.f32 %v997_v20  ;;  %v908_v4 = vpop.xlane.xlu0 %907  ;;  %v1003_v52 = vmul.f32 1.442695, %v4867_v14  ;;  %v4868_v20 = vsub.f32 %v3822_v10, %v3833_v22  ;;  %v1031_v35 = vmul.f32 1.442695, %v982_v41  ;;  %v4121_v14 = vld [vmem:[#allocation2 + $0xd0] sm:$0xff] }
 0x1db   : > { %v4083_v2 = vmax.f32 %v4075_v9, %v908_v4  ;;  %2268 = vst.msk [vmem:[#allocation2 + $0xb0] sm:$0xff] %vm305_vm3, %v4078_v50  ;;  %v1029_v4 = vmul.f32 1.442695, %v981_v47 }
 0x1dc   : > { %1123 = vperm.xlu0 %3119, %v3915_v7   ;;  %v1005_v1 = vmul.f32 1.442695, %v4868_v20  ;;  %3163 = vpow2.f32 %v1003_v52  ;;  %v4125_v20 = vld [vmem:[#allocation2 + $0xd8] sm:$0xff] }
 0x1dd   : > { %2269 = vst.msk [vmem:[#allocation2 + $0xb8] sm:$0xff] %vm305_vm3, %v4083_v2 }
 0x1de   : > { %3165 = vpow2.f32 %v1005_v1 }
 0x1df   : > { %3167 = vpow2.f32 %v1029_v4  ;;  %v984_v4 = vsub.f32 %v3969_v16, %v3977_v0 }
 0x1e0   : > { %1128 = vperm.xlu0 %3119, %v3922_v17   ;;  %v911_v29 = vpop.xlane.xlu0 %910  ;;  %3169 = vpow2.f32 %v1031_v35  ;;  %v983_v35 = vsub.f32 %v3967_v63, %v3972_v12 }
 0x1e1   : > { %v4104_v62 = vmax.f32 %v4096_v11, %v911_v29 }
 0x1e2   : > { %v914_v10 = vpop.xlane.xlu1 %913 }
 0x1e3   : > { %2270 = vst.msk [vmem:[#allocation2 + $0xc0] sm:$0xff] %vm305_vm3, %v4104_v62  ;;  %v4113_v52 = vmax.f32 %v4099_v51, %v914_v10 }
 0x1e4   : > { %v4106_v22 = vpop.eup %3161  ;;  %1133 = vperm.xlu0 %3119, %v3936_v49  }
 0x1e5   : > { %4869 = vst [vmem:[#allocation60_spill] sm:$0xff] %v4106_v22  ;;  %1735 = vperm.xlu1 %3120, %v4106_v22   ;;  %2271 = vst.msk [vmem:[#allocation2 + $0xc8] sm:$0xff] %vm305_vm3, %v4113_v52  ;;  %v1033_v22 = vmul.f32 1.442695, %v983_v35  ;;  %v985_v35 = vsub.f32 %v4046_v6, %v4052_v56 }
 0x1e6   : > { %v4132_v10 = vpop.eup %3163 }
 0x1e7   : > { %4870 = vst [vmem:[#allocation61_spill] sm:$0xff] %v4132_v10 }
 0x1e8   : > { %1138 = vperm.xlu0 %3119, %v3943_v5   ;;  %v917_v1 = vpop.xlane.xlu1 %916  ;;  %v4134_v29 = vpop.eup %3165 }
 0x1e9   : > { %1143 = vperm.xlu1 %3120, %v3956_v3   ;;  %v4130_v41 = vmax.f32 %v4121_v14, %v917_v1  ;;  %v4145_v16 = vpop.eup %3167  ;;  %v1035_v1 = vmul.f32 1.442695, %v984_v4  ;;  %v4153_v3 = vld [vmem:[#allocation2 + $0xe0] sm:$0xff] }
 0x1ea   : > { %v920_v47 = vpop.xlane.xlu0 %919  ;;  %4871 = vst [vmem:[#allocation62_spill] sm:$0xff] %v4145_v16  ;;  %v4162_v49 = vpop.eup %3169 }
 0x1eb   : > { %v4137_v17 = vmax.f32 %v4125_v20, %v920_v47  ;;  %2272 = vst.msk [vmem:[#allocation2 + $0xd0] sm:$0xff] %vm305_vm3, %v4130_v41  ;;  %3171 = vpow2.f32 %v1035_v1  ;;  %v4904_v1 = vld [vmem:[#allocation19_spill] sm:$0xff] }
 0x1ec   : > { %1755 = vperm.xlu0 %3119, %v4134_v29   ;;  %3173 = vpow2.f32 %v1033_v22 }
 0x1ed   : > { %1750 = vperm.xlu1 %3120, %v4132_v10   ;;  %2273 = vst.msk [vmem:[#allocation2 + $0xd8] sm:$0xff] %vm305_vm3, %v4137_v17  ;;  %v4157_v10 = vld [vmem:[#allocation2 + $0xe8] sm:$0xff] }
 0x1f0   : > { %1148 = vperm.xlu0 %3119, %v3961_v18   ;;  %v923_v5 = vpop.xlane.xlu0 %922 }
 0x1f1   : > { %1815 = vperm.xlu1 %3120, %v4145_v16   ;;  %v4160_v63 = vmax.f32 %v4153_v3, %v923_v5  ;;  %v4873_v5 = vsub.f32 %v3830_v43, %v3842_v60  ;;  %v1037_v43 = vmul.f32 1.442695, %v985_v35 }
 0x1f2   : > { %v926_v4 = vpop.xlane.xlu1 %925 }
 0x1f3   : > { %2274 = vst.msk [vmem:[#allocation2 + $0xe0] sm:$0xff] %vm305_vm3, %v4160_v63  ;;  %v4169_v16 = vmax.f32 %v4157_v10, %v926_v4  ;;  %v1007_v18 = vmul.f32 1.442695, %v4873_v5 }
 0x1f4   : > { %1153 = vperm.xlu0 %3119, %v3972_v12   ;;  %v986_v12 = vsub.f32 %v4049_v15, %v4060_v55  ;;  %v987_v15 = vsub.f32 %v4070_v53, %v4078_v50 }
 0x1f5   : > { %4872 = vst [vmem:[#allocation63_spill] sm:$0xff] %v4169_v16  ;;  %1820 = vperm.xlu1 %3120, %v4162_v49   ;;  %2275 = vst.msk [vmem:[#allocation2 + $0xe8] sm:$0xff] %vm305_vm3, %v4169_v16  ;;  %3175 = vpow2.f32 %v1007_v18  ;;  %v4186_v60 = vpop.eup %3171 }
 0x1f6   : > { %v1039_v6 = vmul.f32 1.442695, %v986_v12  ;;  %3177 = vpow2.f32 %v1037_v43  ;;  %v4190_v22 = vpop.eup %3173 }
 0x1f8   : > { %1158 = vperm.xlu0 %3119, %v3977_v0   ;;  %v4874_v0 = vsub.f32 %v3850_v31, %v3857_v8  ;;  %3179 = vpow2.f32 %v1039_v6  ;;  %v1041_v6 = vmul.f32 1.442695, %v987_v15 }
 0x1f9   : > { %1168 = vperm.xlu1 %3120, %v4060_v55  }
 0x1fa   : > { %v1009_v4 = vmul.f32 1.442695, %v4874_v0 }
 0x1fc   : > { %1163 = vperm.xlu0 %3119, %v4052_v56   ;;  %3181 = vpow2.f32 %v1009_v4  ;;  %v4875_v56 = vsub.f32 %v3854_v24, %v3864_v21 }
 0x1fd   : > { %1830 = vperm.xlu1 %3120, %v4186_v60  }
 0x1fe   : > { %v1011_v18 = vmul.f32 1.442695, %v4875_v56 }
 0x1ff   : > { %v4197_v55 = vpop.eup %3175 }
 0x200   : > { %1825 = vperm.xlu0 %3119, %v4190_v22   ;;  %v4206_v12 = vpop.eup %3177  ;;  %3183 = vpow2.f32 %v1011_v18  ;;  %v4876_v18 = vsub.f32 %v3871_v25, %v3877_v19 }
 0x201   : > { %1178 = vperm.xlu1 %3120, %v4083_v2   ;;  %3185 = vpow2.f32 %v1041_v6 }
 0x202   : > { %v1064_v5 = vpop.permute.xlu0 %1063  ;;  %v4216_v4 = vpop.eup %3179 }
 0x203   : > { %v1221_v31 = vsub.f32 %v3524_v26, %v1064_v5  ;;  %v1222_v8 = vsub.f32 %v3526_v27, %v1064_v5 }
 0x204   : > { %1173 = vperm.xlu0 %3119, %v4078_v50   ;;  %v988_v50 = vsub.f32 %v4075_v9, %v4083_v2 }
 0x205   : > { %1760 = vperm.xlu1 %3120, %v4197_v55  }
 0x206   : > { %v1069_v35 = vpop.permute.xlu1 %1068  ;;  %v4220_v15 = vpop.eup %3181 }
 0x207   : > { %v1223_v43 = vsub.f32 %v3528_v28, %v1069_v35  ;;  %v1224_v53 = vsub.f32 %v3532_v30, %v1069_v35  ;;  %v1043_v28 = vmul.f32 1.442695, %v988_v50  ;;  %v1013_v35 = vmul.f32 1.442695, %v4876_v18 }
 0x208   : > { %1835 = vperm.xlu0 %3119, %v4206_v12  }
 0x209   : > { %1188 = vperm.xlu1 %3120, %v4113_v52   ;;  %v1285_v21 = vpack.c.bf16 %v1223_v43, %v1221_v31  ;;  %v1286_v24 = vpack.c.bf16 %v1224_v53, %v1222_v8 }
 0x20a   : > { %v1074_v0 = vpop.permute.xlu1 %1073  ;;  %v4231_v53 = vpop.eup %3183 }
 0x20b   : > { %v1318_v26 = vmul.bf16 1069105081, %v1285_v21  ;;  %v1321_v27 = vmul.bf16 1069105081, %v1286_v24  ;;  %v1225_v9 = vsub.f32 %v3536_v32, %v1074_v0  ;;  %v1226_v2 = vsub.f32 %v3538_v33, %v1074_v0 }
 0x20c   : > { %1183 = vperm.xlu0 %3119, %v4104_v62  }
 0x20d   : > { %1840 = vperm.xlu1 %3120, %v4216_v4   ;;  %3187 = vpow.bf16 %v1318_v26 }
 0x20e   : > { %3189 = vpow.bf16 %v1321_v27  ;;  %v1079_v30 = vpop.permute.xlu1 %1078 }
 0x20f   : > { %v1227_v5 = vsub.f32 %v3540_v34, %v1079_v30  ;;  %v1228_v56 = vsub.f32 %v3544_v36, %v1079_v30  ;;  %3191 = vpow2.f32 %v1043_v28  ;;  %v4235_v34 = vpop.eup %3185 }
 0x210   : > { %1765 = vperm.xlu0 %3119, %v4220_v15   ;;  %3193 = vpow2.f32 %v1013_v35 }
 0x211   : > { %1198 = vperm.xlu1 %3120, %v4137_v17   ;;  %v1287_v31 = vpack.c.bf16 %v1227_v5, %v1225_v9  ;;  %v1288_v8 = vpack.c.bf16 %v1228_v56, %v1226_v2 }
 0x212   : > { %v1084_v43 = vpop.permute.xlu0 %1083 }
 0x213   : > { %v1324_v32 = vmul.bf16 1069105081, %v1287_v31  ;;  %v1327_v33 = vmul.bf16 1069105081, %v1288_v8  ;;  %v1229_v19 = vsub.f32 %v3548_v38, %v1084_v43  ;;  %v1230_v25 = vsub.f32 %v3550_v39, %v1084_v43 }
 0x214   : > { %1193 = vperm.xlu0 %3119, %v4130_v41  }
 0x215   : > { %1770 = vperm.xlu1 %3120, %v4231_v53   ;;  %3195 = vpow.bf16 %v1324_v32 }
 0x216   : > { %3197 = vpow.bf16 %v1327_v33  ;;  %v1089_v36 = vpop.permute.xlu0 %1088 }
 0x217   : > { %v1231_v6 = vsub.f32 %v3552_v40, %v1089_v36  ;;  %v1232_v50 = vsub.f32 %v3556_v42, %v1089_v36 }
 0x218   : > { %v3188_v21 = vpop.eup %3187  ;;  %1845 = vperm.xlu0 %3119, %v4235_v34  }
 0x219   : > { %1208 = vperm.xlu1 %3120, %v4169_v16   ;;  %v3190_v24 = vpop.eup %3189  ;;  %v1289_v0 = vpack.c.bf16 %v1231_v6, %v1229_v19  ;;  %v1290_v26 = vpack.c.bf16 %v1232_v50, %v1230_v25  ;;  %v1479_v27 = vunpack.c.h.bf16 %v3188_v21  ;;  %v1477_v28 = vunpack.c.l.bf16 %v3188_v21  ;;  %v4915_v16 = vld [vmem:[#allocation26_spill] sm:$0xff] }
 0x21a   : > { %2053 = vmatprep.mubr.bf16.mxu1 %v3190_v24  ;;  %v1094_v30 = vpop.permute.xlu1 %1093  ;;  %v1480_v9 = vunpack.c.h.bf16 %v3190_v24  ;;  %v1478_v38 = vunpack.c.l.bf16 %v3190_v24  ;;  %v4243_v2 = vpop.eup %3191 }
 0x21b   : > { %v1330_v39 = vmul.bf16 1069105081, %v1289_v0  ;;  %v1333_v40 = vmul.bf16 1069105081, %v1290_v26  ;;  %2054 = vmatmul.mubr.bf16.vlgmr.msra.gmra.mrb[0].mxu1 %v3188_v21  ;;  %v4251_v56 = vpop.eup %3193  ;;  %v1233_v35 = vsub.f32 %v3560_v44, %v1094_v30  ;;  %v1234_v31 = vsub.f32 %v3562_v45, %v1094_v30 }
 0x21c   : > { %1203 = vperm.xlu0 %3119, %v4160_v63   ;;  %v4247_v42 = vadd.f32 %v1480_v9, %v1479_v27  ;;  %v4249_v5 = vadd.f32 %v1478_v38, %v1477_v28 }
 0x21d   : > { %1850 = vperm.xlu1 %3120, %v4243_v2   ;;  %3199 = vpow.bf16 %v1330_v39 }
 0x21e   : > { %3201 = vpow.bf16 %v1333_v40  ;;  %v1099_v18 = vpop.permute.xlu1 %1098 }
 0x21f   : > { %v1235_v8 = vsub.f32 %v3564_v46, %v1099_v18  ;;  %v1236_v43 = vsub.f32 %v3568_v48, %v1099_v18 }
 0x220   : > { %v3196_v32 = vpop.eup %3195  ;;  %1775 = vperm.xlu0 %3119, %v4251_v56  }
 0x221   : > { %v3198_v33 = vpop.eup %3197  ;;  %v1291_v36 = vpack.c.bf16 %v1235_v8, %v1233_v35  ;;  %v1292_v19 = vpack.c.bf16 %v1236_v43, %v1234_v31  ;;  %v1481_v25 = vunpack.c.l.bf16 %v3196_v32  ;;  %v1483_v6 = vunpack.c.h.bf16 %v3196_v32 }
 0x222   : > { %2061 = vmatprep.mubr.bf16.mxu1 %v3198_v33  ;;  %v1482_v50 = vunpack.c.l.bf16 %v3198_v33  ;;  %v1484_v21 = vunpack.c.h.bf16 %v3198_v33 }
 0x223   : > { %v1336_v24 = vmul.bf16 1069105081, %v1291_v36  ;;  %v1339_v0 = vmul.bf16 1069105081, %v1292_v19  ;;  %2062 = vmatmul.mubr.bf16.gmra.mrb[4].mxu1 %v3196_v32 }
 0x224   : > { %v4258_v44 = vadd.f32 %v1482_v50, %v1481_v25  ;;  %v4260_v45 = vadd.f32 %v1484_v21, %v1483_v6 }
 0x225   : > { %3203 = vpow.bf16 %v1336_v24 }
 0x226   : > { %3205 = vpow.bf16 %v1339_v0 }
 0x228   : > { %v3200_v46 = vpop.eup %3199 }
 0x229   : > { %v3202_v48 = vpop.eup %3201  ;;  %v1485_v26 = vunpack.c.l.bf16 %v3200_v46  ;;  %v1487_v27 = vunpack.c.h.bf16 %v3200_v46 }
 0x22a   : > { %2069 = vmatprep.mubr.bf16.mxu1 %v3202_v48  ;;  %v1114_v28 = vpop.permute.xlu1 %1113  ;;  %v1486_v30 = vunpack.c.l.bf16 %v3202_v48  ;;  %v1488_v9 = vunpack.c.h.bf16 %v3202_v48 }
 0x22b   : > { %2070 = vmatmul.mubr.bf16.gmra.mrb[8].mxu1 %v3200_v46  ;;  %v1241_v18 = vsub.f32 %v3648_v57, %v1114_v28  ;;  %v1242_v35 = vsub.f32 %v3650_v58, %v1114_v28  ;;  %v4877_v58 = vsub.f32 %v3874_v37, %v3884_v54  ;;  %v4880_v54 = vsub.f32 %v3892_v13, %v3902_v23 }
 0x22c   : > { %v4262_v38 = vadd.f32 %v1486_v30, %v1485_v26  ;;  %v4264_v39 = vadd.f32 %v1488_v9, %v1487_v27  ;;  %v4284_v27 = vld [vmem:[#allocation2 + $0xf8] sm:$0xff] }
 0x22d   : > { %4879 = vst [vmem:[#allocation64_spill] sm:$0xff] %v4284_v27 }
 0x22e   : > { %v1119_v40 = vpop.permute.xlu1 %1118 }
 0x22f   : > { %v1243_v31 = vsub.f32 %v3652_v59, %v1119_v40  ;;  %v1244_v8 = vsub.f32 %v3656_v61, %v1119_v40  ;;  %v1015_v59 = vmul.f32 1.442695, %v4877_v58  ;;  %v4878_v61 = vsub.f32 %v4099_v51, %v4113_v52 }
 0x230   : > { %v3204_v43 = vpop.eup %3203  ;;  %v1019_v40 = vmul.f32 1.442695, %v4880_v54  ;;  %v4888_v54 = vld [vmem:[#allocation49_spill] sm:$0xff] }
 0x231   : > { %v3206_v32 = vpop.eup %3205  ;;  %v1295_v33 = vpack.c.bf16 %v1243_v31, %v1241_v18  ;;  %v1296_v36 = vpack.c.bf16 %v1244_v8, %v1242_v35  ;;  %v1489_v19 = vunpack.c.l.bf16 %v3204_v43  ;;  %v1491_v25 = vunpack.c.h.bf16 %v3204_v43  ;;  %v4901_v31 = vld [vmem:[#allocation16_spill] sm:$0xff] }
 0x232   : > { %2077 = vmatprep.mubr.bf16.mxu1 %v3206_v32  ;;  %v1490_v6 = vunpack.c.l.bf16 %v3206_v32  ;;  %v1492_v50 = vunpack.c.h.bf16 %v3206_v32  ;;  %v1047_v46 = vmul.f32 1.442695, %v4878_v61  ;;  %v4883_v32 = vld [vmem:[#allocation5_spill] sm:$0xff] }
 0x233   : > { %v1348_v21 = vmul.bf16 1069105081, %v1295_v33  ;;  %v1351_v24 = vmul.bf16 1069105081, %v1296_v36  ;;  %2078 = vmatmul.mubr.bf16.gmra.mrb[12].mxu1 %v3204_v43  ;;  %v4884_v36 = vld [vmem:[#allocation6_spill] sm:$0xff] }
 0x234   : > { %v4270_v0 = vadd.f32 %v1490_v6, %v1489_v19  ;;  %v4272_v57 = vadd.f32 %v1492_v50, %v1491_v25  ;;  %v4885_v25 = vld [vmem:[#allocation7_spill] sm:$0xff]  ;;  %v4886_v50 = vld [vmem:[#allocation8_spill] sm:$0xff] }
 0x235   : > { %3207 = vpow.bf16 %v1348_v21 }
 0x236   : > { %3209 = vpow.bf16 %v1351_v24 }
 0x237   : > { %3211 = vpow2.f32 %v1015_v59 }
 0x238   : > { %3213 = vpow2.f32 %v1047_v46 }
 0x239   : > { %3215 = vpow2.f32 %v1019_v40  ;;  %v4889_v40 = vld [vmem:[#allocation50_spill] sm:$0xff] }
 0x240   : > { %v4280_v48 = vpop.eup %3207 }
 0x241   : > { %v4282_v26 = vpop.eup %3209  ;;  %v1497_v28 = vunpack.c.l.bf16 %v4280_v48  ;;  %v1499_v30 = vunpack.c.h.bf16 %v4280_v48 }
 0x242   : > { %v1498_v9 = vunpack.c.l.bf16 %v4282_v26  ;;  %v1500_v37 = vunpack.c.h.bf16 %v4282_v26  ;;  %v4305_v13 = vpop.eup %3211 }
 0x243   : > { %v932_v51 = vpop.xlane.xlu0 %931  ;;  %v4308_v8 = vpop.eup %3213 }
 0x244   : > { %v4294_v52 = vmax.f32 %v4284_v27, %v932_v51  ;;  %v4296_v18 = vadd.f32 %v1498_v9, %v1497_v28  ;;  %v4298_v35 = vadd.f32 %v1500_v37, %v1499_v30  ;;  %4882 = vst [vmem:[#allocation66_spill] sm:$0xff] %v4308_v8  ;;  %v4315_v24 = vpop.eup %3215  ;;  %v4887_v9 = vsub.f32 %v4096_v11, %v4104_v62 }
 0x245   : > { %v4890_v51 = vsub.f32 %v4888_v54, %v4889_v40 }
 0x246   : > { %4881 = vst [vmem:[#allocation65_spill] sm:$0xff] %v4294_v52  ;;  %2277 = vst.msk [vmem:[#allocation2 + $0xf8] sm:$0xff] %vm305_vm3, %v4294_v52  ;;  %1218 = vperm.xlu1 %3120, %v4294_v52   ;;  %v1045_v37 = vmul.f32 1.442695, %v4887_v9 }
 0x24a   : > { %1780 = vperm.xlu1 %3120, %v4305_v13  }
 0x24b   : > { %v1104_v23 = vpop.permute.xlu0 %1103 }
 0x24c   : > { %v1237_v33 = vsub.f32 %v4883_v32, %v1104_v23  ;;  %v1238_v19 = vsub.f32 %v4884_v36, %v1104_v23  ;;  %v1017_v23 = vmul.f32 1.442695, %v4890_v51  ;;  %v4328_v32 = vld [vmem:[#allocation2 + $0xf0] sm:$0xff]  ;;  %v4892_v36 = vld [vmem:[#allocation9_spill] sm:$0xff] }
 0x24d   : > { %4891 = vst [vmem:[#allocation5_spill] sm:$0xff] %v4328_v32 }
 0x24e   : > { %1860 = vperm.xlu1 %3120, %v4308_v8  }
 0x24f   : > { %v1109_v43 = vpop.permute.xlu0 %1108 }
 0x250   : > { %v1239_v6 = vsub.f32 %v4885_v25, %v1109_v43  ;;  %v1240_v21 = vsub.f32 %v4886_v50, %v1109_v43  ;;  %v4893_v25 = vld [vmem:[#allocation10_spill] sm:$0xff]  ;;  %v4894_v50 = vld [vmem:[#allocation11_spill] sm:$0xff] }
 0x252   : > { %v1293_v58 = vpack.c.bf16 %v1239_v6, %v1237_v33  ;;  %v1294_v59 = vpack.c.bf16 %v1240_v21, %v1238_v19  ;;  %1790 = vperm.xlu1 %3120, %v4315_v24  }
 0x253   : > { %v4318_v61 = vpop.permute.xlu0 %1740 }
 0x254   : > { %v1342_v46 = vmul.bf16 1069105081, %v1293_v58  ;;  %v1345_v28 = vmul.bf16 1069105081, %v1294_v59  ;;  %v4895_v58 = vld [vmem:[#allocation12_spill] sm:$0xff] }
 0x256   : > { %3217 = vpow.bf16 %v1342_v46 }
 0x257   : > { %3219 = vpow.bf16 %v1345_v28  ;;  %v4320_v30 = vpop.permute.xlu0 %1745 }
 0x258   : > { %3221 = vpow2.f32 %v1045_v37 }
 0x259   : > { %3223 = vpow2.f32 %v1017_v23 }
 0x25b   : > { %v1124_v43 = vpop.permute.xlu0 %1123 }
 0x25c   : > { %v1245_v19 = vsub.f32 %v4892_v36, %v1124_v43  ;;  %v1246_v6 = vsub.f32 %v4893_v25, %v1124_v43 }
 0x25f   : > { %v1129_v33 = vpop.permute.xlu0 %1128 }
 0x260   : > { %v1247_v21 = vsub.f32 %v4894_v50, %v1129_v33  ;;  %v1248_v59 = vsub.f32 %v4895_v58, %v1129_v33  ;;  %v929_v11 = vpop.xlane.xlu1 %928 }
 0x261   : > { %v3218_v62 = vpop.eup %3217  ;;  %v4335_v46 = vmax.f32 %v4328_v32, %v929_v11 }
 0x262   : > { %v3220_v28 = vpop.eup %3219  ;;  %v1297_v9 = vpack.c.bf16 %v1247_v21, %v1245_v19  ;;  %v1298_v37 = vpack.c.bf16 %v1248_v59, %v1246_v6  ;;  %v1493_v54 = vunpack.c.l.bf16 %v3218_v62  ;;  %v1495_v40 = vunpack.c.h.bf16 %v3218_v62  ;;  %v4898_v59 = vld [vmem:[#allocation13_spill] sm:$0xff] }
 0x263   : > { %4896 = vst [vmem:[#allocation6_spill] sm:$0xff] %v4335_v46  ;;  %2276 = vst.msk [vmem:[#allocation2 + $0xf0] sm:$0xff] %vm305_vm3, %v4335_v46  ;;  %2085 = vmatprep.mubr.bf16.mxu1 %v3220_v28  ;;  %1213 = vperm.xlu0 %3119, %v4335_v46   ;;  %v1134_v23 = vpop.permute.xlu0 %1133  ;;  %v1494_v43 = vunpack.c.l.bf16 %v3220_v28  ;;  %v1496_v33 = vunpack.c.h.bf16 %v3220_v28  ;;  %v4349_v21 = vpop.eup %3221  ;;  %v4899_v28 = vld [vmem:[#allocation14_spill] sm:$0xff] }
 0x264   : > { %v1354_v36 = vmul.bf16 1069105081, %v1297_v9  ;;  %v1357_v25 = vmul.bf16 1069105081, %v1298_v37  ;;  %2086 = vmatmul.mubr.bf16.gmra.mrb[16].mxu1 %v3218_v62  ;;  %v4342_v50 = vpop.permute.xlu1 %1735  ;;  %4897 = vst [vmem:[#allocation7_spill] sm:$0xff] %v4349_v21  ;;  %v1249_v11 = vsub.f32 %v4898_v59, %v1134_v23  ;;  %v1250_v9 = vsub.f32 %v4899_v28, %v1134_v23  ;;  %v4900_v62 = vld [vmem:[#allocation15_spill] sm:$0xff] }
 0x265   : > { %2093 = vmatprep.mubr.bf16.mxu1 %v4282_v26  ;;  %v4345_v19 = vadd.f32 %v1494_v43, %v1493_v54  ;;  %v4347_v6 = vadd.f32 %v1496_v33, %v1495_v40  ;;  %v4356_v54 = vpop.eup %3223  ;;  %v4902_v28 = vld [vmem:[#allocation17_spill] sm:$0xff] }
 0x266   : > { %3225 = vpow.bf16 %v1354_v36 }
 0x267   : > { %3227 = vpow.bf16 %v1357_v25  ;;  %1855 = vperm.xlu0 %3119, %v4349_v21   ;;  %v1139_v58 = vpop.permute.xlu0 %1138 }
 0x268   : > { %v1251_v37 = vsub.f32 %v4900_v62, %v1139_v58  ;;  %v1252_v51 = vsub.f32 %v4901_v31, %v1139_v58  ;;  %v1144_v26 = vpop.permute.xlu1 %1143  ;;  %v4903_v58 = vld [vmem:[#allocation18_spill] sm:$0xff] }
 0x269   : > { %v1253_v31 = vsub.f32 %v4902_v28, %v1144_v26  ;;  %v1254_v62 = vsub.f32 %v4903_v58, %v1144_v26  ;;  %v4908_v58 = vld [vmem:[#allocation21_spill] sm:$0xff] }
 0x26a   : > { %v1299_v40 = vpack.c.bf16 %v1251_v37, %v1249_v11  ;;  %v1300_v43 = vpack.c.bf16 %v1252_v51, %v1250_v9  ;;  %v4905_v51 = vld [vmem:[#allocation20_spill] sm:$0xff] }
 0x26b   : > { %1785 = vperm.xlu0 %3119, %v4356_v54   ;;  %v4359_v33 = vpop.permute.xlu0 %1755 }
 0x26c   : > { %v1360_v36 = vmul.bf16 1069105081, %v1299_v40  ;;  %v1363_v25 = vmul.bf16 1069105081, %v1300_v43  ;;  %2094 = vmatmul.mubr.bf16.gmra.mrb[20].mxu1 %v4280_v48  ;;  %v4362_v59 = vpop.permute.xlu1 %1750 }
 0x26e   : > { %3229 = vpow.bf16 %v1360_v36 }
 0x26f   : > { %3231 = vpow.bf16 %v1363_v25  ;;  %v1149_v23 = vpop.permute.xlu0 %1148 }
 0x270   : > { %v1255_v11 = vsub.f32 %v4904_v1, %v1149_v23  ;;  %v1256_v9 = vsub.f32 %v4905_v51, %v1149_v23  ;;  %v4368_v37 = vpop.permute.xlu1 %1815 }
 0x271   : > { %4906 = vst [vmem:[#allocation8_spill] sm:$0xff] %v4368_v37  ;;  %v3226_v47 = vpop.eup %3225 }
 0x272   : > { %v3228_v40 = vpop.eup %3227  ;;  %v1301_v43 = vpack.c.bf16 %v1255_v11, %v1253_v31  ;;  %v1302_v8 = vpack.c.bf16 %v1256_v9, %v1254_v62  ;;  %v1501_v48 = vunpack.c.l.bf16 %v3226_v47  ;;  %v1503_v52 = vunpack.c.h.bf16 %v3226_v47  ;;  %v4909_v11 = vld [vmem:[#allocation22_spill] sm:$0xff]  ;;  %v4910_v9 = vld [vmem:[#allocation23_spill] sm:$0xff] }
 0x273   : > { %2101 = vmatprep.mubr.bf16.mxu1 %v3228_v40  ;;  %v1154_v36 = vpop.permute.xlu0 %1153  ;;  %v1502_v25 = vunpack.c.l.bf16 %v3228_v40  ;;  %v1504_v27 = vunpack.c.h.bf16 %v3228_v40 }
 0x274   : > { %v1366_v46 = vmul.bf16 1069105081, %v1301_v43  ;;  %v1369_v28 = vmul.bf16 1069105081, %v1302_v8  ;;  %2102 = vmatmul.mubr.bf16.gmra.mrb[24].mxu1 %v3226_v47  ;;  %v4370_v26 = vpop.permute.xlu1 %1820  ;;  %v1257_v62 = vsub.f32 %v4908_v58, %v1154_v36  ;;  %v1258_v51 = vsub.f32 %v4909_v11, %v1154_v36  ;;  %v4911_v43 = vld [vmem:[#allocation24_spill] sm:$0xff] }
 0x275   : > { %4907 = vst [vmem:[#allocation49_spill] sm:$0xff] %v4370_v26  ;;  %v4372_v1 = vadd.f32 %v1502_v25, %v1501_v48  ;;  %v4374_v23 = vadd.f32 %v1504_v27, %v1503_v52 }
 0x276   : > { %3233 = vpow.bf16 %v1366_v46  ;;  %1545 = vadd.xlane.f32.xlu1 %v4247_v42  ;;  %v4912_v42 = vld [vmem:[#allocation27_spill] sm:$0xff] }
 0x277   : > { %3235 = vpow.bf16 %v1369_v28  ;;  %v1159_v31 = vpop.permute.xlu0 %1158  ;;  %v4913_v28 = vld [vmem:[#allocation28_spill] sm:$0xff] }
 0x278   : > { %v1259_v40 = vsub.f32 %v4910_v9, %v1159_v31  ;;  %v1260_v8 = vsub.f32 %v4911_v43, %v1159_v31  ;;  %v1169_v47 = vpop.permute.xlu1 %1168  ;;  %v4914_v31 = vld [vmem:[#allocation25_spill] sm:$0xff] }
 0x279   : > { %v3230_v32 = vpop.eup %3229  ;;  %v1263_v46 = vsub.f32 %v4912_v42, %v1169_v47  ;;  %v1264_v26 = vsub.f32 %v4913_v28, %v1169_v47 }
 0x27a   : > { %v3232_v21 = vpop.eup %3231  ;;  %v1303_v48 = vpack.c.bf16 %v1259_v40, %v1257_v62  ;;  %v1304_v25 = vpack.c.bf16 %v1260_v8, %v1258_v51  ;;  %1548 = vadd.xlane.f32.xlu1 %v4258_v44  ;;  %v1505_v27 = vunpack.c.l.bf16 %v3230_v32  ;;  %v1507_v52 = vunpack.c.h.bf16 %v3230_v32 }
 0x27b   : > { %2109 = vmatprep.mubr.bf16.mxu1 %v3232_v21  ;;  %v1164_v58 = vpop.permute.xlu0 %1163  ;;  %v1506_v36 = vunpack.c.l.bf16 %v3232_v21  ;;  %v1508_v11 = vunpack.c.h.bf16 %v3232_v21 }
 0x27c   : > { %v1372_v9 = vmul.bf16 1069105081, %v1303_v48  ;;  %v1375_v37 = vmul.bf16 1069105081, %v1304_v25  ;;  %2110 = vmatmul.mubr.bf16.gmra.mrb[28].mxu1 %v3230_v32  ;;  %v1261_v43 = vsub.f32 %v4914_v31, %v1164_v58  ;;  %v1262_v62 = vsub.f32 %v4915_v16, %v1164_v58  ;;  %v4386_v51 = vpop.permute.xlu1 %1830  ;;  %v4917_v58 = vld [vmem:[#allocation31_spill] sm:$0xff]  ;;  %v4920_v31 = vld [vmem:[#allocation30_spill] sm:$0xff] }
 0x27d   : > { %4916 = vst [vmem:[#allocation50_spill] sm:$0xff] %v4386_v51  ;;  %v4388_v44 = vadd.f32 %v1506_v36, %v1505_v27  ;;  %v4390_v40 = vadd.f32 %v1508_v11, %v1507_v52  ;;  %v4919_v11 = vld [vmem:[#allocation29_spill] sm:$0xff] }
 0x27e   : > { %3237 = vpow.bf16 %v1372_v9  ;;  %v1305_v8 = vpack.c.bf16 %v1263_v46, %v1261_v43  ;;  %v1306_v47 = vpack.c.bf16 %v1264_v26, %v1262_v62  ;;  %1554 = vadd.xlane.f32.xlu1 %v4262_v38 }
 0x27f   : > { %3239 = vpow.bf16 %v1375_v37  ;;  %v4393_v21 = vpop.permute.xlu0 %1825  ;;  %v4918_v37 = vld [vmem:[#allocation32_spill] sm:$0xff] }
 0x280   : > { %v1378_v48 = vmul.bf16 1069105081, %v1305_v8  ;;  %v1381_v32 = vmul.bf16 1069105081, %v1306_v47  ;;  %v1179_v25 = vpop.permute.xlu1 %1178 }
 0x281   : > { %v3234_v42 = vpop.eup %3233  ;;  %v1267_v38 = vsub.f32 %v4917_v58, %v1179_v25  ;;  %v1268_v36 = vsub.f32 %v4918_v37, %v1179_v25 }
 0x282   : > { %v3236_v28 = vpop.eup %3235  ;;  %3241 = vpow.bf16 %v1378_v48  ;;  %1560 = vadd.xlane.f32.xlu1 %v4270_v0  ;;  %v1509_v16 = vunpack.c.l.bf16 %v3234_v42  ;;  %v1511_v27 = vunpack.c.h.bf16 %v3234_v42 }
 0x283   : > { %3243 = vpow.bf16 %v1381_v32  ;;  %2117 = vmatprep.mubr.bf16.mxu1 %v3236_v28  ;;  %v1174_v52 = vpop.permute.xlu0 %1173  ;;  %v1510_v46 = vunpack.c.l.bf16 %v3236_v28  ;;  %v1512_v26 = vunpack.c.h.bf16 %v3236_v28 }
 0x284   : > { %2118 = vmatmul.mubr.bf16.gmra.mrb[32].mxu1 %v3234_v42  ;;  %v1265_v9 = vsub.f32 %v4919_v11, %v1174_v52  ;;  %v1266_v43 = vsub.f32 %v4920_v31, %v1174_v52  ;;  %v4400_v62 = vpop.permute.xlu1 %1760 }
 0x285   : > { %v4402_v8 = vadd.f32 %v1510_v46, %v1509_v16  ;;  %v4404_v0 = vadd.f32 %v1512_v26, %v1511_v27 }
 0x286   : > { %v1307_v47 = vpack.c.bf16 %v1267_v38, %v1265_v9  ;;  %v1308_v48 = vpack.c.bf16 %v1268_v36, %v1266_v43  ;;  %1566 = vadd.xlane.f32.xlu1 %v4345_v19  ;;  %v4922_v19 = vld [vmem:[#allocation35_spill] sm:$0xff]  ;;  %v4923_v36 = vld [vmem:[#allocation36_spill] sm:$0xff]  ;;  %v4924_v9 = vld [vmem:[#allocation33_spill] sm:$0xff] }
 0x287   : > { %v4407_v32 = vpop.permute.xlu0 %1835  ;;  %v4925_v43 = vld [vmem:[#allocation34_spill] sm:$0xff] }
 0x288   : > { %4921 = vst [vmem:[#allocation9_spill] sm:$0xff] %v4407_v32  ;;  %v1384_v28 = vmul.bf16 1069105081, %v1307_v47  ;;  %v1387_v58 = vmul.bf16 1069105081, %v1308_v48  ;;  %v1189_v25 = vpop.permute.xlu1 %1188 }
 0x289   : > { %v3238_v42 = vpop.eup %3237  ;;  %v1271_v38 = vsub.f32 %v4922_v19, %v1189_v25  ;;  %v1272_v11 = vsub.f32 %v4923_v36, %v1189_v25 }
 0x28a   : > { %v3240_v37 = vpop.eup %3239  ;;  %3245 = vpow.bf16 %v1384_v28  ;;  %1542 = vadd.xlane.f32.xlu0 %v4249_v5  ;;  %1572 = vadd.xlane.f32.xlu1 %v4296_v18  ;;  %v1513_v16 = vunpack.c.l.bf16 %v3238_v42  ;;  %v1515_v52 = vunpack.c.h.bf16 %v3238_v42 }
 0x28b   : > { %3247 = vpow.bf16 %v1387_v58  ;;  %2125 = vmatprep.mubr.bf16.mxu1 %v3240_v37  ;;  %v1184_v27 = vpop.permute.xlu0 %1183  ;;  %v1514_v46 = vunpack.c.l.bf16 %v3240_v37  ;;  %v1516_v26 = vunpack.c.h.bf16 %v3240_v37 }
 0x28c   : > { %2126 = vmatmul.mubr.bf16.gmra.mrb[36].mxu1 %v3238_v42  ;;  %v1269_v31 = vsub.f32 %v4924_v9, %v1184_v27  ;;  %v1270_v47 = vsub.f32 %v4925_v43, %v1184_v27  ;;  %v4415_v48 = vpop.permute.xlu1 %1840 }
 0x28d   : > { %v3242_v5 = vpop.eup %3241  ;;  %v1595_v18 = vadd.f32 %v1514_v46, %v1513_v16  ;;  %v4417_v28 = vadd.f32 %v1516_v26, %v1515_v52  ;;  %v4927_v26 = vld [vmem:[#allocation40_spill] sm:$0xff] }
 0x28e   : > { %v3244_v58 = vpop.eup %3243  ;;  %v1309_v32 = vpack.c.bf16 %v1271_v38, %v1269_v31  ;;  %v1310_v51 = vpack.c.bf16 %v1272_v11, %v1270_v47  ;;  %1551 = vadd.xlane.f32.xlu0 %v4260_v45  ;;  %1578 = vadd.xlane.f32.xlu1 %v4372_v1  ;;  %v1517_v37 = vunpack.c.l.bf16 %v3242_v5  ;;  %v1519_v25 = vunpack.c.h.bf16 %v3242_v5  ;;  %v4926_v1 = vld [vmem:[#allocation39_spill] sm:$0xff]  ;;  %v4928_v11 = vld [vmem:[#allocation37_spill] sm:$0xff] }
 0x28f   : > { %2133 = vmatprep.mubr.bf16.mxu1 %v3244_v58  ;;  %v4421_v42 = vpop.permute.xlu0 %1765  ;;  %v1518_v19 = vunpack.c.l.bf16 %v3244_v58  ;;  %v1520_v27 = vunpack.c.h.bf16 %v3244_v58 }
 0x290   : > { %v1390_v36 = vmul.bf16 1069105081, %v1309_v32  ;;  %v1393_v9 = vmul.bf16 1069105081, %v1310_v51  ;;  %v1199_v43 = vpop.permute.xlu1 %1198  ;;  %v4929_v32 = vld [vmem:[#allocation38_spill] sm:$0xff] }
 0x291   : > { %v1601_v16 = vadd.f32 %v1518_v19, %v1517_v37  ;;  %v4423_v52 = vadd.f32 %v1520_v27, %v1519_v25  ;;  %v1275_v46 = vsub.f32 %v4926_v1, %v1199_v43  ;;  %v1276_v38 = vsub.f32 %v4927_v26, %v1199_v43 }
 0x292   : > { %3249 = vpow.bf16 %v1390_v36  ;;  %1557 = vadd.xlane.f32.xlu0 %v4264_v39  ;;  %1584 = vadd.xlane.f32.xlu1 %v4388_v44 }
 0x293   : > { %3251 = vpow.bf16 %v1393_v9  ;;  %v1194_v45 = vpop.permute.xlu0 %1193 }
 0x294   : > { %2134 = vmatmul.mubr.bf16.gmra.mrb[40].mxu1 %v3242_v5  ;;  %v1273_v31 = vsub.f32 %v4928_v11, %v1194_v45  ;;  %v1274_v51 = vsub.f32 %v4929_v32, %v1194_v45  ;;  %v4431_v47 = vpop.permute.xlu1 %1770 }
 0x295   : > { %v3246_v58 = vpop.eup %3245 }
 0x296   : > { %v3248_v37 = vpop.eup %3247  ;;  %v1311_v25 = vpack.c.bf16 %v1275_v46, %v1273_v31  ;;  %v1312_v19 = vpack.c.bf16 %v1276_v38, %v1274_v51  ;;  %1563 = vadd.xlane.f32.xlu0 %v4272_v57  ;;  %1596 = vadd.xlane.f32.xlu1 %v1595_v18  ;;  %v1521_v39 = vunpack.c.l.bf16 %v3246_v58  ;;  %v1523_v44 = vunpack.c.h.bf16 %v3246_v58  ;;  %v4931_v57 = vld [vmem:[#allocation43_spill] sm:$0xff]  ;;  %v4932_v38 = vld [vmem:[#allocation44_spill] sm:$0xff]  ;;  %v4933_v31 = vld [vmem:[#allocation41_spill] sm:$0xff] }
 0x297   : > { %2141 = vmatprep.mubr.bf16.mxu1 %v3248_v37  ;;  %v4434_v27 = vpop.permute.xlu0 %1845  ;;  %v1522_v36 = vunpack.c.l.bf16 %v3248_v37  ;;  %v1524_v5 = vunpack.c.h.bf16 %v3248_v37  ;;  %v4934_v51 = vld [vmem:[#allocation42_spill] sm:$0xff] }
 0x298   : > { %4930 = vst [vmem:[#allocation10_spill] sm:$0xff] %v4434_v27  ;;  %v1396_v9 = vmul.bf16 1069105081, %v1311_v25  ;;  %v1399_v43 = vmul.bf16 1069105081, %v1312_v19  ;;  %v1209_v1 = vpop.permute.xlu1 %1208 }
 0x299   : > { %v1607_v45 = vadd.f32 %v1522_v36, %v1521_v39  ;;  %v1610_v26 = vadd.f32 %v1524_v5, %v1523_v44  ;;  %v1279_v18 = vsub.f32 %v4931_v57, %v1209_v1  ;;  %v1280_v11 = vsub.f32 %v4932_v38, %v1209_v1 }
 0x29a   : > { %3253 = vpow.bf16 %v1396_v9  ;;  %1569 = vadd.xlane.f32.xlu0 %v4347_v6  ;;  %1602 = vadd.xlane.f32.xlu1 %v1601_v16  ;;  %v4935_v5 = vsub.f32 %v4125_v20, %v4137_v17 }
 0x29b   : > { %3255 = vpow.bf16 %v1399_v43  ;;  %v1204_v46 = vpop.permute.xlu0 %1203 }
 0x29c   : > { %2142 = vmatmul.mubr.bf16.gmra.mrb[44].mxu1 %v3246_v58  ;;  %v1277_v32 = vsub.f32 %v4933_v31, %v1204_v46  ;;  %v1278_v37 = vsub.f32 %v4934_v51, %v1204_v46  ;;  %v1051_v58 = vmul.f32 1.442695, %v4935_v5 }
 0x29d   : > { %v3250_v25 = vpop.eup %3249 }
 0x29e   : > { %v3252_v19 = vpop.eup %3251  ;;  %v1313_v27 = vpack.c.bf16 %v1279_v18, %v1277_v32  ;;  %v1314_v39 = vpack.c.bf16 %v1280_v11, %v1278_v37  ;;  %1575 = vadd.xlane.f32.xlu0 %v4298_v35  ;;  %1608 = vadd.xlane.f32.xlu1 %v1607_v45  ;;  %v1525_v6 = vunpack.c.l.bf16 %v3250_v25  ;;  %v1527_v16 = vunpack.c.h.bf16 %v3250_v25 }
 0x29f   : > { %2149 = vmatprep.mubr.bf16.mxu1 %v3252_v19  ;;  %v1526_v44 = vunpack.c.l.bf16 %v3252_v19  ;;  %v1528_v36 = vunpack.c.h.bf16 %v3252_v19 }
 0x2a0   : > { %v1402_v9 = vmul.bf16 1069105081, %v1313_v27  ;;  %v1405_v43 = vmul.bf16 1069105081, %v1314_v39 }
 0x2a1   : > { %v1613_v1 = vadd.f32 %v1526_v44, %v1525_v6  ;;  %v1616_v46 = vadd.f32 %v1528_v36, %v1527_v16  ;;  %v4460_v6 = vpop.permute.xlu1 %1850  ;;  %v4462_v16 = vpop.permute.xlu0 %1775  ;;  %v4938_v36 = vld [vmem:[#allocation48_spill] sm:$0xff] }
 0x2a2   : > { %3257 = vpow.bf16 %v1402_v9  ;;  %1581 = vadd.xlane.f32.xlu0 %v4374_v23 }
 0x2a3   : > { %3259 = vpow.bf16 %v1405_v43 }
 0x2a4   : > { %3261 = vpow2.f32 %v1051_v58  ;;  %2150 = vmatmul.mubr.bf16.gmra.mrb[48].mxu1 %v3250_v25  ;;  %v4940_v58 = vld [vmem:[#allocation46_spill] sm:$0xff] }
 0x2a5   : > { %v3254_v35 = vpop.eup %3253 }
 0x2a6   : > { %v3256_v45 = vpop.eup %3255  ;;  %1587 = vadd.xlane.f32.xlu0 %v4390_v40  ;;  %v1529_v57 = vunpack.c.l.bf16 %v3254_v35  ;;  %v1531_v18 = vunpack.c.h.bf16 %v3254_v35 }
 0x2a7   : > { %2157 = vmatprep.mubr.bf16.mxu1 %v3256_v45  ;;  %v1530_v38 = vunpack.c.l.bf16 %v3256_v45  ;;  %v1532_v17 = vunpack.c.h.bf16 %v3256_v45 }
 0x2a9   : > { %v1619_v20 = vadd.f32 %v1530_v38, %v1529_v57  ;;  %v1622_v27 = vadd.f32 %v1532_v17, %v1531_v18  ;;  %v1701_v57 = vld [vmem:[#allocation4] sm:$0xff]  ;;  %v1702_v38 = vld [vmem:[#allocation4 + $0x8] sm:$0xff] }
 0x2aa   : > { %1590 = vadd.xlane.f32.xlu0 %v4402_v8  ;;  %v4936_v8 = vsub.f32 %v4121_v14, %v4130_v41  ;;  %v4939_v14 = vld [vmem:[#allocation45_spill] sm:$0xff] }
 0x2ac   : > { %2158 = vmatmul.mubr.bf16.gmra.mrb[52].mxu1 %v3254_v35  ;;  %v1049_v39 = vmul.f32 1.442695, %v4936_v8 }
 0x2ad   : > { %v3258_v11 = vpop.eup %3257 }
 0x2ae   : > { %v3260_v31 = vpop.eup %3259  ;;  %1593 = vadd.xlane.f32.xlu0 %v4404_v0  ;;  %v1533_v32 = vunpack.c.l.bf16 %v3258_v11  ;;  %v1535_v51 = vunpack.c.h.bf16 %v3258_v11  ;;  %3263 = vpow2.f32 %v1049_v39 }
 0x2af   : > { %v4448_v23 = vpop.eup %3261  ;;  %2165 = vmatprep.mubr.bf16.mxu1 %v3260_v31  ;;  %v1534_v40 = vunpack.c.l.bf16 %v3260_v31  ;;  %v1536_v37 = vunpack.c.h.bf16 %v3260_v31 }
 0x2b0   : > { %1870 = vperm.xlu1 %3120, %v4448_v23  }
 0x2b1   : > { %v1625_v25 = vadd.f32 %v1534_v40, %v1533_v32  ;;  %v1628_v19 = vadd.f32 %v1536_v37, %v1535_v51  ;;  %v1894_v51 = vmul.f32 %v4318_v61, %v1702_v38  ;;  %v1704_v61 = vld [vmem:[#allocation4 + $0x18] sm:$0xff]  ;;  %v1705_v38 = vld [vmem:[#allocation4 + $0x20] sm:$0xff] }
 0x2b2   : > { %1599 = vadd.xlane.f32.xlu0 %v4417_v28 }
 0x2b4   : > { %2166 = vmatmul.mubr.bf16.gmra.mrb[56].mxu1 %v3258_v11 }
 0x2b6   : > { %1605 = vadd.xlane.f32.xlu0 %v4423_v52  ;;  %v4937_v52 = vld [vmem:[#allocation47_spill] sm:$0xff] }
 0x2b8   : > { %v4457_v0 = vpop.eup %3263 }
 0x2ba   : > { %1611 = vadd.xlane.f32.xlu0 %v1610_v26 }
 0x2c5   : > { %v1219_v28 = vpop.permute.xlu1 %1218 }
 0x2c6   : > { %v1283_v26 = vsub.f32 %v4937_v52, %v1219_v28  ;;  %v1284_v5 = vsub.f32 %v4938_v36, %v1219_v28 }
 0x2d0   : > { %1865 = vperm.xlu0 %3119, %v4457_v0  }
 0x2d4   : > { %1614 = vadd.xlane.f32.xlu1 %v1613_v1 }
 0x2d8   : > { %1620 = vadd.xlane.f32.xlu1 %v1619_v20  ;;  %v1893_v20 = vmul.f32 %v4342_v50, %v1701_v57 }
 0x2dc   : > { %1626 = vadd.xlane.f32.xlu1 %v1625_v25  ;;  %v4470_v25 = vpop.permute.xlu1 %1780 }
 0x2e2   : > { %v1214_v44 = vpop.permute.xlu0 %1213 }
 0x2e3   : > { %v1281_v41 = vsub.f32 %v4939_v14, %v1214_v44  ;;  %v1282_v9 = vsub.f32 %v4940_v58, %v1214_v44  ;;  %v1703_v44 = vld [vmem:[#allocation4 + $0x10] sm:$0xff] }
 0x2e5   : > { %v1315_v43 = vpack.c.bf16 %v1283_v26, %v1281_v41  ;;  %v1316_v35 = vpack.c.bf16 %v1284_v5, %v1282_v9 }
 0x2e7   : > { %v1408_v45 = vmul.bf16 1069105081, %v1315_v43  ;;  %v1411_v1 = vmul.bf16 1069105081, %v1316_v35  ;;  %v4475_v43 = vpop.permute.xlu1 %1860 }
 0x2e9   : > { %3265 = vpow.bf16 %v1408_v45  ;;  %v1896_v45 = vmul.f32 %v4362_v59, %v1704_v61 }
 0x2ea   : > { %3267 = vpow.bf16 %v1411_v1 }
 0x2ee   : > { %v2967_v18 = vpop.f32.mrb[0].mxu1 }
 0x2ef   : > { %v2968_v17 = vpop.f32.mrb[1].mxu1  ;;  %1617 = vadd.xlane.f32.xlu0 %v1616_v46 }
 0x2f0   : > { %v2969_v11 = vadd.f32 %v2968_v17, %v2967_v18  ;;  %v2970_v31 = vpop.f32.mrb[2].mxu1  ;;  %v4480_v17 = vpop.permute.xlu1 %1790 }
 0x2f1   : > { %v2971_v32 = vpop.f32.mrb[3].mxu1 }
 0x2f2   : > { %v2182_v40 = vadd.f32 %v2969_v11, %v1893_v20  ;;  %v2972_v37 = vadd.f32 %v2971_v32, %v2970_v31  ;;  %v1414_v11 = vld [vmem:[#allocation3 + $0x8] sm:$0xff]  ;;  %v1897_v31 = vmul.f32 %v4359_v33, %v1705_v38 }
 0x2f3   : > { %1623 = vadd.xlane.f32.xlu0 %v1622_v27  ;;  %v1895_v27 = vmul.f32 %v4320_v30, %v1703_v44 }
 0x2f4   : > { %v3266_v8 = vpop.eup %3265  ;;  %2214 = vst.msk [vmem:[#allocation4] sm:$0xff] %vm370_vm4, %v2182_v40  ;;  %v2183_v39 = vadd.f32 %v2972_v37, %v1894_v51 }
 0x2f5   : > { %v3268_v28 = vpop.eup %3267  ;;  %v1537_v52 = vunpack.c.l.bf16 %v3266_v8  ;;  %v1539_v46 = vunpack.c.h.bf16 %v3266_v8 }
 0x2f6   : > { %2215 = vst.msk [vmem:[#allocation4 + $0x8] sm:$0xff] %vm370_vm4, %v2183_v39  ;;  %v2973_v50 = vpop.f32.mrb[4].mxu1  ;;  %2173 = vmatprep.mubr.bf16.mxu1 %v3268_v28  ;;  %v1538_v26 = vunpack.c.l.bf16 %v3268_v28  ;;  %v1540_v36 = vunpack.c.h.bf16 %v3268_v28  ;;  %v4941_v39 = vld [vmem:[#allocation58_spill] sm:$0xff] }
 0x2f7   : > { %v2974_v5 = vpop.f32.mrb[5].mxu1  ;;  %2174 = vmatmul.mubr.bf16.gmra.mrb[60].mxu1 %v3266_v8  ;;  %1629 = vadd.xlane.f32.xlu0 %v1628_v19  ;;  %v1706_v19 = vld [vmem:[#allocation4 + $0x28] sm:$0xff]  ;;  %v1446_v28 = vmul.f32 %v4941_v39, %v1414_v11  ;;  %v1421_v39 = vld [vmem:[#allocation3 + $0x40] sm:$0xff] }
 0x2f8   : > { %v2975_v14 = vadd.f32 %v2974_v5, %v2973_v50  ;;  %v2976_v41 = vpop.f32.mrb[6].mxu1  ;;  %v1631_v58 = vadd.f32 %v1538_v26, %v1537_v52  ;;  %v1634_v9 = vadd.f32 %v1540_v36, %v1539_v46  ;;  %v1898_v40 = vmul.f32 %v4400_v62, %v1706_v19  ;;  %v1415_v52 = vld [vmem:[#allocation3 + $0x10] sm:$0xff]  ;;  %v1708_v5 = vld [vmem:[#allocation4 + $0x38] sm:$0xff] }
 0x2f9   : > { %v2977_v35 = vpop.f32.mrb[7].mxu1  ;;  %v1707_v26 = vld [vmem:[#allocation4 + $0x30] sm:$0xff]  ;;  %v1900_v38 = vmul.f32 %v4431_v47, %v1708_v5 }
 0x2fa   : > { %v2184_v1 = vadd.f32 %v2975_v14, %v1895_v27  ;;  %v2978_v57 = vadd.f32 %v2977_v35, %v2976_v41  ;;  %1632 = vadd.xlane.f32.xlu1 %v1631_v58  ;;  %v4942_v36 = vld [vmem:[#allocation59_spill] sm:$0xff]  ;;  %v1417_v14 = vld [vmem:[#allocation3 + $0x20] sm:$0xff]  ;;  %v1899_v41 = vmul.f32 %v4421_v42, %v1707_v26 }
 0x2fb   : > { %1635 = vadd.xlane.f32.xlu0 %v1634_v9  ;;  %v1447_v61 = vmul.f32 %v4942_v36, %v1415_v52  ;;  %v1413_v26 = vld [vmem:[#allocation3] sm:$0xff] }
 0x2fc   : > { %2216 = vst.msk [vmem:[#allocation4 + $0x10] sm:$0xff] %vm370_vm4, %v2184_v1  ;;  %v2185_v18 = vadd.f32 %v2978_v57, %v1896_v45  ;;  %v4943_v45 = vld [vmem:[#allocation51_spill] sm:$0xff] }
 0x2fd   : > { %v4944_v1 = vsub.f32 %v4943_v45, %v3915_v7  ;;  %v4949_v45 = vld [vmem:[#allocation61_spill] sm:$0xff] }
 0x2fe   : > { %2217 = vst.msk [vmem:[#allocation4 + $0x18] sm:$0xff] %vm370_vm4, %v2185_v18  ;;  %v2979_v30 = vpop.f32.mrb[8].mxu1 }
 0x2ff   : > { %v2980_v20 = vpop.f32.mrb[9].mxu1  ;;  %v1021_v57 = vmul.f32 1.442695, %v4944_v1 }
 0x300   : > { %v2981_v32 = vadd.f32 %v2980_v20, %v2979_v30  ;;  %v2982_v59 = vpop.f32.mrb[10].mxu1  ;;  %v1449_v20 = vmul.f32 %v4134_v29, %v1417_v14  ;;  %v1425_v14 = vld [vmem:[#allocation3 + $0x60] sm:$0xff] }
 0x301   : > { %v2983_v51 = vpop.f32.mrb[11].mxu1  ;;  %3269 = vpow2.f32 %v1021_v57 }
 0x302   : > { %v2186_v37 = vadd.f32 %v2981_v32, %v1897_v31  ;;  %v2984_v8 = vadd.f32 %v2983_v51, %v2982_v59  ;;  %v1419_v31 = vld [vmem:[#allocation3 + $0x30] sm:$0xff]  ;;  %v4945_v59 = vld [vmem:[#allocation54_spill] sm:$0xff]  ;;  %v4946_v51 = vld [vmem:[#allocation56_spill] sm:$0xff] }
 0x303   : > { %v1546_v44 = vpop.xlane.xlu1 %1545  ;;  %v4947_v7 = vsub.f32 %v4945_v59, %v4946_v51  ;;  %v1451_v29 = vmul.f32 %v4220_v15, %v1419_v31  ;;  %v4951_v31 = vld [vmem:[#allocation53_spill] sm:$0xff] }
 0x304   : > { %2218 = vst.msk [vmem:[#allocation4 + $0x20] sm:$0xff] %vm370_vm4, %v2186_v37  ;;  %v2187_v46 = vadd.f32 %v2984_v8, %v1898_v40  ;;  %v1638_v50 = vadd.f32 %v1546_v44, %v1446_v28  ;;  %v4500_v37 = vpop.permute.xlu0 %1855  ;;  %v1453_v44 = vmul.f32 %v4251_v56, %v1421_v39 }
 0x305   : > { %v1025_v40 = vmul.f32 1.442695, %v4947_v7 }
 0x306   : > { %2219 = vst.msk [vmem:[#allocation4 + $0x28] sm:$0xff] %vm370_vm4, %v2187_v46  ;;  %v2985_v33 = vpop.f32.mrb[12].mxu1 }
 0x307   : > { %1670 = vst.msk [vmem:[#allocation3 + $0x8] sm:$0xff] %vm305_vm3, %v1638_v50  ;;  %v2986_v62 = vpop.f32.mrb[13].mxu1  ;;  %v1549_v27 = vpop.xlane.xlu1 %1548  ;;  %v1423_v50 = vld [vmem:[#allocation3 + $0x50] sm:$0xff] }
 0x308   : > { %v2987_v58 = vadd.f32 %v2986_v62, %v2985_v33  ;;  %v2988_v9 = vpop.f32.mrb[14].mxu1  ;;  %v1639_v35 = vadd.f32 %v1549_v27, %v1447_v61  ;;  %v4507_v52 = vpop.permute.xlu0 %1785  ;;  %v1455_v36 = vmul.f32 %v4356_v54, %v1423_v50  ;;  %v4948_v61 = vld [vmem:[#allocation60_spill] sm:$0xff] }
 0x309   : > { %v2989_v18 = vpop.f32.mrb[15].mxu1  ;;  %v1445_v15 = vmul.f32 %v4948_v61, %v1413_v26 }
 0x30a   : > { %v2188_v30 = vadd.f32 %v2987_v58, %v1899_v41  ;;  %1671 = vst.msk [vmem:[#allocation3 + $0x10] sm:$0xff] %vm305_vm3, %v1639_v35  ;;  %v2990_v19 = vadd.f32 %v2989_v18, %v2988_v9  ;;  %v1416_v41 = vld [vmem:[#allocation3 + $0x18] sm:$0xff] }
 0x30b   : > { %v1555_v11 = vpop.xlane.xlu1 %1554  ;;  %v4512_v5 = vpop.eup %3269  ;;  %v1448_v54 = vmul.f32 %v4949_v45, %v1416_v41  ;;  %v1435_v45 = vld [vmem:[#allocation3 + $0xb0] sm:$0xff] }
 0x30c   : > { %2220 = vst.msk [vmem:[#allocation4 + $0x30] sm:$0xff] %vm370_vm4, %v2188_v30  ;;  %v2189_v42 = vadd.f32 %v2990_v19, %v1900_v38  ;;  %v1641_v32 = vadd.f32 %v1555_v11, %v1449_v20  ;;  %v1457_v35 = vmul.f32 %v4512_v5, %v1425_v14  ;;  %v1427_v38 = vld [vmem:[#allocation3 + $0x70] sm:$0xff]  ;;  %v1418_v30 = vld [vmem:[#allocation3 + $0x28] sm:$0xff]  ;;  %v4950_v11 = vld [vmem:[#allocation52_spill] sm:$0xff] }
 0x30d   : > { %v1450_v51 = vmul.f32 %v4197_v55, %v1418_v30  ;;  %v1467_v30 = vmul.f32 %v4235_v34, %v1435_v45 }
 0x30e   : > { %v2279_v47 = vld [vmem:[#allocation3 + $0x8] sm:$0xff]  ;;  %2221 = vst.msk [vmem:[#allocation4 + $0x38] sm:$0xff] %vm370_vm4, %v2189_v42  ;;  %v4952_v42 = vsub.f32 %v4950_v11, %v4951_v31 }
 0x30f   : > { %3271 = vrcp.f32 %v2279_v47  ;;  %1673 = vst.msk [vmem:[#allocation3 + $0x20] sm:$0xff] %vm305_vm3, %v1641_v32  ;;  %v1561_v8 = vpop.xlane.xlu1 %1560  ;;  %v1431_v47 = vld [vmem:[#allocation3 + $0x90] sm:$0xff]  ;;  %v1426_v31 = vld [vmem:[#allocation3 + $0x68] sm:$0xff] }
 0x310   : > { %v1643_v28 = vadd.f32 %v1561_v8, %v1451_v29  ;;  %3273 = vpow2.f32 %v1025_v40  ;;  %v1023_v32 = vmul.f32 1.442695, %v4952_v42  ;;  %v1420_v29 = vld [vmem:[#allocation3 + $0x38] sm:$0xff] }
 0x311   : > { %v1452_v55 = vmul.f32 %v4231_v53, %v1420_v29 }
 0x312   : > { %1675 = vst.msk [vmem:[#allocation3 + $0x30] sm:$0xff] %vm305_vm3, %v1643_v28  ;;  %3275 = vpow2.f32 %v1023_v32  ;;  %v4953_v28 = vld [vmem:[#allocation55_spill] sm:$0xff] }
 0x313   : > { %v1567_v46 = vpop.xlane.xlu1 %1566 }
 0x314   : > { %v1645_v33 = vadd.f32 %v1567_v46, %v1453_v44  ;;  %v4954_v44 = vld [vmem:[#allocation57_spill] sm:$0xff] }
 0x315   : > { %v4955_v46 = vsub.f32 %v4953_v28, %v4954_v44 }
 0x316   : > { %1677 = vst.msk [vmem:[#allocation3 + $0x40] sm:$0xff] %vm305_vm3, %v1645_v33  ;;  %v1463_v33 = vmul.f32 %v4190_v22, %v1431_v47  ;;  %v2282_v53 = vld [vmem:[#allocation3 + $0x20] sm:$0xff]  ;;  %v1428_v47 = vld [vmem:[#allocation3 + $0x78] sm:$0xff] }
 0x317   : > { %v1573_v62 = vpop.xlane.xlu1 %1572  ;;  %v1543_v27 = vpop.xlane.xlu0 %1542  ;;  %v1027_v50 = vmul.f32 1.442695, %v4955_v46 }
 0x318   : > { %v1647_v56 = vadd.f32 %v1573_v62, %v1455_v36  ;;  %v1637_v9 = vadd.f32 %v1543_v27, %v1445_v15  ;;  %v2280_v36 = vld [vmem:[#allocation3 + $0x10] sm:$0xff]  ;;  %v1433_v62 = vld [vmem:[#allocation3 + $0xa0] sm:$0xff]  ;;  %v1422_v27 = vld [vmem:[#allocation3 + $0x48] sm:$0xff] }
 0x319   : > { %v3272_v58 = vpop.eup %3271  ;;  %v1454_v22 = vmul.f32 %v4305_v13, %v1422_v27  ;;  %v2284_v13 = vld [vmem:[#allocation3 + $0x30] sm:$0xff] }
 0x31a   : > { %2413 = vperm.xlu1 %3120, %v3272_v58   ;;  %1679 = vst.msk [vmem:[#allocation3 + $0x50] sm:$0xff] %vm305_vm3, %v1647_v56  ;;  %1669 = vst.msk [vmem:[#allocation3] sm:$0xff] %vm305_vm3, %v1637_v9  ;;  %v4518_v1 = vpop.eup %3273  ;;  %v1465_v56 = vmul.f32 %v4206_v12, %v1433_v62 }
 0x31b   : > { %v1579_v57 = vpop.xlane.xlu1 %1578  ;;  %v1552_v18 = vpop.xlane.xlu0 %1551  ;;  %v1459_v59 = vmul.f32 %v4518_v1, %v1427_v38 }
 0x31c   : > { %v1649_v19 = vadd.f32 %v1579_v57, %v1457_v35  ;;  %v1640_v20 = vadd.f32 %v1552_v18, %v1448_v54  ;;  %v1424_v54 = vld [vmem:[#allocation3 + $0x58] sm:$0xff] }
 0x31d   : > { %v1456_v12 = vmul.f32 %v4315_v24, %v1424_v54 }
 0x31e   : > { %1681 = vst.msk [vmem:[#allocation3 + $0x60] sm:$0xff] %vm305_vm3, %v1649_v19  ;;  %1672 = vst.msk [vmem:[#allocation3 + $0x18] sm:$0xff] %vm305_vm3, %v1640_v20  ;;  %v4542_v19 = vpop.eup %3275 }
 0x31f   : > { %v1585_v7 = vpop.xlane.xlu1 %1584  ;;  %v1558_v40 = vpop.xlane.xlu0 %1557  ;;  %v1458_v34 = vmul.f32 %v4542_v19, %v1426_v31 }
 0x320   : > { %v1651_v8 = vadd.f32 %v1585_v7, %v1459_v59  ;;  %v1642_v39 = vadd.f32 %v1558_v40, %v1450_v51  ;;  %v2286_v7 = vld [vmem:[#allocation3 + $0x40] sm:$0xff] }
 0x321   : > { %v2278_v26 = vld [vmem:[#allocation3] sm:$0xff] }
 0x322   : > { %1683 = vst.msk [vmem:[#allocation3 + $0x70] sm:$0xff] %vm305_vm3, %v1651_v8  ;;  %1674 = vst.msk [vmem:[#allocation3 + $0x28] sm:$0xff] %vm305_vm3, %v1642_v39  ;;  %3277 = vrcp.f32 %v2278_v26 }
 0x323   : > { %v1597_v61 = vpop.xlane.xlu1 %1596  ;;  %v1564_v15 = vpop.xlane.xlu0 %1563  ;;  %3279 = vpow2.f32 %v1027_v50  ;;  %v1429_v50 = vld [vmem:[#allocation3 + $0x80] sm:$0xff] }
 0x324   : > { %v1655_v14 = vadd.f32 %v1597_v61, %v1463_v33  ;;  %v1644_v41 = vadd.f32 %v1564_v15, %v1452_v55  ;;  %3281 = vrcp.f32 %v2280_v36  ;;  %v1709_v36 = vld [vmem:[#allocation4 + $0x40] sm:$0xff]  ;;  %v4956_v61 = vld [vmem:[#allocation62_spill] sm:$0xff] }
 0x325   : > { %v2281_v58 = vld [vmem:[#allocation3 + $0x18] sm:$0xff]  ;;  %v1461_v15 = vmul.f32 %v4956_v61, %v1429_v50 }
 0x326   : > { %1687 = vst.msk [vmem:[#allocation3 + $0x90] sm:$0xff] %vm305_vm3, %v1655_v14  ;;  %1676 = vst.msk [vmem:[#allocation3 + $0x38] sm:$0xff] %vm305_vm3, %v1644_v41  ;;  %3283 = vrcp.f32 %v2281_v58  ;;  %v1430_v14 = vld [vmem:[#allocation3 + $0x88] sm:$0xff] }
 0x327   : > { %v1603_v9 = vpop.xlane.xlu1 %1602  ;;  %v1570_v35 = vpop.xlane.xlu0 %1569  ;;  %3285 = vrcp.f32 %v2282_v53  ;;  %v1710_v58 = vld [vmem:[#allocation4 + $0x48] sm:$0xff] }
 0x328   : > { %v1657_v57 = vadd.f32 %v1603_v9, %v1465_v56  ;;  %v1646_v18 = vadd.f32 %v1570_v35, %v1454_v22  ;;  %v1901_v9 = vmul.f32 %v4462_v16, %v1709_v36 }
 0x329   : > { %v2283_v38 = vld [vmem:[#allocation3 + $0x28] sm:$0xff] }
 0x32a   : > { %1689 = vst.msk [vmem:[#allocation3 + $0xa0] sm:$0xff] %vm305_vm3, %v1657_v57  ;;  %1678 = vst.msk [vmem:[#allocation3 + $0x48] sm:$0xff] %vm305_vm3, %v1646_v18  ;;  %3287 = vrcp.f32 %v2283_v38  ;;  %v1462_v57 = vmul.f32 %v4162_v49, %v1430_v14  ;;  %v1902_v18 = vmul.f32 %v4470_v25, %v1710_v58 }
 0x32b   : > { %v1609_v20 = vpop.xlane.xlu1 %1608  ;;  %v1576_v11 = vpop.xlane.xlu0 %1575  ;;  %3289 = vrcp.f32 %v2284_v13  ;;  %v1432_v13 = vld [vmem:[#allocation3 + $0x98] sm:$0xff] }
 0x32c   : > { %v1659_v42 = vadd.f32 %v1609_v20, %v1467_v30  ;;  %v1648_v32 = vadd.f32 %v1576_v11, %v1456_v12  ;;  %v3278_v59 = vpop.eup %3277 }
 0x32d   : > { %v2285_v51 = vld [vmem:[#allocation3 + $0x38] sm:$0xff]  ;;  %2408 = vperm.xlu0 %3119, %v3278_v59   ;;  %v4547_v24 = vpop.eup %3279  ;;  %v1434_v59 = vld [vmem:[#allocation3 + $0xa8] sm:$0xff]  ;;  %v2296_v61 = vld [vmem:[#allocation3 + $0x90] sm:$0xff] }
 0x32e   : > { %1691 = vst.msk [vmem:[#allocation3 + $0xb0] sm:$0xff] %vm305_vm3, %v1659_v42  ;;  %1680 = vst.msk [vmem:[#allocation3 + $0x58] sm:$0xff] %vm305_vm3, %v1648_v32  ;;  %3291 = vrcp.f32 %v2285_v51  ;;  %v3282_v29 = vpop.eup %3281  ;;  %v1460_v44 = vmul.f32 %v4547_v24, %v1428_v47  ;;  %v1711_v42 = vld [vmem:[#allocation4 + $0x50] sm:$0xff]  ;;  %v1464_v32 = vmul.f32 %v4186_v60, %v1432_v13  ;;  %v1712_v51 = vld [vmem:[#allocation4 + $0x58] sm:$0xff] }
 0x32f   : > { %v1582_v40 = vpop.xlane.xlu0 %1581  ;;  %3293 = vrcp.f32 %v2286_v7  ;;  %v1904_v60 = vmul.f32 %v4480_v17, %v1712_v51 }
 0x330   : > { %v1650_v8 = vadd.f32 %v1582_v40, %v1458_v34  ;;  %v3284_v39 = vpop.eup %3283  ;;  %v1903_v40 = vmul.f32 %v4507_v52, %v1711_v42 }
 0x331   : > { %v2287_v28 = vld [vmem:[#allocation3 + $0x48] sm:$0xff]  ;;  %2418 = vperm.xlu0 %3119, %v3282_v29   ;;  %2423 = vperm.xlu1 %3120, %v3284_v39   ;;  %v3286_v26 = vpop.eup %3285 }
 0x332   : > { %1682 = vst.msk [vmem:[#allocation3 + $0x68] sm:$0xff] %vm305_vm3, %v1650_v8  ;;  %3295 = vrcp.f32 %v2287_v28  ;;  %v1466_v28 = vmul.f32 %v4216_v4, %v1434_v59  ;;  %v4960_v59 = vld [vmem:[#allocation8_spill] sm:$0xff] }
 0x333   : > { %v1588_v46 = vpop.xlane.xlu0 %1587 }
 0x334   : > { %v1652_v33 = vadd.f32 %v1588_v46, %v1460_v44  ;;  %v3288_v55 = vpop.eup %3287 }
 0x335   : > { %2428 = vperm.xlu0 %3119, %v3286_v26   ;;  %2433 = vperm.xlu1 %3120, %v3288_v55   ;;  %v3290_v41 = vpop.eup %3289  ;;  %v1436_v26 = vld [vmem:[#allocation3 + $0xb8] sm:$0xff] }
 0x336   : > { %1684 = vst.msk [vmem:[#allocation3 + $0x78] sm:$0xff] %vm305_vm3, %v1652_v33  ;;  %v1468_v36 = vmul.f32 %v4243_v2, %v1436_v26  ;;  %v2289_v42 = vld [vmem:[#allocation3 + $0x58] sm:$0xff]  ;;  %v1719_v26 = vld [vmem:[#allocation4 + $0x90] sm:$0xff] }
 0x337   : > { %v2991_v62 = vpop.f32.mrb[16].mxu1  ;;  %v1591_v27 = vpop.xlane.xlu0 %1590 }
 0x338   : > { %v2992_v56 = vpop.f32.mrb[17].mxu1  ;;  %v1653_v22 = vadd.f32 %v1591_v27, %v1461_v15  ;;  %v3292_v53 = vpop.eup %3291  ;;  %v4957_v27 = vsub.f32 %v4153_v3, %v4160_v63  ;;  %v2298_v3 = vld [vmem:[#allocation3 + $0xa0] sm:$0xff] }
 0x339   : > { %v2993_v35 = vadd.f32 %v2992_v56, %v2991_v62  ;;  %v2994_v45 = vpop.f32.mrb[18].mxu1  ;;  %2438 = vperm.xlu0 %3119, %v3290_v41   ;;  %2443 = vperm.xlu1 %3120, %v3292_v53   ;;  %v3294_v20 = vpop.eup %3293 }
 0x33a   : > { %1685 = vst.msk [vmem:[#allocation3 + $0x80] sm:$0xff] %vm305_vm3, %v1653_v22  ;;  %v2995_v54 = vpop.f32.mrb[19].mxu1  ;;  %v1053_v14 = vmul.f32 1.442695, %v4957_v27  ;;  %v1911_v27 = vmul.f32 %v4393_v21, %v1719_v26 }
 0x33b   : > { %v2190_v38 = vadd.f32 %v2993_v35, %v1901_v9  ;;  %v2996_v30 = vadd.f32 %v2995_v54, %v2994_v45  ;;  %v1594_v12 = vpop.xlane.xlu0 %1593  ;;  %v4958_v9 = vld [vmem:[#allocation63_spill] sm:$0xff] }
 0x33c   : > { %v1654_v11 = vadd.f32 %v1594_v12, %v1462_v57  ;;  %v3296_v31 = vpop.eup %3295  ;;  %v4959_v35 = vsub.f32 %v4157_v10, %v4958_v9  ;;  %v4963_v9 = vld [vmem:[#allocation50_spill] sm:$0xff] }
 0x33d   : > { %2222 = vst.msk [vmem:[#allocation4 + $0x40] sm:$0xff] %vm370_vm4, %v2190_v38  ;;  %v2191_v16 = vadd.f32 %v2996_v30, %v1902_v18  ;;  %2448 = vperm.xlu0 %3119, %v3294_v20   ;;  %2453 = vperm.xlu1 %3120, %v3296_v31   ;;  %v2288_v30 = vld [vmem:[#allocation3 + $0x50] sm:$0xff] }
 0x33e   : > { %1686 = vst.msk [vmem:[#allocation3 + $0x88] sm:$0xff] %vm305_vm3, %v1654_v11  ;;  %v1055_v45 = vmul.f32 1.442695, %v4959_v35  ;;  %v1717_v11 = vld [vmem:[#allocation4 + $0x80] sm:$0xff]  ;;  %v2300_v31 = vld [vmem:[#allocation3 + $0xb0] sm:$0xff] }
 0x33f   : > { %2223 = vst.msk [vmem:[#allocation4 + $0x48] sm:$0xff] %vm370_vm4, %v2191_v16  ;;  %v2997_v49 = vpop.f32.mrb[20].mxu1  ;;  %v1600_v25 = vpop.xlane.xlu0 %1599  ;;  %v1909_v51 = vmul.f32 %v4960_v59, %v1717_v11 }
 0x340   : > { %v2998_v34 = vpop.f32.mrb[21].mxu1  ;;  %v1656_v7 = vadd.f32 %v1600_v25, %v1464_v32 }
 0x341   : > { %v2294_v47 = vld [vmem:[#allocation3 + $0x80] sm:$0xff]  ;;  %v2999_v29 = vadd.f32 %v2998_v34, %v2997_v49  ;;  %v3000_v8 = vpop.f32.mrb[22].mxu1 }
 0x342   : > { %3297 = vrcp.f32 %v2294_v47  ;;  %1688 = vst.msk [vmem:[#allocation3 + $0x98] sm:$0xff] %vm305_vm3, %v1656_v7  ;;  %v3001_v39 = vpop.f32.mrb[23].mxu1 }
 0x343   : > { %v2192_v44 = vadd.f32 %v2999_v29, %v1903_v40  ;;  %v3002_v46 = vadd.f32 %v3001_v39, %v3000_v8  ;;  %v1606_v50 = vpop.xlane.xlu0 %1605 }
 0x344   : > { %v1658_v33 = vadd.f32 %v1606_v50, %v1466_v28 }
 0x345   : > { %v2295_v55 = vld [vmem:[#allocation3 + $0x88] sm:$0xff]  ;;  %2224 = vst.msk [vmem:[#allocation4 + $0x50] sm:$0xff] %vm370_vm4, %v2192_v44  ;;  %v2193_v52 = vadd.f32 %v3002_v46, %v1904_v60  ;;  %v4590_v44 = vpop.permute.xlu1 %1870  ;;  %v1437_v46 = vld [vmem:[#allocation3 + $0xc0] sm:$0xff] }
 0x346   : > { %3299 = vrcp.f32 %v2295_v55  ;;  %1690 = vst.msk [vmem:[#allocation3 + $0xa8] sm:$0xff] %vm305_vm3, %v1658_v33 }
 0x347   : > { %2225 = vst.msk [vmem:[#allocation4 + $0x58] sm:$0xff] %vm370_vm4, %v2193_v52  ;;  %v3003_v4 = vpop.f32.mrb[24].mxu1  ;;  %v1612_v15 = vpop.xlane.xlu0 %1611  ;;  %3301 = vrcp.f32 %v2296_v61  ;;  %v4962_v52 = vld [vmem:[#allocation7_spill] sm:$0xff] }
 0x348   : > { %v3004_v17 = vpop.f32.mrb[25].mxu1  ;;  %v1660_v62 = vadd.f32 %v1612_v15, %v1468_v36  ;;  %3303 = vpow2.f32 %v1053_v14  ;;  %v1469_v36 = vmul.f32 %v4962_v52, %v1437_v46  ;;  %v1724_v46 = vld [vmem:[#allocation4 + $0xb8] sm:$0xff] }
 0x349   : > { %v4572_v41 = vadd.f32 %v3004_v17, %v3003_v4  ;;  %v3006_v58 = vpop.f32.mrb[26].mxu1  ;;  %v2297_v22 = vld [vmem:[#allocation3 + $0x98] sm:$0xff] }
 0x34a   : > { %1692 = vst.msk [vmem:[#allocation3 + $0xb8] sm:$0xff] %vm305_vm3, %v1660_v62  ;;  %v3007_v56 = vpop.f32.mrb[27].mxu1  ;;  %3305 = vrcp.f32 %v2297_v22  ;;  %v1720_v4 = vld [vmem:[#allocation4 + $0x98] sm:$0xff]  ;;  %v1439_v62 = vld [vmem:[#allocation3 + $0xd0] sm:$0xff] }
 0x34b   : > { %v4575_v2 = vadd.f32 %v3007_v56, %v3006_v58  ;;  %3307 = vpow2.f32 %v1055_v45  ;;  %v1912_v35 = vmul.f32 %v4963_v9, %v1720_v4  ;;  %v1438_v9 = vld [vmem:[#allocation3 + $0xc8] sm:$0xff] }
 0x34c   : > { %v3298_v53 = vpop.eup %3297  ;;  %3309 = vrcp.f32 %v2298_v3 }
 0x34d   : > { %2488 = vperm.xlu0 %3119, %v3298_v53   ;;  %v2299_v13 = vld [vmem:[#allocation3 + $0xa8] sm:$0xff]  ;;  %3311 = vrcp.f32 %v2288_v30 }
 0x34e   : > { %3313 = vrcp.f32 %v2299_v13 }
 0x34f   : > { %v3009_v63 = vpop.f32.mrb[28].mxu1  ;;  %3315 = vrcp.f32 %v2300_v31  ;;  %v1722_v31 = vld [vmem:[#allocation4 + $0xa8] sm:$0xff] }
 0x350   : > { %v3300_v54 = vpop.eup %3299  ;;  %v3010_v57 = vpop.f32.mrb[29].mxu1  ;;  %3317 = vrcp.f32 %v2289_v42 }
 0x351   : > { %v4580_v18 = vadd.f32 %v3010_v57, %v3009_v63  ;;  %v3012_v38 = vpop.f32.mrb[30].mxu1  ;;  %1795 = vperm.xlu0 %3119, %v4512_v5   ;;  %2493 = vperm.xlu1 %3120, %v3300_v54   ;;  %v3302_v10 = vpop.eup %3301  ;;  %v1718_v5 = vld [vmem:[#allocation4 + $0x88] sm:$0xff]  ;;  %v2301_v8 = vld [vmem:[#allocation3 + $0xb8] sm:$0xff]  ;;  %v1471_v63 = vmul.f32 %v4457_v0, %v1439_v62 }
 0x352   : > { %v3013_v12 = vpop.f32.mrb[31].mxu1  ;;  %v3304_v16 = vpop.eup %3303  ;;  %3319 = vrcp.f32 %v2301_v8 }
 0x353   : > { %v4583_v20 = vadd.f32 %v3013_v12, %v3012_v38  ;;  %v1441_v38 = vld [vmem:[#allocation3 + $0xe0] sm:$0xff] }
 0x354   : > { %v3306_v49 = vpop.eup %3305  ;;  %v1721_v12 = vld [vmem:[#allocation4 + $0xa0] sm:$0xff] }
 0x355   : > { %2498 = vperm.xlu0 %3119, %v3302_v10   ;;  %1800 = vperm.xlu1 %3120, %v4542_v19   ;;  %v4587_v47 = vpop.eup %3307  ;;  %v4961_v19 = vld [vmem:[#allocation49_spill] sm:$0xff]  ;;  %v1473_v10 = vmul.f32 %v3304_v16, %v1441_v38 }
 0x356   : > { %v1910_v29 = vmul.f32 %v4961_v19, %v1718_v5  ;;  %v3310_v60 = vpop.eup %3309 }
 0x357   : > { %v3015_v32 = vpop.f32.mrb[32].mxu1  ;;  %v3312_v33 = vpop.eup %3311 }
 0x358   : > { %v3016_v25 = vpop.f32.mrb[33].mxu1  ;;  %v3314_v61 = vpop.eup %3313 }
 0x359   : > { %v3017_v34 = vadd.f32 %v3016_v25, %v3015_v32  ;;  %v3018_v7 = vpop.f32.mrb[34].mxu1  ;;  %1875 = vperm.xlu0 %3119, %v3304_v16   ;;  %2503 = vperm.xlu1 %3120, %v3306_v49   ;;  %v3316_v53 = vpop.eup %3315  ;;  %v4964_v32 = vld [vmem:[#allocation9_spill] sm:$0xff]  ;;  %v1914_v16 = vmul.f32 %v4415_v48, %v1722_v31  ;;  %v2292_v31 = vld [vmem:[#allocation3 + $0x70] sm:$0xff] }
 0x35a   : > { %v3019_v40 = vpop.f32.mrb[35].mxu1  ;;  %v3318_v54 = vpop.eup %3317  ;;  %v1913_v49 = vmul.f32 %v4964_v32, %v1721_v12 }
 0x35b   : > { %v2198_v39 = vadd.f32 %v3017_v34, %v1909_v51  ;;  %v3020_v28 = vadd.f32 %v3019_v40, %v3018_v7  ;;  %v4965_v51 = vld [vmem:[#allocation5_spill] sm:$0xff]  ;;  %v4966_v34 = vld [vmem:[#allocation6_spill] sm:$0xff] }
 0x35c   : > { %v3320_v11 = vpop.eup %3319  ;;  %v4967_v7 = vsub.f32 %v4965_v51, %v4966_v34 }
 0x35d   : > { %2230 = vst.msk [vmem:[#allocation4 + $0x80] sm:$0xff] %vm370_vm4, %v2198_v39  ;;  %v2199_v50 = vadd.f32 %v3020_v28, %v1910_v29  ;;  %2508 = vperm.xlu0 %3119, %v3310_v60   ;;  %1880 = vperm.xlu1 %3120, %v4587_v47  }
 0x35e   : > { %v1057_v40 = vmul.f32 1.442695, %v4967_v7  ;;  %v1442_v7 = vld [vmem:[#allocation3 + $0xe8] sm:$0xff] }
 0x35f   : > { %2231 = vst.msk [vmem:[#allocation4 + $0x88] sm:$0xff] %vm370_vm4, %v2199_v50  ;;  %v3021_v55 = vpop.f32.mrb[36].mxu1 }
 0x360   : > { %v3022_v15 = vpop.f32.mrb[37].mxu1 }
 0x361   : > { %v1615_v17 = vpop.xlane.xlu1 %1614  ;;  %v3023_v14 = vadd.f32 %v3022_v15, %v3021_v55  ;;  %v3024_v58 = vpop.f32.mrb[38].mxu1  ;;  %2458 = vperm.xlu0 %3119, %v3312_v33   ;;  %2513 = vperm.xlu1 %3120, %v3314_v61   ;;  %v4968_v33 = vld [vmem:[#allocation10_spill] sm:$0xff]  ;;  %v1916_v61 = vmul.f32 %v4460_v6, %v1724_v46  ;;  %v1474_v46 = vmul.f32 %v4587_v47, %v1442_v7  ;;  %v2382_v7 = vld [vmem:[#allocation4 + $0x40] sm:$0xff] }
 0x362   : > { %v1661_v56 = vadd.f32 %v1615_v17, %v1469_v36  ;;  %v3025_v22 = vpop.f32.mrb[39].mxu1  ;;  %v2290_v17 = vld [vmem:[#allocation3 + $0x60] sm:$0xff]  ;;  %v1726_v6 = vld [vmem:[#allocation4 + $0xc8] sm:$0xff] }
 0x363   : > { %v2200_v45 = vadd.f32 %v3023_v14, %v1911_v27  ;;  %v3026_v3 = vadd.f32 %v3025_v22, %v3024_v58  ;;  %v4969_v27 = vld [vmem:[#allocation64_spill] sm:$0xff]  ;;  %v4970_v14 = vld [vmem:[#allocation65_spill] sm:$0xff] }
 0x364   : > { %1693 = vst.msk [vmem:[#allocation3 + $0xc0] sm:$0xff] %vm305_vm3, %v1661_v56  ;;  %v4971_v58 = vsub.f32 %v4969_v27, %v4970_v14  ;;  %v1725_v22 = vld [vmem:[#allocation4 + $0xc0] sm:$0xff] }
 0x365   : > { %v1621_v57 = vpop.xlane.xlu1 %1620  ;;  %2232 = vst.msk [vmem:[#allocation4 + $0x90] sm:$0xff] %vm370_vm4, %v2200_v45  ;;  %v2201_v21 = vadd.f32 %v3026_v3, %v1912_v35  ;;  %2518 = vperm.xlu0 %3119, %v3316_v53   ;;  %2463 = vperm.xlu1 %3120, %v3318_v54   ;;  %v1866_v35 = vpop.permute.xlu0 %1865  ;;  %v1917_v54 = vmul.f32 %v4500_v37, %v1725_v22 }
 0x366   : > { %v1663_v30 = vadd.f32 %v1621_v57, %v1471_v63  ;;  %v1059_v56 = vmul.f32 1.442695, %v4971_v58 }
 0x367   : > { %2233 = vst.msk [vmem:[#allocation4 + $0x98] sm:$0xff] %vm370_vm4, %v2201_v21  ;;  %v3027_v13 = vpop.f32.mrb[40].mxu1 }
 0x368   : > { %1695 = vst.msk [vmem:[#allocation3 + $0xd0] sm:$0xff] %vm305_vm3, %v1663_v30  ;;  %v3028_v42 = vpop.f32.mrb[41].mxu1  ;;  %v4972_v30 = vld [vmem:[#allocation66_spill] sm:$0xff] }
 0x369   : > { %v1627_v0 = vpop.xlane.xlu1 %1626  ;;  %v3029_v5 = vadd.f32 %v3028_v42, %v3027_v13  ;;  %v3030_v25 = vpop.f32.mrb[42].mxu1  ;;  %1805 = vperm.xlu0 %3119, %v4518_v1   ;;  %2523 = vperm.xlu1 %3120, %v3320_v11   ;;  %v1723_v1 = vld [vmem:[#allocation4 + $0xb0] sm:$0xff]  ;;  %v1470_v12 = vmul.f32 %v4972_v30, %v1438_v9  ;;  %v1918_v13 = vmul.f32 %v4475_v43, %v1726_v6  ;;  %v2291_v9 = vld [vmem:[#allocation3 + $0x68] sm:$0xff] }
 0x36a   : > { %v1665_v59 = vadd.f32 %v1627_v0, %v1473_v10  ;;  %v3031_v29 = vpop.f32.mrb[43].mxu1  ;;  %v1915_v48 = vmul.f32 %v4968_v33, %v1723_v1  ;;  %v1440_v0 = vld [vmem:[#allocation3 + $0xd8] sm:$0xff] }
 0x36b   : > { %v2302_v19 = vld [vmem:[#allocation3 + $0xc0] sm:$0xff]  ;;  %v2202_v8 = vadd.f32 %v3029_v5, %v1913_v49  ;;  %v3032_v39 = vadd.f32 %v3031_v29, %v3030_v25  ;;  %v1727_v5 = vld [vmem:[#allocation4 + $0xd0] sm:$0xff]  ;;  %v1472_v43 = vmul.f32 %v4448_v23, %v1440_v0  ;;  %v1444_v33 = vld [vmem:[#allocation3 + $0xf8] sm:$0xff] }
 0x36c   : > { %3321 = vrcp.f32 %v2302_v19  ;;  %1697 = vst.msk [vmem:[#allocation3 + $0xe0] sm:$0xff] %vm305_vm3, %v1665_v59  ;;  %v1728_v59 = vld [vmem:[#allocation4 + $0xd8] sm:$0xff]  ;;  %v1919_v19 = vmul.f32 %v1866_v35, %v1727_v5  ;;  %v1443_v23 = vld [vmem:[#allocation3 + $0xf0] sm:$0xff] }
 0x36d   : > { %2234 = vst.msk [vmem:[#allocation4 + $0xa0] sm:$0xff] %vm370_vm4, %v2202_v8  ;;  %v2203_v28 = vadd.f32 %v3032_v39, %v1914_v16  ;;  %1810 = vperm.xlu1 %3120, %v4547_v24   ;;  %3323 = vpow2.f32 %v1057_v40  ;;  %v2621_v0 = vld [vmem:[%s4739_s4 + $0x18] sm:$0xff] }
 0x36f   : > { %2235 = vst.msk [vmem:[#allocation4 + $0xa8] sm:$0xff] %vm370_vm4, %v2203_v28  ;;  %v3033_v60 = vpop.f32.mrb[44].mxu1  ;;  %v2304_v50 = vld [vmem:[#allocation3 + $0xd0] sm:$0xff]  ;;  %v1920_v28 = vmul.f32 %v4590_v44, %v1728_v59 }
 0x370   : > { %v3034_v26 = vpop.f32.mrb[45].mxu1  ;;  %3325 = vrcp.f32 %v2304_v50 }
 0x371   : > { %v3035_v55 = vadd.f32 %v3034_v26, %v3033_v60  ;;  %v3036_v52 = vpop.f32.mrb[46].mxu1  ;;  %3327 = vrcp.f32 %v2290_v17 }
 0x372   : > { %v3037_v36 = vpop.f32.mrb[47].mxu1  ;;  %3329 = vpow2.f32 %v1059_v56 }
 0x373   : > { %v2204_v4 = vadd.f32 %v3035_v55, %v1915_v48  ;;  %v3038_v15 = vadd.f32 %v3037_v36, %v3036_v52  ;;  %v2306_v45 = vld [vmem:[#allocation3 + $0xe0] sm:$0xff] }
 0x374   : > { %3331 = vrcp.f32 %v2306_v45 }
 0x375   : > { %2236 = vst.msk [vmem:[#allocation4 + $0xb0] sm:$0xff] %vm370_vm4, %v2204_v4  ;;  %v2205_v62 = vadd.f32 %v3038_v15, %v1916_v61  ;;  %3333 = vrcp.f32 %v2292_v31 }
 0x376   : > { %v3322_v24 = vpop.eup %3321 }
 0x377   : > { %2528 = vperm.xlu0 %3119, %v3322_v24   ;;  %2237 = vst.msk [vmem:[#allocation4 + $0xb8] sm:$0xff] %vm370_vm4, %v2205_v62  ;;  %v3039_v53 = vpop.f32.mrb[48].mxu1  ;;  %v3324_v63 = vpop.eup %3323 }
 0x378   : > { %v3040_v3 = vpop.f32.mrb[49].mxu1  ;;  %v1475_v61 = vmul.f32 %v3324_v63, %v1443_v23 }
 0x379   : > { %v3041_v57 = vadd.f32 %v3040_v3, %v3039_v53  ;;  %v3042_v38 = vpop.f32.mrb[50].mxu1  ;;  %v2293_v3 = vld [vmem:[#allocation3 + $0x78] sm:$0xff] }
 0x37a   : > { %v3043_v21 = vpop.f32.mrb[51].mxu1  ;;  %v3326_v32 = vpop.eup %3325 }
 0x37b   : > { %1885 = vperm.xlu0 %3119, %v3324_v63   ;;  %v2206_v10 = vadd.f32 %v3041_v57, %v1917_v54  ;;  %v3044_v11 = vadd.f32 %v3043_v21, %v3042_v38  ;;  %v3328_v40 = vpop.eup %3327  ;;  %v2618_v21 = vld [vmem:[%s4739_s4] sm:$0xff] }
 0x37c   : > { %v1618_v42 = vpop.xlane.xlu0 %1617  ;;  %v3330_v50 = vpop.eup %3329 }
 0x37d   : > { %2238 = vst.msk [vmem:[#allocation4 + $0xc0] sm:$0xff] %vm370_vm4, %v2206_v10  ;;  %v2207_v49 = vadd.f32 %v3044_v11, %v1918_v13  ;;  %v1662_v37 = vadd.f32 %v1618_v42, %v1470_v12  ;;  %v1476_v47 = vmul.f32 %v3330_v50, %v1444_v33  ;;  %v2620_v12 = vld [vmem:[%s4739_s4 + $0x10] sm:$0xff]  ;;  %v2619_v11 = vld [vmem:[%s4739_s4 + $0x8] sm:$0xff] }
 0x37e   : > { %v3332_v48 = vpop.eup %3331 }
 0x37f   : > { %2538 = vperm.xlu0 %3119, %v3326_v32   ;;  %2239 = vst.msk [vmem:[#allocation4 + $0xc8] sm:$0xff] %vm370_vm4, %v2207_v49  ;;  %v3045_v25 = vpop.f32.mrb[52].mxu1  ;;  %v3334_v62 = vpop.eup %3333 }
 0x380   : > { %1694 = vst.msk [vmem:[#allocation3 + $0xc8] sm:$0xff] %vm305_vm3, %v1662_v37  ;;  %v3046_v51 = vpop.f32.mrb[53].mxu1  ;;  %v1624_v34 = vpop.xlane.xlu0 %1623  ;;  %v4654_v37 = vld [vmem:[%s4738_s3] sm:$0xff]  }
 0x381   : > { %v3047_v29 = vadd.f32 %v3046_v51, %v3045_v25  ;;  %v3048_v16 = vpop.f32.mrb[54].mxu1  ;;  %v1664_v8 = vadd.f32 %v1624_v34, %v1472_v43  ;;  %3079 = vmatprep.mubr.msk.bf16.mxu0 %vm370_vm4, %v4654_v37  ;;  %v2383_v51 = vld [vmem:[#allocation4 + $0x48] sm:$0xff] }
 0x382   : > { %v3049_v39 = vpop.f32.mrb[55].mxu1 }
 0x383   : > { %2468 = vperm.xlu0 %3119, %v3328_v40   ;;  %v2208_v1 = vadd.f32 %v3047_v29, %v1919_v19  ;;  %1696 = vst.msk [vmem:[#allocation3 + $0xd8] sm:$0xff] %vm305_vm3, %v1664_v8  ;;  %v3050_v60 = vadd.f32 %v3049_v39, %v3048_v16 }
 0x384   : > { %v1630_v26 = vpop.xlane.xlu0 %1629 }
 0x385   : > { %2240 = vst.msk [vmem:[#allocation4 + $0xd0] sm:$0xff] %vm370_vm4, %v2208_v1  ;;  %v2209_v55 = vadd.f32 %v3050_v60, %v1920_v28  ;;  %v1666_v52 = vadd.f32 %v1630_v26, %v1474_v46  ;;  %v2374_v28 = vld [vmem:[#allocation4] sm:$0xff]  ;;  %v2375_v26 = vld [vmem:[#allocation4 + $0x8] sm:$0xff] }
 0x387   : > { %v2303_v36 = vld [vmem:[#allocation3 + $0xc8] sm:$0xff]  ;;  %2548 = vperm.xlu0 %3119, %v3332_v48   ;;  %2241 = vst.msk [vmem:[#allocation4 + $0xd8] sm:$0xff] %vm370_vm4, %v2209_v55  ;;  %v3051_v44 = vpop.f32.mrb[56].mxu1  ;;  %v1633_v4 = vpop.xlane.xlu1 %1632  ;;  %v1713_v48 = vld [vmem:[#allocation4 + $0x60] sm:$0xff] }
 0x388   : > { %3335 = vrcp.f32 %v2303_v36  ;;  %1698 = vst.msk [vmem:[#allocation3 + $0xe8] sm:$0xff] %vm305_vm3, %v1666_v52  ;;  %v1667_v15 = vadd.f32 %v1633_v4, %v1475_v61  ;;  %v3052_v17 = vpop.f32.mrb[57].mxu1  ;;  %v1636_v24 = vpop.xlane.xlu0 %1635  ;;  %v2390_v52 = vld [vmem:[#allocation4 + $0x80] sm:$0xff]  ;;  %v2391_v36 = vld [vmem:[#allocation4 + $0x88] sm:$0xff] }
 0x389   : > { %v4633_v27 = vadd.f32 %v3052_v17, %v3051_v44  ;;  %v3054_v14 = vpop.f32.mrb[58].mxu1  ;;  %v1668_v58 = vadd.f32 %v1636_v24, %v1476_v47  ;;  %v1714_v24 = vld [vmem:[#allocation4 + $0x68] sm:$0xff] }
 0x38a   : > { %1699 = vst.msk [vmem:[#allocation3 + $0xf0] sm:$0xff] %vm305_vm3, %v1667_v15  ;;  %v3055_v56 = vpop.f32.mrb[59].mxu1  ;;  %v2305_v53 = vld [vmem:[#allocation3 + $0xd8] sm:$0xff] }
 0x38b   : > { %2478 = vperm.xlu0 %3119, %v3334_v62   ;;  %1700 = vst.msk [vmem:[#allocation3 + $0xf8] sm:$0xff] %vm305_vm3, %v1668_v58  ;;  %v4637_v22 = vadd.f32 %v3055_v56, %v3054_v14  ;;  %3337 = vrcp.f32 %v2305_v53  ;;  %v2377_v58 = vld [vmem:[#allocation4 + $0x18] sm:$0xff]  ;;  %v2376_v56 = vld [vmem:[#allocation4 + $0x10] sm:$0xff] }
 0x38f   : > { %v2307_v45 = vld [vmem:[#allocation3 + $0xe8] sm:$0xff] }
 0x391   : > { %v2308_v35 = vld [vmem:[#allocation3 + $0xf0] sm:$0xff] }
 0x392   : > { %v3336_v6 = vpop.eup %3335  ;;  %3339 = vrcp.f32 %v2308_v35  ;;  %v2309_v57 = vld [vmem:[#allocation3 + $0xf8] sm:$0xff] }
 0x393   : > { %2533 = vperm.xlu1 %3120, %v3336_v6   ;;  %3341 = vrcp.f32 %v2291_v9 }
 0x394   : > { %3343 = vrcp.f32 %v2307_v45 }
 0x395   : > { %v3338_v63 = vpop.eup %3337  ;;  %3345 = vrcp.f32 %v2293_v3 }
 0x396   : > { %3347 = vrcp.f32 %v2309_v57  ;;  %v2392_v57 = vld [vmem:[#allocation4 + $0x90] sm:$0xff] }
 0x397   : > { %1890 = vperm.xlu1 %3120, %v3330_v50  }
 0x399   : > { %v2414_v31 = vpop.permute.xlu1 %2413 }
 0x39a   : > { %v2567_v55 = vmul.f32 %v2414_v31, %v2375_v26  ;;  %v2380_v26 = vld [vmem:[#allocation4 + $0x30] sm:$0xff] }
 0x39b   : > { %2543 = vperm.xlu1 %3120, %v3338_v63   ;;  %v1729_v63 = vld [vmem:[#allocation4 + $0xe0] sm:$0xff] }
 0x39c   : > { %v3340_v54 = vpop.eup %3339 }
 0x39d   : > { %v3342_v38 = vpop.eup %3341  ;;  %2558 = vperm.xlu0 %3119, %v3340_v54  }
 0x39e   : > { %v3344_v30 = vpop.eup %3343 }
 0x39f   : > { %2473 = vperm.xlu1 %3120, %v3342_v38   ;;  %v3346_v13 = vpop.eup %3345  ;;  %v2393_v38 = vld [vmem:[#allocation4 + $0x98] sm:$0xff] }
 0x3a0   : > { %v3348_v10 = vpop.eup %3347 }
 0x3a1   : > { %2624 = vperm.xlu0 %3119, %v2618_v21  }
 0x3a3   : > { %2553 = vperm.xlu1 %3120, %v3344_v30  }
 0x3a5   : > { %2634 = vperm.xlu0 %3119, %v2620_v12  }
 0x3a7   : > { %2483 = vperm.xlu1 %3120, %v3346_v13  }
 0x3ab   : > { %2563 = vperm.xlu1 %3120, %v3348_v10  }
 0x3ac   : > { %v2409_v42 = vpop.permute.xlu0 %2408 }
 0x3ad   : > { %v2566_v23 = vmul.f32 %v2409_v42, %v2374_v28 }
 0x3af   : > { %2629 = vperm.xlu1 %3120, %v2619_v11   ;;  %v2598_v4 = vpack.c.bf16 %v2567_v55, %v2566_v23  ;;  %v1730_v11 = vld [vmem:[#allocation4 + $0xe8] sm:$0xff] }
 0x3b0   : > { %v2424_v32 = vpop.permute.xlu1 %2423  ;;  %v2419_v49 = vpop.permute.xlu0 %2418 }
 0x3b1   : > { %v2569_v6 = vmul.f32 %v2424_v32, %v2377_v58  ;;  %v2568_v35 = vmul.f32 %v2419_v49, %v2376_v56  ;;  %v2659_v3 = vsel %vm370_vm4, %v2598_v4, 0  ;;  %v2378_v32 = vld [vmem:[#allocation4 + $0x20] sm:$0xff]  ;;  %v2397_v4 = vld [vmem:[#allocation4 + $0xb8] sm:$0xff] }
 0x3b2   : > { %v1716_v58 = vld [vmem:[#allocation4 + $0x78] sm:$0xff] }
 0x3b3   : > { %2639 = vperm.xlu1 %3120, %v2621_v0   ;;  %v2599_v30 = vpack.c.bf16 %v2569_v6, %v2568_v35  ;;  %v2379_v0 = vld [vmem:[#allocation4 + $0x28] sm:$0xff] }
 0x3b4   : > { %v4658_v5 = vpop.permute.xlu1 %2433  ;;  %v4660_v25 = vpop.permute.xlu0 %2428 }
 0x3b8   : > { %v4662_v43 = vpop.permute.xlu1 %2443  ;;  %v4664_v59 = vpop.permute.xlu0 %2438 }
 0x3bc   : > { %v2454_v34 = vpop.permute.xlu1 %2453  ;;  %v2449_v40 = vpop.permute.xlu0 %2448 }
 0x3bd   : > { %v4666_v19 = vmul.f32 %v2454_v34, %v2383_v51  ;;  %v4668_v29 = vmul.f32 %v2449_v40, %v2382_v7  ;;  %v2570_v34 = vmul.f32 %v4660_v25, %v2378_v32  ;;  %v2662_v40 = vsel %vm370_vm4, %v2599_v30, 0 }
 0x3bf   : > { %v2602_v16 = vpack.c.bf16 %v4666_v19, %v4668_v29 }
 0x3ca   : > { %v3057_v8 = vpop.f32.mrb[60].mxu1 }
 0x3cb   : > { %v3058_v39 = vpop.f32.mrb[61].mxu1 }
 0x3cc   : > { %v4672_v1 = vadd.f32 %v3058_v39, %v3057_v8  ;;  %v3060_v60 = vpop.f32.mrb[62].mxu1  ;;  %v2489_v46 = vpop.permute.xlu0 %2488  ;;  %v2394_v39 = vld [vmem:[#allocation4 + $0xa0] sm:$0xff] }
 0x3cd   : > { %v3061_v50 = vpop.f32.mrb[63].mxu1  ;;  %v2582_v47 = vmul.f32 %v2489_v46, %v2390_v52 }
 0x3ce   : > { %v4674_v33 = vadd.f32 %v3061_v50, %v3060_v60  ;;  %v2381_v50 = vld [vmem:[#allocation4 + $0x38] sm:$0xff] }
 0x3cf   : > { %v2573_v52 = vmul.f32 %v4662_v43, %v2381_v50 }
 0x3d0   : > { %v2494_v61 = vpop.permute.xlu1 %2493  ;;  %v1796_v44 = vpop.permute.xlu0 %1795 }
 0x3d1   : > { %v2583_v15 = vmul.f32 %v2494_v61, %v2391_v36  ;;  %v1905_v17 = vmul.f32 %v1796_v44, %v1713_v48  ;;  %v2572_v36 = vmul.f32 %v4664_v59, %v2380_v26  ;;  %v1715_v61 = vld [vmem:[#allocation4 + $0x70] sm:$0xff] }
 0x3d2   : > { %v2396_v44 = vld [vmem:[#allocation4 + $0xb0] sm:$0xff] }
 0x3d3   : > { %v2606_v62 = vpack.c.bf16 %v2583_v15, %v2582_v47  ;;  %v2194_v14 = vadd.f32 %v4572_v41, %v1905_v17  ;;  %v2601_v17 = vpack.c.bf16 %v2573_v52, %v2572_v36 }
 0x3d4   : > { %v1801_v53 = vpop.permute.xlu1 %1800  ;;  %v2499_v9 = vpop.permute.xlu0 %2498 }
 0x3d5   : > { %2226 = vst.msk [vmem:[#allocation4 + $0x60] sm:$0xff] %vm370_vm4, %v2194_v14  ;;  %v1906_v45 = vmul.f32 %v1801_v53, %v1714_v24  ;;  %3083 = vmatprep.subr.msk.bf16.mxu0 %vm370_vm4, %v2606_v62  ;;  %v2584_v12 = vmul.f32 %v2499_v9, %v2392_v57  ;;  %v2668_v9 = vsel %vm370_vm4, %v2601_v17, 0 }
 0x3d6   : > { %3064 = vmatpush3.bf16.xpose.msra.mxu0 %v2659_v3 }
 0x3d7   : > { %v2195_v54 = vadd.f32 %v4575_v2, %v1906_v45  ;;  %v2571_v2 = vmul.f32 %v4658_v5, %v2379_v0  ;;  %v1731_v45 = vld [vmem:[#allocation4 + $0xf0] sm:$0xff] }
 0x3d8   : > { %v2504_v41 = vpop.permute.xlu1 %2503  ;;  %v1876_v21 = vpop.permute.xlu0 %1875 }
 0x3d9   : > { %2227 = vst.msk [vmem:[#allocation4 + $0x68] sm:$0xff] %vm370_vm4, %v2195_v54  ;;  %v2585_v13 = vmul.f32 %v2504_v41, %v2393_v38  ;;  %v1921_v10 = vmul.f32 %v1876_v21, %v1729_v63  ;;  %v2600_v46 = vpack.c.bf16 %v2571_v2, %v2570_v34  ;;  %v2399_v38 = vld [vmem:[#allocation4 + $0xc8] sm:$0xff]  ;;  %v2401_v2 = vld [vmem:[#allocation4 + $0xd8] sm:$0xff] }
 0x3db   : > { %v2607_v31 = vpack.c.bf16 %v2585_v13, %v2584_v12  ;;  %v2210_v42 = vadd.f32 %v4633_v27, %v1921_v10  ;;  %v2395_v27 = vld [vmem:[#allocation4 + $0xa8] sm:$0xff]  ;;  %v1732_v12 = vld [vmem:[#allocation4 + $0xf8] sm:$0xff] }
 0x3dc   : > { %v1881_v49 = vpop.permute.xlu1 %1880  ;;  %v2509_v51 = vpop.permute.xlu0 %2508  ;;  %v2385_v10 = vld [vmem:[#allocation4 + $0x58] sm:$0xff] }
 0x3dd   : > { %2242 = vst.msk [vmem:[#allocation4 + $0xe0] sm:$0xff] %vm370_vm4, %v2210_v42  ;;  %v1922_v7 = vmul.f32 %v1881_v49, %v1730_v11  ;;  %3084 = vmatprep.subr.msk.bf16.mxu0 %vm370_vm4, %v2607_v31  ;;  %v2586_v5 = vmul.f32 %v2509_v51, %v2394_v39  ;;  %v2384_v42 = vld [vmem:[#allocation4 + $0x50] sm:$0xff] }
 0x3de   : > { %3066 = vmatpush3.bf16.xpose.msra.mxu0 %v2662_v40  ;;  %v2400_v51 = vld [vmem:[#allocation4 + $0xd0] sm:$0xff] }
 0x3df   : > { %v2211_v8 = vadd.f32 %v4637_v22, %v1922_v7  ;;  %v2665_v22 = vsel %vm370_vm4, %v2600_v46, 0 }
 0x3e0   : > { %v2514_v28 = vpop.permute.xlu1 %2513  ;;  %v2459_v60 = vpop.permute.xlu0 %2458 }
 0x3e1   : > { %2243 = vst.msk [vmem:[#allocation4 + $0xe8] sm:$0xff] %vm370_vm4, %v2211_v8  ;;  %v2587_v23 = vmul.f32 %v2514_v28, %v2395_v27  ;;  %v2576_v32 = vmul.f32 %v2459_v60, %v2384_v42  ;;  %v2387_v28 = vld [vmem:[#allocation4 + $0x68] sm:$0xff]  ;;  %v2386_v60 = vld [vmem:[#allocation4 + $0x60] sm:$0xff] }
 0x3e3   : > { %v2608_v25 = vpack.c.bf16 %v2587_v23, %v2586_v5 }
 0x3e4   : > { %v2464_v48 = vpop.permute.xlu1 %2463  ;;  %v2519_v55 = vpop.permute.xlu0 %2518  ;;  %v2402_v46 = vld [vmem:[#allocation4 + $0xe0] sm:$0xff] }
 0x3e5   : > { %3085 = vmatprep.subr.msk.bf16.mxu0 %vm370_vm4, %v2608_v25  ;;  %v2588_v24 = vmul.f32 %v2519_v55, %v2396_v44  ;;  %v2577_v11 = vmul.f32 %v2464_v48, %v2385_v10 }
 0x3e6   : > { %3068 = vmatpush3.bf16.xpose.msra.mxu0 %v2665_v22 }
 0x3e7   : > { %v2603_v7 = vpack.c.bf16 %v2577_v11, %v2576_v32 }
 0x3e8   : > { %v2524_v47 = vpop.permute.xlu1 %2523  ;;  %v1806_v15 = vpop.permute.xlu0 %1805  ;;  %v2403_v5 = vld [vmem:[#allocation4 + $0xe8] sm:$0xff] }
 0x3e9   : > { %v2589_v62 = vmul.f32 %v2524_v47, %v2397_v4  ;;  %v1907_v14 = vmul.f32 %v1806_v15, %v1715_v61 }
 0x3eb   : > { %v2609_v56 = vpack.c.bf16 %v2589_v62, %v2588_v24  ;;  %v2196_v43 = vadd.f32 %v4580_v18, %v1907_v14  ;;  %v2398_v18 = vld [vmem:[#allocation4 + $0xc0] sm:$0xff] }
 0x3ec   : > { %v1811_v53 = vpop.permute.xlu1 %1810 }
 0x3ed   : > { %2228 = vst.msk [vmem:[#allocation4 + $0x70] sm:$0xff] %vm370_vm4, %v2196_v43  ;;  %v1908_v59 = vmul.f32 %v1811_v53, %v1716_v58  ;;  %3086 = vmatprep.subr.msk.bf16.mxu0 %vm370_vm4, %v2609_v56  ;;  %v3156_v53 = vld [vmem:[%s4738_s3 + $0x8] sm:$0xff]  }
 0x3ee   : > { %3070 = vmatpush3.bf16.xpose.msra.mxu0 %v2668_v9 }
 0x3ef   : > { %v2197_v6 = vadd.f32 %v4583_v20, %v1908_v59 }
 0x3f1   : > { %2229 = vst.msk [vmem:[#allocation4 + $0x78] sm:$0xff] %vm370_vm4, %v2197_v6 }
 0x3f4   : > { %v2388_v44 = vld [vmem:[#allocation4 + $0x70] sm:$0xff] }
 0x3f6   : > { %v2529_v35 = vpop.permute.xlu0 %2528 }
 0x3f7   : > { %v2590_v21 = vmul.f32 %v2529_v35, %v2398_v18 }
 0x3f8   : > { %v2389_v52 = vld [vmem:[#allocation4 + $0x78] sm:$0xff] }
 0x3fa   : > { %v1886_v3 = vpop.permute.xlu0 %1885 }
 0x3fb   : > { %v1923_v63 = vmul.f32 %v1886_v3, %v1731_v45 }
 0x3fd   : > { %v2212_v54 = vadd.f32 %v4672_v1, %v1923_v63  ;;  %v2671_v1 = vsel %vm370_vm4, %v2602_v16, 0  ;;  %v2674_v16 = vsel %vm370_vm4, %v2603_v7, 0 }
 0x3fe   : > { %v2539_v57 = vpop.permute.xlu0 %2538 }
 0x3ff   : > { %2244 = vst.msk [vmem:[#allocation4 + $0xf0] sm:$0xff] %vm370_vm4, %v2212_v54  ;;  %v2592_v40 = vmul.f32 %v2539_v57, %v2400_v51 }
 0x402   : > { %v2469_v0 = vpop.permute.xlu0 %2468 }
 0x406   : > { %v2549_v27 = vpop.permute.xlu0 %2548  ;;  %v2404_v15 = vld [vmem:[#allocation4 + $0xf0] sm:$0xff] }
 0x407   : > { %v2594_v25 = vmul.f32 %v2549_v27, %v2402_v46 }
 0x40a   : > { %v2479_v48 = vpop.permute.xlu0 %2478 }
 0x40b   : > { %v2580_v47 = vmul.f32 %v2479_v48, %v2388_v44 }
 0x412   : > { %v2534_v41 = vpop.permute.xlu1 %2533 }
 0x413   : > { %v2591_v30 = vmul.f32 %v2534_v41, %v2399_v38 }
 0x415   : > { %v2610_v13 = vpack.c.bf16 %v2591_v30, %v2590_v21 }
 0x416   : > { %v1891_v20 = vpop.permute.xlu1 %1890 }
 0x417   : > { %v1924_v31 = vmul.f32 %v1891_v20, %v1732_v12  ;;  %3087 = vmatprep.subr.msk.bf16.mxu0 %vm370_vm4, %v2610_v13 }
 0x418   : > { %3072 = vmatpush3.bf16.xpose.msra.mxu0 %v2671_v1 }
 0x419   : > { %v2213_v49 = vadd.f32 %v4674_v33, %v1924_v31  ;;  %v2578_v33 = vmul.f32 %v2469_v0, %v2386_v60 }
 0x41a   : > { %v2544_v34 = vpop.permute.xlu1 %2543 }
 0x41b   : > { %2245 = vst.msk [vmem:[#allocation4 + $0xf8] sm:$0xff] %vm370_vm4, %v2213_v49  ;;  %v2593_v8 = vmul.f32 %v2544_v34, %v2401_v2 }
 0x41c   : > { %v2559_v4 = vpop.permute.xlu0 %2558 }
 0x41d   : > { %v2611_v39 = vpack.c.bf16 %v2593_v8, %v2592_v40  ;;  %v2596_v62 = vmul.f32 %v2559_v4, %v2404_v15 }
 0x41e   : > { %v2474_v19 = vpop.permute.xlu1 %2473 }
 0x41f   : > { %v2579_v29 = vmul.f32 %v2474_v19, %v2387_v28  ;;  %3088 = vmatprep.subr.msk.bf16.mxu0 %vm370_vm4, %v2611_v39 }
 0x420   : > { %3074 = vmatpush3.bf16.xpose.msra.mxu0 %v2674_v16  ;;  %v2625_v59 = vpop.permute.xlu0 %2624 }
 0x421   : > { %v2604_v50 = vpack.c.bf16 %v2579_v29, %v2578_v33 }
 0x422   : > { %v2554_v23 = vpop.permute.xlu1 %2553  ;;  %v2405_v17 = vld [vmem:[#allocation4 + $0xf8] sm:$0xff] }
 0x423   : > { %v2595_v26 = vmul.f32 %v2554_v23, %v2403_v5  ;;  %v2677_v61 = vsel %vm370_vm4, %v2604_v50, 0 }
 0x424   : > { %v2635_v57 = vpop.permute.xlu0 %2634 }
 0x425   : > { %v2612_v55 = vpack.c.bf16 %v2595_v26, %v2594_v25 }
 0x426   : > { %v2484_v36 = vpop.permute.xlu1 %2483 }
 0x427   : > { %v2581_v22 = vmul.f32 %v2484_v36, %v2389_v52  ;;  %3089 = vmatprep.subr.msk.bf16.mxu0 %vm370_vm4, %v2612_v55 }
 0x428   : > { %3076 = vmatpush3.bf16.xpose.msra.mxu0 %v2677_v61 }
 0x429   : > { %v2605_v14 = vpack.c.bf16 %v2581_v22, %v2580_v47 }
 0x42a   : > { %v2564_v24 = vpop.permute.xlu1 %2563 }
 0x42b   : > { %v2597_v58 = vmul.f32 %v2564_v24, %v2405_v17  ;;  %v2680_v43 = vsel %vm370_vm4, %v2605_v14, 0 }
 0x42d   : > { %v2613_v56 = vpack.c.bf16 %v2597_v58, %v2596_v62 }
 0x42e   : > { %v2630_v45 = vpop.permute.xlu1 %2629 }
 0x42f   : > { %3090 = vmatprep.subr.msk.bf16.mxu0 %vm370_vm4, %v2613_v56 }
 0x430   : > { %3078 = vmatpush3.bf16.xpose.msra.mxu0 %v2680_v43 }
 0x432   : > { %v2640_v30 = vpop.permute.xlu1 %2639 }
 0x437   : > { %3080 = vmatmul.mubr.msk.bf16.vlgmr.msra.gmra.mrb[64].mxu0 %vm370_vm4, %v4654_v37 }
 0x438   : > { %3081 = vmatprep.mubr.msk.bf16.mxu0 %vm370_vm4, %v3156_v53 }
 0x43f   : > { %3082 = vmatmul.mubr.msk.bf16.gmra.mrb[68].mxu0 %vm370_vm4, %v3156_v53 }
 0x50a   : > { %v2740_v9 = vpop.f32.mrb[64].mxu0 }
 0x50b   : > { %v2741_v6 = vadd.f32 %v2740_v9, %v2625_v59  ;;  %v2742_v35 = vpop.f32.mrb[65].mxu0 }
 0x50c   : > { %v2743_v3 = vadd.f32 %v2742_v35, %v2625_v59  ;;  %v2744_v63 = vpop.f32.mrb[66].mxu0 }
 0x50d   : > { %2759 = vst [vmem:[%s302_s27] sm:$0xff] %v2741_v6  ;;  %v2745_v54 = vadd.f32 %v2744_v63, %v2630_v45  ;;  %v2746_v18 = vpop.f32.mrb[67].mxu0 }
 0x50e   : > { %2760 = vst [vmem:[%s302_s27 + $0x8] sm:$0xff] %v2743_v3  ;;  %v2747_v37 = vadd.f32 %v2746_v18, %v2630_v45 }
 0x50f   : > { %2761 = vst [vmem:[%s302_s27 + $0x10] sm:$0xff] %v2745_v54 }
 0x510   : > { %2762 = vst [vmem:[%s302_s27 + $0x18] sm:$0xff] %v2747_v37 }
 0x512   : > { %v2750_v38 = vpop.f32.mrb[68].mxu0 }
 0x513   : > { %v2751_v41 = vadd.f32 %v2750_v38, %v2635_v57  ;;  %v2752_v21 = vpop.f32.mrb[69].mxu0 }
 0x514   : > { %v2753_v12 = vadd.f32 %v2752_v21, %v2635_v57  ;;  %v2754_v13 = vpop.f32.mrb[70].mxu0 }
 0x515   : > { %2763 = vst [vmem:[%s302_s27 + $0x20] sm:$0xff] %v2751_v41  ;;  %v2755_v10 = vadd.f32 %v2754_v13, %v2640_v30  ;;  %v2756_v20 = vpop.f32.mrb[71].mxu0 }
 0x516   : > { %2764 = vst [vmem:[%s302_s27 + $0x28] sm:$0xff] %v2753_v12  ;;  %v2757_v11 = vadd.f32 %v2756_v20, %v2640_v30 }
 0x517   : > { %2765 = vst [vmem:[%s302_s27 + $0x30] sm:$0xff] %v2755_v10 }
 0x518   : > { %2766 = vst [vmem:[%s302_s27 + $0x38] sm:$0xff] %v2757_v11 }
 0x519 PF: > { %s15_s20 = sadd.s32 1, %s3371_s20   ;;  %s4973_s18 = smov %s3367_s19 }
 0x51a   : > { %p12_p5 = scmp.ge.s32.totalorder %s15_s20, 4   ;;  %s4974_s19 = smov %s4976_s21 }
 0x51c   :  { %14 = sbr.rel (!%p12_p5) target bundleno = 2 (0x2), region = 76 }

</bundles_post_ra>
